<compile_context>
chip_gen: v7x
topology: tpu7x:2x2x1
jax: 0.10.0
libtpu: 0.0.40
codegen_flags: <defaults>
</compile_context>

<pallas_src>
import numpy as np

import jax
import jax.numpy as jnp
from jax import lax
from jax.experimental import pallas as pl
from jax.experimental.pallas import tpu as pltpu

ALPHA = 0.125          # -> channels 4, 8, 16, 16, 32, 32, 64 (x6), 128, 10
NUM_CLASSES = 5
BN_EPS = 1e-5
LANE = 128             # every activation / weight tile is padded to 128 lanes
PAD_ROWS = 8           # pad region above the staged activation in the VMEM scratch

DP_CFGS = [
    (int(ALPHA * 32), int(ALPHA * 64), 1),
    (int(ALPHA * 64), int(ALPHA * 128), 2),
    (int(ALPHA * 128), int(ALPHA * 128), 1),
    (int(ALPHA * 128), int(ALPHA * 256), 2),
    (int(ALPHA * 256), int(ALPHA * 256), 1),
    (int(ALPHA * 256), int(ALPHA * 512), 2),
    (int(ALPHA * 512), int(ALPHA * 512), 1),
    (int(ALPHA * 512), int(ALPHA * 512), 1),
    (int(ALPHA * 512), int(ALPHA * 512), 1),
    (int(ALPHA * 512), int(ALPHA * 512), 1),
    (int(ALPHA * 512), int(ALPHA * 512), 1),
    (int(ALPHA * 512), int(ALPHA * 1024), 2),
    (int(ALPHA * 1024), 10, 2),
]


# ----------------------- parameters (PyTorch-equivalent structure) -----------------------

def init_params(key):
    keys = iter(jax.random.split(key, 4 * len(DP_CFGS) + 8))

    def nrm(shape, s=0.1):
        return jax.random.normal(next(keys), shape, jnp.float32) * s

    c1 = int(ALPHA * 32)
    params = {
        "conv1": {
            "w": nrm((3, 3, 3, c1)),                       # HWIO, no bias
            "gamma": jnp.ones((c1,), jnp.float32),
            "beta": jnp.zeros((c1,), jnp.float32),
        },
        "blocks": [],
        "linear": {"w": nrm((10, NUM_CLASSES)), "b": nrm((NUM_CLASSES,))},
    }
    for cin, cout, stride in DP_CFGS:
        params["blocks"].append({
            "w3": nrm((3, 3, cin, cin)),   # full (ungrouped) 3x3 conv, as in the reference
            "b3": nrm((cin,)),
            "g1": jnp.ones((cin,), jnp.float32),
            "be1": jnp.zeros((cin,), jnp.float32),
            "w1": nrm((cin, cout)),        # 1x1 conv as [cin, cout]
            "b1": nrm((cout,)),
            "g2": jnp.ones((cout,), jnp.float32),
            "be2": jnp.zeros((cout,), jnp.float32),
            "stride": stride,
        })
    return params


# ----------------------- host-side one-time operator construction -----------------------

def _fold_bn(gamma, beta, conv_bias=None):
    # inference BN with running_mean=0, running_var=1, folded with the conv bias.
    gamma = np.asarray(gamma, np.float32)
    beta = np.asarray(beta, np.float32)
    scale = (gamma / np.float32(np.sqrt(1.0 + BN_EPS))).astype(np.float32)
    if conv_bias is None:
        shift = beta
    else:
        shift = beta + np.asarray(conv_bias, np.float32) * scale
    return scale, shift


def _conv3_taps(hin, s):
    """Output height + list of valid vertical taps (kh, boundary-mask kind)."""
    ho = (hin - 1) // s + 1
    taps = []
    for kh in range(3):
        valid = any(0 <= s * oh + kh - 1 < hin for oh in range(ho))
        if not valid:
            continue
        if kh == 0:
            mask = "first"                      # oh == 0 of each sample is zero padding
        elif kh == 2 and s == 1:
            mask = "last"                       # oh == ho-1 of each sample is zero padding
        else:
            mask = None
        taps.append((kh, mask))
    return ho, tuple(taps)


def _band3x3(w_hwio, scale, win, cin, cout, s, kh):
    """Horizontally-banded (im2col-folded, BN-scaled) weight for vertical tap kh."""
    k = np.asarray(w_hwio, np.float32) * np.asarray(scale, np.float32)[None, None, None, :]
    wo = (win - 1) // s + 1
    assert win * cin <= LANE and wo * cout <= LANE
    band = np.zeros((LANE, LANE), np.float32)
    for ow in range(wo):
        for kw in range(3):
            iw = ow * s + kw - 1
            if 0 <= iw < win:
                band[iw * cin:(iw + 1) * cin, ow * cout:(ow + 1) * cout] = k[kh, kw]
    return band, wo


def _diag1x1(w_io, scale, win, cin, cout):
    """1x1 conv in [H, W*C] layout == block-diagonal (BN-scaled) weight."""
    k = np.asarray(w_io, np.float32) * np.asarray(scale, np.float32)[None, :]
    assert win * cin <= LANE and win * cout <= LANE
    m = np.zeros((LANE, LANE), np.float32)
    for iw in range(win):
        m[iw * cin:(iw + 1) * cin, iw * cout:(iw + 1) * cout] = k
    return m


def _bias_row(shift, wsp, cout):
    assert wsp * cout <= LANE
    row = np.zeros((LANE,), np.float32)
    for iw in range(wsp):
        row[iw * cout:(iw + 1) * cout] = np.asarray(shift, np.float32)
    return row


def build_packed_operands(params, h_in, w_in):
    """One bf16 weight slab, one f32 bias slab, a static per-layer plan, flops/sample."""
    w_blocks, b_rows, plan = [], [], []
    w_off = 0
    flops_ps = 0

    def add_w(block):
        nonlocal w_off
        w_blocks.append(block)
        off = w_off
        w_off += block.shape[0]
        return off

    def add_c3(w_hwio, scale, shift, hin, win, cin, cout, s):
        nonlocal flops_ps
        ho, taps = _conv3_taps(hin, s)
        assert hin == s * ho or hin == 1
        if hin == 1:
            assert len(taps) == 1 and taps[0][0] == 1
        bands, wo = [], (win - 1) // s + 1
        for kh, _ in taps:
            band, wo = _band3x3(w_hwio, scale, win, cin, cout, s, kh)
            bands.append(band)
        off = add_w(np.concatenate(bands, axis=0))
        b_idx = len(b_rows)
        b_rows.append(_bias_row(shift, wo, cout))
        plan.append(("c3", off, taps, b_idx, s, hin, ho))
        flops_ps += 2 * ho * (LANE * len(taps)) * LANE
        return ho, wo

    # conv1 (pad input channels 3 -> 4 with zero weights so the input tile is lane-dense)
    p = params["conv1"]
    c1 = int(ALPHA * 32)
    w1 = np.zeros((3, 3, 4, c1), np.float32)
    w1[:, :, :3, :] = np.asarray(p["w"], np.float32)
    scale, shift = _fold_bn(p["gamma"], p["beta"])
    hin, win, cin = h_in, w_in, 4
    hin, win = add_c3(w1, scale, shift, hin, win, cin, c1, 2)
    cin = c1

    for blk in params["blocks"]:
        s = blk["stride"]
        cmid = int(np.asarray(blk["w3"]).shape[3])
        cout = int(np.asarray(blk["w1"]).shape[1])
        # 3x3 + BN + ReLU6
        scale, shift = _fold_bn(blk["g1"], blk["be1"], blk["b3"])
        hin, win = add_c3(np.asarray(blk["w3"], np.float32), scale, shift,
                          hin, win, cin, cmid, s)
        cin = cmid
        # 1x1 + BN + ReLU6
        scale, shift = _fold_bn(blk["g2"], blk["be2"], blk["b1"])
        off = add_w(_diag1x1(blk["w1"], scale, win, cin, cout))
        b_idx = len(b_rows)
        b_rows.append(_bias_row(shift, win, cout))
        plan.append(("c1", off, b_idx))
        flops_ps += 2 * hin * LANE * LANE
        cin = cout

    # tail: AdaptiveAvgPool2d(1) over W folded into the classifier weight; H-pool in kernel.
    c_last = cin
    assert win * c_last <= LANE
    linw = np.asarray(params["linear"]["w"], np.float32)
    wt = np.zeros((LANE, LANE), np.float32)
    for iw in range(win):
        wt[iw * c_last:(iw + 1) * c_last, :NUM_CLASSES] = linw / np.float32(win)
    off = add_w(wt)
    brow = np.zeros((LANE,), np.float32)
    brow[:NUM_CLASSES] = np.asarray(params["linear"]["b"], np.float32)
    b_idx = len(b_rows)
    b_rows.append(brow)
    plan.append(("tail", off, b_idx, hin))
    flops_ps += 2 * hin * LANE * LANE

    wslab = jnp.asarray(np.concatenate(w_blocks, axis=0), jnp.bfloat16)
    bslab = jnp.asarray(np.stack(b_rows, axis=0), jnp.float32)
    return wslab, bslab, tuple(plan), int(flops_ps)


# ----------------------- the single fused Pallas kernel -----------------------

def _make_kernel(plan, b_tile):
    def kernel(x_ref, w_ref, b_ref, out_ref, xs_ref):
        # zero the scratch once (keeps the pad rows well-defined)
        xs_ref[...] = jnp.zeros_like(xs_ref)

        act = x_ref[...]                               # [b_tile*H_in, 128] f32

        for entry in plan:
            kind = entry[0]
            if kind == "c3":
                _, w_off, taps, b_idx, s, hin, ho = entry
                m_in = b_tile * hin
                m_out = b_tile * ho
                # stage the current activation (f32) in the VMEM scratch
                xs_ref[PAD_ROWS:PAD_ROWS + m_in, :] = act
                if any(mk is not None for _, mk in taps):
                    rows = lax.broadcasted_iota(jnp.int32, (m_out, LANE), 0) % ho
                sels = []
                for kh, mk in taps:
                    if hin == s * ho:
                        start = PAD_ROWS + kh - 1
                        if s == 1:
                            sel = xs_ref[pl.ds(start, m_out), :]
                        else:
                            sel = xs_ref[pl.ds(start, m_out, stride=s), :]
                    else:
                        # hin == 1: only the center tap survives, each sample reads its row
                        sel = xs_ref[pl.ds(PAD_ROWS, m_out), :]
                    if mk == "first":
                        sel = jnp.where(rows == 0, 0.0, sel)
                    elif mk == "last":
                        sel = jnp.where(rows == ho - 1, 0.0, sel)
                    sels.append(sel.astype(jnp.bfloat16))
                xk = sels[0] if len(sels) == 1 else jnp.concatenate(sels, axis=-1)
                kdim = LANE * len(sels)
                acc = jnp.dot(xk, w_ref[w_off:w_off + kdim, :],
                              preferred_element_type=jnp.float32)
                act = jnp.clip(acc + b_ref[b_idx:b_idx + 1, :], 0.0, 6.0)   # f32 ReLU6

            elif kind == "c1":
                _, w_off, b_idx = entry
                y = jnp.dot(act.astype(jnp.bfloat16), w_ref[w_off:w_off + LANE, :],
                            preferred_element_type=jnp.float32)
                act = jnp.clip(y + b_ref[b_idx:b_idx + 1, :], 0.0, 6.0)

            else:  # "tail": avgpool (W folded into weight) + Linear + Softmax
                _, w_off, b_idx, hf = entry
                logit_rows = jnp.dot(act.astype(jnp.bfloat16),
                                     w_ref[w_off:w_off + LANE, :],
                                     preferred_element_type=jnp.float32)
                if hf > 1:   # not traced for 32x32 input (hf == 1)
                    logit_rows = jnp.mean(logit_rows.reshape(b_tile, hf, LANE), axis=1)
                logits = logit_rows + b_ref[b_idx:b_idx + 1, :]              # [b_tile, 128]
                lane = lax.broadcasted_iota(jnp.int32, (b_tile, LANE), 1)
                logits = jnp.where(lane < NUM_CLASSES, logits, -1e30)
                m = jnp.max(logits, axis=-1, keepdims=True)
                e = jnp.where(lane < NUM_CLASSES, jnp.exp(logits - m), 0.0)
                out_ref[0] = e / jnp.sum(e, axis=-1, keepdims=True)
    return kernel


# ----------------------- forward -----------------------

def mobilenet_v1_forward(x_nchw, params, b_tile=None):
    n, c, h, w = x_nchw.shape
    assert c == 3
    assert w * 4 == LANE, "kernel assumes 32x32 RGB input (W * padded-C == 128)"

    # NCHW -> NHWC, pad channels 3 -> 4, flatten to the batch-stacked [N*H, W*4] slab.
    x_nhwc = jnp.transpose(x_nchw, (0, 2, 3, 1)).astype(jnp.float32)
    x_nhwc = jnp.pad(x_nhwc, ((0, 0), (0, 0), (0, 0), (0, 1)))
    x2d = x_nhwc.reshape(n * h, w * 4)

    wslab, bslab, plan, flops_ps = build_packed_operands(params, h, w)

    if b_tile is None:
        # Largest batch tile <= 8 dividing N.  On v7x prefer a b_tile such that
        # n // b_tile is a multiple of 2 so both TensorCores get grid steps.
        b_tile = next(d for d in (8, 4, 2, 1) if n % d == 0)
    assert n % b_tile == 0
    grid = (n // b_tile,)

    cost = pl.CostEstimate(
        flops=int(n * flops_ps),
        transcendentals=int(n * LANE),
        bytes_accessed=int(x2d.size * 4 + wslab.size * 2 + bslab.size * 4 + n * LANE * 4),
    )

    out = pl.pallas_call(
        _make_kernel(plan, b_tile),
        out_shape=jax.ShapeDtypeStruct((grid[0], b_tile, LANE), jnp.float32),
        grid=grid,
        in_specs=[
            pl.BlockSpec((b_tile * h, LANE), lambda i: (i, 0)),     # stacked input tile
            pl.BlockSpec(wslab.shape, lambda i: (0, 0)),            # packed weight slab
            pl.BlockSpec(bslab.shape, lambda i: (0, 0)),            # packed bias slab
        ],
        out_specs=pl.BlockSpec((1, b_tile, LANE), lambda i: (i, 0, 0)),
        scratch_shapes=[pltpu.VMEM((2 * PAD_ROWS + b_tile * h, LANE), jnp.float32)],
        compiler_params=pltpu.CompilerParams(
            dimension_semantics=("parallel",)),
        cost_estimate=cost,
    )(x2d, wslab, bslab)

    return out.reshape(n, LANE)[:, :NUM_CLASSES]


# ----------------------- pure-JAX reference (same bf16 quantization) -----------------------

def mobilenet_reference(x_nchw, params):
    x = jnp.transpose(x_nchw, (0, 2, 3, 1)).astype(jnp.float32)     # NHWC

    def conv3(x, w, bias, gamma, beta, stride):
        scale, shift = _fold_bn(gamma, beta, bias)
        wf = (jnp.asarray(w, jnp.float32) * scale[None, None, None, :]).astype(jnp.bfloat16)
        y = lax.conv_general_dilated(
            x.astype(jnp.bfloat16), wf, (stride, stride), ((1, 1), (1, 1)),
            dimension_numbers=("NHWC", "HWIO", "NHWC"),
            preferred_element_type=jnp.float32)
        return jnp.clip(y + shift, 0.0, 6.0)

    def conv1(x, w, bias, gamma, beta):
        scale, shift = _fold_bn(gamma, beta, bias)
        wf = (jnp.asarray(w, jnp.float32) * scale[None, :]).astype(jnp.bfloat16)
        y = jnp.einsum("nhwc,cd->nhwd", x.astype(jnp.bfloat16), wf,
                       preferred_element_type=jnp.float32)
        return jnp.clip(y + shift, 0.0, 6.0)

    p = params["conv1"]
    x = conv3(x, p["w"], None, p["gamma"], p["beta"], 2)
    for blk in params["blocks"]:
        x = conv3(x, blk["w3"], blk["b3"], blk["g1"], blk["be1"], blk["stride"])
        x = conv1(x, blk["w1"], blk["b1"], blk["g2"], blk["be2"])
    pooled = jnp.mean(x, axis=(1, 2))                                # [N, 10]
    logits = jnp.dot(pooled.astype(jnp.bfloat16),
                     jnp.asarray(params["linear"]["w"], jnp.float32).astype(jnp.bfloat16),
                     preferred_element_type=jnp.float32) + params["linear"]["b"]
    return jax.nn.softmax(logits, axis=-1)


if __name__ == "__main__":
    key = jax.random.PRNGKey(0)
    kx, kp = jax.random.split(key)
    x = jax.random.normal(kx, (2, 3, 32, 32), jnp.float32)
    params = init_params(kp)

    out = mobilenet_v1_forward(x, params)
    out = jax.block_until_ready(out)

    assert out.shape == (2, NUM_CLASSES)
    assert bool(jnp.all(jnp.isfinite(out)))
    assert bool(jnp.allclose(jnp.sum(out, axis=-1), 1.0, atol=1e-5))

    ref = mobilenet_reference(x, params)
    max_err = float(jnp.max(jnp.abs(out - ref)))
    assert max_err < 3e-3, f"kernel vs reference mismatch: max_err={max_err}"

    print("KERNEL_OK")
</pallas_src>

<mosaic_0001>
module attributes {stable_mosaic.version = 11 : i64} {
  func.func @kernel(%arg0: i32, %arg1: memref<64x128xf32, #tpu.memory_space<vmem>>, %arg2: memref<6784x128xbf16, #tpu.memory_space<vmem>>, %arg3: memref<28x128xf32, #tpu.memory_space<vmem>>, %arg4: memref<1x2x128xf32, #tpu.memory_space<vmem>>, %arg5: memref<80x128xf32, #tpu.memory_space<vmem>>) attributes {dimension_semantics = [#tpu.dimension_semantics<parallel>], iteration_bounds = array<i64: 1>, scalar_prefetch = 0 : i64, scratch_operands = 1 : i64, tpu.core_type = #tpu.core_type<tc>, window_params = [{transform_indices = @transform_0, window_bounds = array<i64: 64, 128>}, {pipeline_mode = #tpu.pipeline_mode<synchronous>, transform_indices = @transform_1, window_bounds = array<i64: 6784, 128>}, {pipeline_mode = #tpu.pipeline_mode<synchronous>, transform_indices = @transform_2, window_bounds = array<i64: 28, 128>}, {transform_indices = @transform_3, window_bounds = array<i64: 1, 2, 128>}]} {
    %cst = arith.constant 0.000000e+00 : f32
    %0 = vector.broadcast %cst : f32 to vector<80x128xf32>
    %c0 = arith.constant 0 : index
    %c0_0 = arith.constant 0 : index
    %1 = vector.load %arg5[%c0, %c0_0] : memref<80x128xf32, #tpu.memory_space<vmem>>, vector<80x128xf32>
    tpu.vector_store %arg5[%c0, %c0_0], %0 {strides = array<i32>} : memref<80x128xf32, #tpu.memory_space<vmem>>, vector<80x128xf32>,
    %c0_1 = arith.constant 0 : index
    %c0_2 = arith.constant 0 : index
    %2 = vector.load %arg1[%c0_1, %c0_2] : memref<64x128xf32, #tpu.memory_space<vmem>>, vector<64x128xf32>
    %c8 = arith.constant 8 : index
    %c0_3 = arith.constant 0 : index
    %3 = vector.load %arg5[%c8, %c0_3] : memref<80x128xf32, #tpu.memory_space<vmem>>, vector<64x128xf32>
    tpu.vector_store %arg5[%c8, %c0_3], %2 {strides = array<i32>} : memref<80x128xf32, #tpu.memory_space<vmem>>, vector<64x128xf32>,
    %4 = tpu.iota {dimensions = array<i32: 0>} : vector<32x128xi32>
    %c16_i32 = arith.constant 16 : i32
    %c0_i32 = arith.constant 0 : i32
    %5 = arith.cmpi eq, %c16_i32, %c0_i32 : i32
    %c1_i32 = arith.constant 1 : i32
    %6 = arith.select %5, %c1_i32, %c16_i32 : i32
    %7 = vector.broadcast %6 : i32 to vector<32x128xi32>
    %8 = arith.remsi %4, %7 : vector<32x128xi32>
    %c0_i32_4 = arith.constant 0 : i32
    %9 = vector.broadcast %c0_i32_4 : i32 to vector<32x128xi32>
    %10 = arith.cmpi ne, %8, %9 : vector<32x128xi32>
    %c0_i32_5 = arith.constant 0 : i32
    %11 = vector.broadcast %c0_i32_5 : i32 to vector<32x128xi32>
    %12 = arith.cmpi slt, %8, %11 : vector<32x128xi32>
    %c0_i32_6 = arith.constant 0 : i32
    %13 = arith.cmpi slt, %6, %c0_i32_6 : i32
    %14 = vector.broadcast %13 : i1 to vector<32x128xi1>
    %15 = vector.broadcast %14 : vector<32x128xi1> to vector<32x128xi1>
    %16 = arith.xori %12, %15 : vector<32x128xi1>
    %17 = arith.andi %16, %10 : vector<32x128xi1>
    %18 = vector.broadcast %6 : i32 to vector<32x128xi32>
    %19 = arith.addi %8, %18 : vector<32x128xi32>
    %20 = arith.select %17, %19, %8 : vector<32x128xi1>, vector<32x128xi32>
    %c7 = arith.constant 7 : index
    %c0_7 = arith.constant 0 : index
    %21 = tpu.strided_load %arg5[%c7, %c0_7] {strides = array<i32: 2, 1>} : memref<80x128xf32, #tpu.memory_space<vmem>>, vector<32x128xf32>
    %c0_i32_8 = arith.constant 0 : i32
    %22 = vector.broadcast %c0_i32_8 : i32 to vector<32x128xi32>
    %23 = arith.cmpi eq, %20, %22 : vector<32x128xi32>
    %cst_9 = arith.constant 0.000000e+00 : f32
    %24 = vector.broadcast %cst_9 : f32 to vector<32x128xf32>
    %25 = arith.select %23, %24, %21 : vector<32x128xi1>, vector<32x128xf32>
    %26 = arith.truncf %25 : vector<32x128xf32> to vector<32x128xbf16>
    %c8_10 = arith.constant 8 : index
    %c0_11 = arith.constant 0 : index
    %27 = tpu.strided_load %arg5[%c8_10, %c0_11] {strides = array<i32: 2, 1>} : memref<80x128xf32, #tpu.memory_space<vmem>>, vector<32x128xf32>
    %28 = arith.truncf %27 : vector<32x128xf32> to vector<32x128xbf16>
    %c9 = arith.constant 9 : index
    %c0_12 = arith.constant 0 : index
    %29 = tpu.strided_load %arg5[%c9, %c0_12] {strides = array<i32: 2, 1>} : memref<80x128xf32, #tpu.memory_space<vmem>>, vector<32x128xf32>
    %30 = arith.truncf %29 : vector<32x128xf32> to vector<32x128xbf16>
    %31 = tpu.concatenate %26, %28, %30 in 1 : vector<32x128xbf16>, vector<32x128xbf16>, vector<32x128xbf16> -> vector<32x384xbf16>
    %c0_13 = arith.constant 0 : index
    %c0_14 = arith.constant 0 : index
    %32 = vector.load %arg2[%c0_13, %c0_14] : memref<6784x128xbf16, #tpu.memory_space<vmem>>, vector<384x128xbf16>
    %cst_15 = arith.constant dense<0.000000e+00> : vector<32x128xf32>
    %33 = tpu.matmul %31, %32, %cst_15 {dimension_numbers = #tpu.dot_dimension_numbers<[1], [0], [0], [1], [0, 0, 1, 1], [], []>} : vector<32x384xbf16>, vector<384x128xbf16>, vector<32x128xf32> -> vector<32x128xf32>
    %c0_16 = arith.constant 0 : index
    %c0_17 = arith.constant 0 : index
    %34 = vector.load %arg3[%c0_16, %c0_17] : memref<28x128xf32, #tpu.memory_space<vmem>>, vector<1x128xf32>
    %35 = vector.broadcast %34 : vector<1x128xf32> to vector<32x128xf32>
    %36 = arith.addf %33, %35 : vector<32x128xf32>
    %cst_18 = arith.constant 0.000000e+00 : f32
    %cst_19 = arith.constant 6.000000e+00 : f32
    %37 = vector.broadcast %cst_18 : f32 to vector<32x128xf32>
    %38 = arith.maximumf %37, %36 : vector<32x128xf32>
    %39 = vector.broadcast %cst_19 : f32 to vector<32x128xf32>
    %40 = arith.minimumf %39, %38 : vector<32x128xf32>
    %c8_20 = arith.constant 8 : index
    %c0_21 = arith.constant 0 : index
    %41 = vector.load %arg5[%c8_20, %c0_21] : memref<80x128xf32, #tpu.memory_space<vmem>>, vector<32x128xf32>
    tpu.vector_store %arg5[%c8_20, %c0_21], %40 {strides = array<i32>} : memref<80x128xf32, #tpu.memory_space<vmem>>, vector<32x128xf32>,
    %42 = tpu.iota {dimensions = array<i32: 0>} : vector<32x128xi32>
    %c16_i32_22 = arith.constant 16 : i32
    %c0_i32_23 = arith.constant 0 : i32
    %43 = arith.cmpi eq, %c16_i32_22, %c0_i32_23 : i32
    %c1_i32_24 = arith.constant 1 : i32
    %44 = arith.select %43, %c1_i32_24, %c16_i32_22 : i32
    %45 = vector.broadcast %44 : i32 to vector<32x128xi32>
    %46 = arith.remsi %42, %45 : vector<32x128xi32>
    %c0_i32_25 = arith.constant 0 : i32
    %47 = vector.broadcast %c0_i32_25 : i32 to vector<32x128xi32>
    %48 = arith.cmpi ne, %46, %47 : vector<32x128xi32>
    %c0_i32_26 = arith.constant 0 : i32
    %49 = vector.broadcast %c0_i32_26 : i32 to vector<32x128xi32>
    %50 = arith.cmpi slt, %46, %49 : vector<32x128xi32>
    %c0_i32_27 = arith.constant 0 : i32
    %51 = arith.cmpi slt, %44, %c0_i32_27 : i32
    %52 = vector.broadcast %51 : i1 to vector<32x128xi1>
    %53 = vector.broadcast %52 : vector<32x128xi1> to vector<32x128xi1>
    %54 = arith.xori %50, %53 : vector<32x128xi1>
    %55 = arith.andi %54, %48 : vector<32x128xi1>
    %56 = vector.broadcast %44 : i32 to vector<32x128xi32>
    %57 = arith.addi %46, %56 : vector<32x128xi32>
    %58 = arith.select %55, %57, %46 : vector<32x128xi1>, vector<32x128xi32>
    %c7_28 = arith.constant 7 : index
    %c0_29 = arith.constant 0 : index
    %59 = vector.load %arg5[%c7_28, %c0_29] : memref<80x128xf32, #tpu.memory_space<vmem>>, vector<32x128xf32>
    %c0_i32_30 = arith.constant 0 : i32
    %60 = vector.broadcast %c0_i32_30 : i32 to vector<32x128xi32>
    %61 = arith.cmpi eq, %58, %60 : vector<32x128xi32>
    %cst_31 = arith.constant 0.000000e+00 : f32
    %62 = vector.broadcast %cst_31 : f32 to vector<32x128xf32>
    %63 = arith.select %61, %62, %59 : vector<32x128xi1>, vector<32x128xf32>
    %64 = arith.truncf %63 : vector<32x128xf32> to vector<32x128xbf16>
    %c8_32 = arith.constant 8 : index
    %c0_33 = arith.constant 0 : index
    %65 = vector.load %arg5[%c8_32, %c0_33] : memref<80x128xf32, #tpu.memory_space<vmem>>, vector<32x128xf32>
    %66 = arith.truncf %65 : vector<32x128xf32> to vector<32x128xbf16>
    %c9_34 = arith.constant 9 : index
    %c0_35 = arith.constant 0 : index
    %67 = vector.load %arg5[%c9_34, %c0_35] : memref<80x128xf32, #tpu.memory_space<vmem>>, vector<32x128xf32>
    %c15_i32 = arith.constant 15 : i32
    %68 = vector.broadcast %c15_i32 : i32 to vector<32x128xi32>
    %69 = arith.cmpi eq, %58, %68 : vector<32x128xi32>
    %cst_36 = arith.constant 0.000000e+00 : f32
    %70 = vector.broadcast %cst_36 : f32 to vector<32x128xf32>
    %71 = arith.select %69, %70, %67 : vector<32x128xi1>, vector<32x128xf32>
    %72 = arith.truncf %71 : vector<32x128xf32> to vector<32x128xbf16>
    %73 = tpu.concatenate %64, %66, %72 in 1 : vector<32x128xbf16>, vector<32x128xbf16>, vector<32x128xbf16> -> vector<32x384xbf16>
    %c384 = arith.constant 384 : index
    %c0_37 = arith.constant 0 : index
    %74 = vector.load %arg2[%c384, %c0_37] : memref<6784x128xbf16, #tpu.memory_space<vmem>>, vector<384x128xbf16>
    %cst_38 = arith.constant dense<0.000000e+00> : vector<32x128xf32>
    %75 = tpu.matmul %73, %74, %cst_38 {dimension_numbers = #tpu.dot_dimension_numbers<[1], [0], [0], [1], [0, 0, 1, 1], [], []>} : vector<32x384xbf16>, vector<384x128xbf16>, vector<32x128xf32> -> vector<32x128xf32>
    %c1 = arith.constant 1 : index
    %c0_39 = arith.constant 0 : index
    %76 = vector.load %arg3[%c1, %c0_39] : memref<28x128xf32, #tpu.memory_space<vmem>>, vector<1x128xf32>
    %77 = vector.broadcast %76 : vector<1x128xf32> to vector<32x128xf32>
    %78 = arith.addf %75, %77 : vector<32x128xf32>
    %cst_40 = arith.constant 0.000000e+00 : f32
    %cst_41 = arith.constant 6.000000e+00 : f32
    %79 = vector.broadcast %cst_40 : f32 to vector<32x128xf32>
    %80 = arith.maximumf %79, %78 : vector<32x128xf32>
    %81 = vector.broadcast %cst_41 : f32 to vector<32x128xf32>
    %82 = arith.minimumf %81, %80 : vector<32x128xf32>
    %83 = arith.truncf %82 : vector<32x128xf32> to vector<32x128xbf16>
    %c768 = arith.constant 768 : index
    %c0_42 = arith.constant 0 : index
    %84 = vector.load %arg2[%c768, %c0_42] : memref<6784x128xbf16, #tpu.memory_space<vmem>>, vector<128x128xbf16>
    %cst_43 = arith.constant dense<0.000000e+00> : vector<32x128xf32>
    %85 = tpu.matmul %83, %84, %cst_43 {dimension_numbers = #tpu.dot_dimension_numbers<[1], [0], [0], [1], [0, 0, 1, 1], [], []>} : vector<32x128xbf16>, vector<128x128xbf16>, vector<32x128xf32> -> vector<32x128xf32>
    %c2 = arith.constant 2 : index
    %c0_44 = arith.constant 0 : index
    %86 = vector.load %arg3[%c2, %c0_44] : memref<28x128xf32, #tpu.memory_space<vmem>>, vector<1x128xf32>
    %87 = vector.broadcast %86 : vector<1x128xf32> to vector<32x128xf32>
    %88 = arith.addf %85, %87 : vector<32x128xf32>
    %cst_45 = arith.constant 0.000000e+00 : f32
    %cst_46 = arith.constant 6.000000e+00 : f32
    %89 = vector.broadcast %cst_45 : f32 to vector<32x128xf32>
    %90 = arith.maximumf %89, %88 : vector<32x128xf32>
    %91 = vector.broadcast %cst_46 : f32 to vector<32x128xf32>
    %92 = arith.minimumf %91, %90 : vector<32x128xf32>
    %c8_47 = arith.constant 8 : index
    %c0_48 = arith.constant 0 : index
    %93 = vector.load %arg5[%c8_47, %c0_48] : memref<80x128xf32, #tpu.memory_space<vmem>>, vector<32x128xf32>
    tpu.vector_store %arg5[%c8_47, %c0_48], %92 {strides = array<i32>} : memref<80x128xf32, #tpu.memory_space<vmem>>, vector<32x128xf32>,
    %94 = tpu.iota {dimensions = array<i32: 0>} : vector<16x128xi32>
    %c8_i32 = arith.constant 8 : i32
    %c0_i32_49 = arith.constant 0 : i32
    %95 = arith.cmpi eq, %c8_i32, %c0_i32_49 : i32
    %c1_i32_50 = arith.constant 1 : i32
    %96 = arith.select %95, %c1_i32_50, %c8_i32 : i32
    %97 = vector.broadcast %96 : i32 to vector<16x128xi32>
    %98 = arith.remsi %94, %97 : vector<16x128xi32>
    %c0_i32_51 = arith.constant 0 : i32
    %99 = vector.broadcast %c0_i32_51 : i32 to vector<16x128xi32>
    %100 = arith.cmpi ne, %98, %99 : vector<16x128xi32>
    %c0_i32_52 = arith.constant 0 : i32
    %101 = vector.broadcast %c0_i32_52 : i32 to vector<16x128xi32>
    %102 = arith.cmpi slt, %98, %101 : vector<16x128xi32>
    %c0_i32_53 = arith.constant 0 : i32
    %103 = arith.cmpi slt, %96, %c0_i32_53 : i32
    %104 = vector.broadcast %103 : i1 to vector<16x128xi1>
    %105 = vector.broadcast %104 : vector<16x128xi1> to vector<16x128xi1>
    %106 = arith.xori %102, %105 : vector<16x128xi1>
    %107 = arith.andi %106, %100 : vector<16x128xi1>
    %108 = vector.broadcast %96 : i32 to vector<16x128xi32>
    %109 = arith.addi %98, %108 : vector<16x128xi32>
    %110 = arith.select %107, %109, %98 : vector<16x128xi1>, vector<16x128xi32>
    %c7_54 = arith.constant 7 : index
    %c0_55 = arith.constant 0 : index
    %111 = tpu.strided_load %arg5[%c7_54, %c0_55] {strides = array<i32: 2, 1>} : memref<80x128xf32, #tpu.memory_space<vmem>>, vector<16x128xf32>
    %c0_i32_56 = arith.constant 0 : i32
    %112 = vector.broadcast %c0_i32_56 : i32 to vector<16x128xi32>
    %113 = arith.cmpi eq, %110, %112 : vector<16x128xi32>
    %cst_57 = arith.constant 0.000000e+00 : f32
    %114 = vector.broadcast %cst_57 : f32 to vector<16x128xf32>
    %115 = arith.select %113, %114, %111 : vector<16x128xi1>, vector<16x128xf32>
    %116 = arith.truncf %115 : vector<16x128xf32> to vector<16x128xbf16>
    %c8_58 = arith.constant 8 : index
    %c0_59 = arith.constant 0 : index
    %117 = tpu.strided_load %arg5[%c8_58, %c0_59] {strides = array<i32: 2, 1>} : memref<80x128xf32, #tpu.memory_space<vmem>>, vector<16x128xf32>
    %118 = arith.truncf %117 : vector<16x128xf32> to vector<16x128xbf16>
    %c9_60 = arith.constant 9 : index
    %c0_61 = arith.constant 0 : index
    %119 = tpu.strided_load %arg5[%c9_60, %c0_61] {strides = array<i32: 2, 1>} : memref<80x128xf32, #tpu.memory_space<vmem>>, vector<16x128xf32>
    %120 = arith.truncf %119 : vector<16x128xf32> to vector<16x128xbf16>
    %121 = tpu.concatenate %116, %118, %120 in 1 : vector<16x128xbf16>, vector<16x128xbf16>, vector<16x128xbf16> -> vector<16x384xbf16>
    %c896 = arith.constant 896 : index
    %c0_62 = arith.constant 0 : index
    %122 = vector.load %arg2[%c896, %c0_62] : memref<6784x128xbf16, #tpu.memory_space<vmem>>, vector<384x128xbf16>
    %cst_63 = arith.constant dense<0.000000e+00> : vector<16x128xf32>
    %123 = tpu.matmul %121, %122, %cst_63 {dimension_numbers = #tpu.dot_dimension_numbers<[1], [0], [0], [1], [0, 0, 1, 1], [], []>} : vector<16x384xbf16>, vector<384x128xbf16>, vector<16x128xf32> -> vector<16x128xf32>
    %c3 = arith.constant 3 : index
    %c0_64 = arith.constant 0 : index
    %124 = vector.load %arg3[%c3, %c0_64] : memref<28x128xf32, #tpu.memory_space<vmem>>, vector<1x128xf32>
    %125 = vector.broadcast %124 : vector<1x128xf32> to vector<16x128xf32>
    %126 = arith.addf %123, %125 : vector<16x128xf32>
    %cst_65 = arith.constant 0.000000e+00 : f32
    %cst_66 = arith.constant 6.000000e+00 : f32
    %127 = vector.broadcast %cst_65 : f32 to vector<16x128xf32>
    %128 = arith.maximumf %127, %126 : vector<16x128xf32>
    %129 = vector.broadcast %cst_66 : f32 to vector<16x128xf32>
    %130 = arith.minimumf %129, %128 : vector<16x128xf32>
    %131 = arith.truncf %130 : vector<16x128xf32> to vector<16x128xbf16>
    %c1280 = arith.constant 1280 : index
    %c0_67 = arith.constant 0 : index
    %132 = vector.load %arg2[%c1280, %c0_67] : memref<6784x128xbf16, #tpu.memory_space<vmem>>, vector<128x128xbf16>
    %cst_68 = arith.constant dense<0.000000e+00> : vector<16x128xf32>
    %133 = tpu.matmul %131, %132, %cst_68 {dimension_numbers = #tpu.dot_dimension_numbers<[1], [0], [0], [1], [0, 0, 1, 1], [], []>} : vector<16x128xbf16>, vector<128x128xbf16>, vector<16x128xf32> -> vector<16x128xf32>
    %c4 = arith.constant 4 : index
    %c0_69 = arith.constant 0 : index
    %134 = vector.load %arg3[%c4, %c0_69] : memref<28x128xf32, #tpu.memory_space<vmem>>, vector<1x128xf32>
    %135 = vector.broadcast %134 : vector<1x128xf32> to vector<16x128xf32>
    %136 = arith.addf %133, %135 : vector<16x128xf32>
    %cst_70 = arith.constant 0.000000e+00 : f32
    %cst_71 = arith.constant 6.000000e+00 : f32
    %137 = vector.broadcast %cst_70 : f32 to vector<16x128xf32>
    %138 = arith.maximumf %137, %136 : vector<16x128xf32>
    %139 = vector.broadcast %cst_71 : f32 to vector<16x128xf32>
    %140 = arith.minimumf %139, %138 : vector<16x128xf32>
    %c8_72 = arith.constant 8 : index
    %c0_73 = arith.constant 0 : index
    %141 = vector.load %arg5[%c8_72, %c0_73] : memref<80x128xf32, #tpu.memory_space<vmem>>, vector<16x128xf32>
    tpu.vector_store %arg5[%c8_72, %c0_73], %140 {strides = array<i32>} : memref<80x128xf32, #tpu.memory_space<vmem>>, vector<16x128xf32>,
    %142 = tpu.iota {dimensions = array<i32: 0>} : vector<16x128xi32>
    %c8_i32_74 = arith.constant 8 : i32
    %c0_i32_75 = arith.constant 0 : i32
    %143 = arith.cmpi eq, %c8_i32_74, %c0_i32_75 : i32
    %c1_i32_76 = arith.constant 1 : i32
    %144 = arith.select %143, %c1_i32_76, %c8_i32_74 : i32
    %145 = vector.broadcast %144 : i32 to vector<16x128xi32>
    %146 = arith.remsi %142, %145 : vector<16x128xi32>
    %c0_i32_77 = arith.constant 0 : i32
    %147 = vector.broadcast %c0_i32_77 : i32 to vector<16x128xi32>
    %148 = arith.cmpi ne, %146, %147 : vector<16x128xi32>
    %c0_i32_78 = arith.constant 0 : i32
    %149 = vector.broadcast %c0_i32_78 : i32 to vector<16x128xi32>
    %150 = arith.cmpi slt, %146, %149 : vector<16x128xi32>
    %c0_i32_79 = arith.constant 0 : i32
    %151 = arith.cmpi slt, %144, %c0_i32_79 : i32
    %152 = vector.broadcast %151 : i1 to vector<16x128xi1>
    %153 = vector.broadcast %152 : vector<16x128xi1> to vector<16x128xi1>
    %154 = arith.xori %150, %153 : vector<16x128xi1>
    %155 = arith.andi %154, %148 : vector<16x128xi1>
    %156 = vector.broadcast %144 : i32 to vector<16x128xi32>
    %157 = arith.addi %146, %156 : vector<16x128xi32>
    %158 = arith.select %155, %157, %146 : vector<16x128xi1>, vector<16x128xi32>
    %c7_80 = arith.constant 7 : index
    %c0_81 = arith.constant 0 : index
    %159 = vector.load %arg5[%c7_80, %c0_81] : memref<80x128xf32, #tpu.memory_space<vmem>>, vector<16x128xf32>
    %c0_i32_82 = arith.constant 0 : i32
    %160 = vector.broadcast %c0_i32_82 : i32 to vector<16x128xi32>
    %161 = arith.cmpi eq, %158, %160 : vector<16x128xi32>
    %cst_83 = arith.constant 0.000000e+00 : f32
    %162 = vector.broadcast %cst_83 : f32 to vector<16x128xf32>
    %163 = arith.select %161, %162, %159 : vector<16x128xi1>, vector<16x128xf32>
    %164 = arith.truncf %163 : vector<16x128xf32> to vector<16x128xbf16>
    %c8_84 = arith.constant 8 : index
    %c0_85 = arith.constant 0 : index
    %165 = vector.load %arg5[%c8_84, %c0_85] : memref<80x128xf32, #tpu.memory_space<vmem>>, vector<16x128xf32>
    %166 = arith.truncf %165 : vector<16x128xf32> to vector<16x128xbf16>
    %c9_86 = arith.constant 9 : index
    %c0_87 = arith.constant 0 : index
    %167 = vector.load %arg5[%c9_86, %c0_87] : memref<80x128xf32, #tpu.memory_space<vmem>>, vector<16x128xf32>
    %c7_i32 = arith.constant 7 : i32
    %168 = vector.broadcast %c7_i32 : i32 to vector<16x128xi32>
    %169 = arith.cmpi eq, %158, %168 : vector<16x128xi32>
    %cst_88 = arith.constant 0.000000e+00 : f32
    %170 = vector.broadcast %cst_88 : f32 to vector<16x128xf32>
    %171 = arith.select %169, %170, %167 : vector<16x128xi1>, vector<16x128xf32>
    %172 = arith.truncf %171 : vector<16x128xf32> to vector<16x128xbf16>
    %173 = tpu.concatenate %164, %166, %172 in 1 : vector<16x128xbf16>, vector<16x128xbf16>, vector<16x128xbf16> -> vector<16x384xbf16>
    %c1408 = arith.constant 1408 : index
    %c0_89 = arith.constant 0 : index
    %174 = vector.load %arg2[%c1408, %c0_89] : memref<6784x128xbf16, #tpu.memory_space<vmem>>, vector<384x128xbf16>
    %cst_90 = arith.constant dense<0.000000e+00> : vector<16x128xf32>
    %175 = tpu.matmul %173, %174, %cst_90 {dimension_numbers = #tpu.dot_dimension_numbers<[1], [0], [0], [1], [0, 0, 1, 1], [], []>} : vector<16x384xbf16>, vector<384x128xbf16>, vector<16x128xf32> -> vector<16x128xf32>
    %c5 = arith.constant 5 : index
    %c0_91 = arith.constant 0 : index
    %176 = vector.load %arg3[%c5, %c0_91] : memref<28x128xf32, #tpu.memory_space<vmem>>, vector<1x128xf32>
    %177 = vector.broadcast %176 : vector<1x128xf32> to vector<16x128xf32>
    %178 = arith.addf %175, %177 : vector<16x128xf32>
    %cst_92 = arith.constant 0.000000e+00 : f32
    %cst_93 = arith.constant 6.000000e+00 : f32
    %179 = vector.broadcast %cst_92 : f32 to vector<16x128xf32>
    %180 = arith.maximumf %179, %178 : vector<16x128xf32>
    %181 = vector.broadcast %cst_93 : f32 to vector<16x128xf32>
    %182 = arith.minimumf %181, %180 : vector<16x128xf32>
    %183 = arith.truncf %182 : vector<16x128xf32> to vector<16x128xbf16>
    %c1792 = arith.constant 1792 : index
    %c0_94 = arith.constant 0 : index
    %184 = vector.load %arg2[%c1792, %c0_94] : memref<6784x128xbf16, #tpu.memory_space<vmem>>, vector<128x128xbf16>
    %cst_95 = arith.constant dense<0.000000e+00> : vector<16x128xf32>
    %185 = tpu.matmul %183, %184, %cst_95 {dimension_numbers = #tpu.dot_dimension_numbers<[1], [0], [0], [1], [0, 0, 1, 1], [], []>} : vector<16x128xbf16>, vector<128x128xbf16>, vector<16x128xf32> -> vector<16x128xf32>
    %c6 = arith.constant 6 : index
    %c0_96 = arith.constant 0 : index
    %186 = vector.load %arg3[%c6, %c0_96] : memref<28x128xf32, #tpu.memory_space<vmem>>, vector<1x128xf32>
    %187 = vector.broadcast %186 : vector<1x128xf32> to vector<16x128xf32>
    %188 = arith.addf %185, %187 : vector<16x128xf32>
    %cst_97 = arith.constant 0.000000e+00 : f32
    %cst_98 = arith.constant 6.000000e+00 : f32
    %189 = vector.broadcast %cst_97 : f32 to vector<16x128xf32>
    %190 = arith.maximumf %189, %188 : vector<16x128xf32>
    %191 = vector.broadcast %cst_98 : f32 to vector<16x128xf32>
    %192 = arith.minimumf %191, %190 : vector<16x128xf32>
    %c8_99 = arith.constant 8 : index
    %c0_100 = arith.constant 0 : index
    %193 = vector.load %arg5[%c8_99, %c0_100] : memref<80x128xf32, #tpu.memory_space<vmem>>, vector<16x128xf32>
    tpu.vector_store %arg5[%c8_99, %c0_100], %192 {strides = array<i32>} : memref<80x128xf32, #tpu.memory_space<vmem>>, vector<16x128xf32>,
    %194 = tpu.iota {dimensions = array<i32: 0>} : vector<8x128xi32>
    %c4_i32 = arith.constant 4 : i32
    %c0_i32_101 = arith.constant 0 : i32
    %195 = arith.cmpi eq, %c4_i32, %c0_i32_101 : i32
    %c1_i32_102 = arith.constant 1 : i32
    %196 = arith.select %195, %c1_i32_102, %c4_i32 : i32
    %197 = vector.broadcast %196 : i32 to vector<8x128xi32>
    %198 = arith.remsi %194, %197 : vector<8x128xi32>
    %c0_i32_103 = arith.constant 0 : i32
    %199 = vector.broadcast %c0_i32_103 : i32 to vector<8x128xi32>
    %200 = arith.cmpi ne, %198, %199 : vector<8x128xi32>
    %c0_i32_104 = arith.constant 0 : i32
    %201 = vector.broadcast %c0_i32_104 : i32 to vector<8x128xi32>
    %202 = arith.cmpi slt, %198, %201 : vector<8x128xi32>
    %c0_i32_105 = arith.constant 0 : i32
    %203 = arith.cmpi slt, %196, %c0_i32_105 : i32
    %204 = vector.broadcast %203 : i1 to vector<8x128xi1>
    %205 = vector.broadcast %204 : vector<8x128xi1> to vector<8x128xi1>
    %206 = arith.xori %202, %205 : vector<8x128xi1>
    %207 = arith.andi %206, %200 : vector<8x128xi1>
    %208 = vector.broadcast %196 : i32 to vector<8x128xi32>
    %209 = arith.addi %198, %208 : vector<8x128xi32>
    %210 = arith.select %207, %209, %198 : vector<8x128xi1>, vector<8x128xi32>
    %c7_106 = arith.constant 7 : index
    %c0_107 = arith.constant 0 : index
    %211 = tpu.strided_load %arg5[%c7_106, %c0_107] {strides = array<i32: 2, 1>} : memref<80x128xf32, #tpu.memory_space<vmem>>, vector<8x128xf32>
    %c0_i32_108 = arith.constant 0 : i32
    %212 = vector.broadcast %c0_i32_108 : i32 to vector<8x128xi32>
    %213 = arith.cmpi eq, %210, %212 : vector<8x128xi32>
    %cst_109 = arith.constant 0.000000e+00 : f32
    %214 = vector.broadcast %cst_109 : f32 to vector<8x128xf32>
    %215 = arith.select %213, %214, %211 : vector<8x128xi1>, vector<8x128xf32>
    %216 = arith.truncf %215 : vector<8x128xf32> to vector<8x128xbf16>
    %c8_110 = arith.constant 8 : index
    %c0_111 = arith.constant 0 : index
    %217 = tpu.strided_load %arg5[%c8_110, %c0_111] {strides = array<i32: 2, 1>} : memref<80x128xf32, #tpu.memory_space<vmem>>, vector<8x128xf32>
    %218 = arith.truncf %217 : vector<8x128xf32> to vector<8x128xbf16>
    %c9_112 = arith.constant 9 : index
    %c0_113 = arith.constant 0 : index
    %219 = tpu.strided_load %arg5[%c9_112, %c0_113] {strides = array<i32: 2, 1>} : memref<80x128xf32, #tpu.memory_space<vmem>>, vector<8x128xf32>
    %220 = arith.truncf %219 : vector<8x128xf32> to vector<8x128xbf16>
    %221 = tpu.concatenate %216, %218, %220 in 1 : vector<8x128xbf16>, vector<8x128xbf16>, vector<8x128xbf16> -> vector<8x384xbf16>
    %c1920 = arith.constant 1920 : index
    %c0_114 = arith.constant 0 : index
    %222 = vector.load %arg2[%c1920, %c0_114] : memref<6784x128xbf16, #tpu.memory_space<vmem>>, vector<384x128xbf16>
    %cst_115 = arith.constant dense<0.000000e+00> : vector<8x128xf32>
    %223 = tpu.matmul %221, %222, %cst_115 {dimension_numbers = #tpu.dot_dimension_numbers<[1], [0], [0], [1], [0, 0, 1, 1], [], []>} : vector<8x384xbf16>, vector<384x128xbf16>, vector<8x128xf32> -> vector<8x128xf32>
    %c7_116 = arith.constant 7 : index
    %c0_117 = arith.constant 0 : index
    %224 = vector.load %arg3[%c7_116, %c0_117] : memref<28x128xf32, #tpu.memory_space<vmem>>, vector<1x128xf32>
    %225 = vector.broadcast %224 : vector<1x128xf32> to vector<8x128xf32>
    %226 = arith.addf %223, %225 : vector<8x128xf32>
    %cst_118 = arith.constant 0.000000e+00 : f32
    %cst_119 = arith.constant 6.000000e+00 : f32
    %227 = vector.broadcast %cst_118 : f32 to vector<8x128xf32>
    %228 = arith.maximumf %227, %226 : vector<8x128xf32>
    %229 = vector.broadcast %cst_119 : f32 to vector<8x128xf32>
    %230 = arith.minimumf %229, %228 : vector<8x128xf32>
    %231 = arith.truncf %230 : vector<8x128xf32> to vector<8x128xbf16>
    %c2304 = arith.constant 2304 : index
    %c0_120 = arith.constant 0 : index
    %232 = vector.load %arg2[%c2304, %c0_120] : memref<6784x128xbf16, #tpu.memory_space<vmem>>, vector<128x128xbf16>
    %cst_121 = arith.constant dense<0.000000e+00> : vector<8x128xf32>
    %233 = tpu.matmul %231, %232, %cst_121 {dimension_numbers = #tpu.dot_dimension_numbers<[1], [0], [0], [1], [0, 0, 1, 1], [], []>} : vector<8x128xbf16>, vector<128x128xbf16>, vector<8x128xf32> -> vector<8x128xf32>
    %c8_122 = arith.constant 8 : index
    %c0_123 = arith.constant 0 : index
    %234 = vector.load %arg3[%c8_122, %c0_123] : memref<28x128xf32, #tpu.memory_space<vmem>>, vector<1x128xf32>
    %235 = vector.broadcast %234 : vector<1x128xf32> to vector<8x128xf32>
    %236 = arith.addf %233, %235 : vector<8x128xf32>
    %cst_124 = arith.constant 0.000000e+00 : f32
    %cst_125 = arith.constant 6.000000e+00 : f32
    %237 = vector.broadcast %cst_124 : f32 to vector<8x128xf32>
    %238 = arith.maximumf %237, %236 : vector<8x128xf32>
    %239 = vector.broadcast %cst_125 : f32 to vector<8x128xf32>
    %240 = arith.minimumf %239, %238 : vector<8x128xf32>
    %c8_126 = arith.constant 8 : index
    %c0_127 = arith.constant 0 : index
    %241 = vector.load %arg5[%c8_126, %c0_127] : memref<80x128xf32, #tpu.memory_space<vmem>>, vector<8x128xf32>
    tpu.vector_store %arg5[%c8_126, %c0_127], %240 {strides = array<i32>} : memref<80x128xf32, #tpu.memory_space<vmem>>, vector<8x128xf32>,
    %242 = tpu.iota {dimensions = array<i32: 0>} : vector<8x128xi32>
    %c4_i32_128 = arith.constant 4 : i32
    %c0_i32_129 = arith.constant 0 : i32
    %243 = arith.cmpi eq, %c4_i32_128, %c0_i32_129 : i32
    %c1_i32_130 = arith.constant 1 : i32
    %244 = arith.select %243, %c1_i32_130, %c4_i32_128 : i32
    %245 = vector.broadcast %244 : i32 to vector<8x128xi32>
    %246 = arith.remsi %242, %245 : vector<8x128xi32>
    %c0_i32_131 = arith.constant 0 : i32
    %247 = vector.broadcast %c0_i32_131 : i32 to vector<8x128xi32>
    %248 = arith.cmpi ne, %246, %247 : vector<8x128xi32>
    %c0_i32_132 = arith.constant 0 : i32
    %249 = vector.broadcast %c0_i32_132 : i32 to vector<8x128xi32>
    %250 = arith.cmpi slt, %246, %249 : vector<8x128xi32>
    %c0_i32_133 = arith.constant 0 : i32
    %251 = arith.cmpi slt, %244, %c0_i32_133 : i32
    %252 = vector.broadcast %251 : i1 to vector<8x128xi1>
    %253 = vector.broadcast %252 : vector<8x128xi1> to vector<8x128xi1>
    %254 = arith.xori %250, %253 : vector<8x128xi1>
    %255 = arith.andi %254, %248 : vector<8x128xi1>
    %256 = vector.broadcast %244 : i32 to vector<8x128xi32>
    %257 = arith.addi %246, %256 : vector<8x128xi32>
    %258 = arith.select %255, %257, %246 : vector<8x128xi1>, vector<8x128xi32>
    %c7_134 = arith.constant 7 : index
    %c0_135 = arith.constant 0 : index
    %259 = vector.load %arg5[%c7_134, %c0_135] : memref<80x128xf32, #tpu.memory_space<vmem>>, vector<8x128xf32>
    %c0_i32_136 = arith.constant 0 : i32
    %260 = vector.broadcast %c0_i32_136 : i32 to vector<8x128xi32>
    %261 = arith.cmpi eq, %258, %260 : vector<8x128xi32>
    %cst_137 = arith.constant 0.000000e+00 : f32
    %262 = vector.broadcast %cst_137 : f32 to vector<8x128xf32>
    %263 = arith.select %261, %262, %259 : vector<8x128xi1>, vector<8x128xf32>
    %264 = arith.truncf %263 : vector<8x128xf32> to vector<8x128xbf16>
    %c8_138 = arith.constant 8 : index
    %c0_139 = arith.constant 0 : index
    %265 = vector.load %arg5[%c8_138, %c0_139] : memref<80x128xf32, #tpu.memory_space<vmem>>, vector<8x128xf32>
    %266 = arith.truncf %265 : vector<8x128xf32> to vector<8x128xbf16>
    %c9_140 = arith.constant 9 : index
    %c0_141 = arith.constant 0 : index
    %267 = vector.load %arg5[%c9_140, %c0_141] : memref<80x128xf32, #tpu.memory_space<vmem>>, vector<8x128xf32>
    %c3_i32 = arith.constant 3 : i32
    %268 = vector.broadcast %c3_i32 : i32 to vector<8x128xi32>
    %269 = arith.cmpi eq, %258, %268 : vector<8x128xi32>
    %cst_142 = arith.constant 0.000000e+00 : f32
    %270 = vector.broadcast %cst_142 : f32 to vector<8x128xf32>
    %271 = arith.select %269, %270, %267 : vector<8x128xi1>, vector<8x128xf32>
    %272 = arith.truncf %271 : vector<8x128xf32> to vector<8x128xbf16>
    %273 = tpu.concatenate %264, %266, %272 in 1 : vector<8x128xbf16>, vector<8x128xbf16>, vector<8x128xbf16> -> vector<8x384xbf16>
    %c2432 = arith.constant 2432 : index
    %c0_143 = arith.constant 0 : index
    %274 = vector.load %arg2[%c2432, %c0_143] : memref<6784x128xbf16, #tpu.memory_space<vmem>>, vector<384x128xbf16>
    %cst_144 = arith.constant dense<0.000000e+00> : vector<8x128xf32>
    %275 = tpu.matmul %273, %274, %cst_144 {dimension_numbers = #tpu.dot_dimension_numbers<[1], [0], [0], [1], [0, 0, 1, 1], [], []>} : vector<8x384xbf16>, vector<384x128xbf16>, vector<8x128xf32> -> vector<8x128xf32>
    %c9_145 = arith.constant 9 : index
    %c0_146 = arith.constant 0 : index
    %276 = vector.load %arg3[%c9_145, %c0_146] : memref<28x128xf32, #tpu.memory_space<vmem>>, vector<1x128xf32>
    %277 = vector.broadcast %276 : vector<1x128xf32> to vector<8x128xf32>
    %278 = arith.addf %275, %277 : vector<8x128xf32>
    %cst_147 = arith.constant 0.000000e+00 : f32
    %cst_148 = arith.constant 6.000000e+00 : f32
    %279 = vector.broadcast %cst_147 : f32 to vector<8x128xf32>
    %280 = arith.maximumf %279, %278 : vector<8x128xf32>
    %281 = vector.broadcast %cst_148 : f32 to vector<8x128xf32>
    %282 = arith.minimumf %281, %280 : vector<8x128xf32>
    %283 = arith.truncf %282 : vector<8x128xf32> to vector<8x128xbf16>
    %c2816 = arith.constant 2816 : index
    %c0_149 = arith.constant 0 : index
    %284 = vector.load %arg2[%c2816, %c0_149] : memref<6784x128xbf16, #tpu.memory_space<vmem>>, vector<128x128xbf16>
    %cst_150 = arith.constant dense<0.000000e+00> : vector<8x128xf32>
    %285 = tpu.matmul %283, %284, %cst_150 {dimension_numbers = #tpu.dot_dimension_numbers<[1], [0], [0], [1], [0, 0, 1, 1], [], []>} : vector<8x128xbf16>, vector<128x128xbf16>, vector<8x128xf32> -> vector<8x128xf32>
    %c10 = arith.constant 10 : index
    %c0_151 = arith.constant 0 : index
    %286 = vector.load %arg3[%c10, %c0_151] : memref<28x128xf32, #tpu.memory_space<vmem>>, vector<1x128xf32>
    %287 = vector.broadcast %286 : vector<1x128xf32> to vector<8x128xf32>
    %288 = arith.addf %285, %287 : vector<8x128xf32>
    %cst_152 = arith.constant 0.000000e+00 : f32
    %cst_153 = arith.constant 6.000000e+00 : f32
    %289 = vector.broadcast %cst_152 : f32 to vector<8x128xf32>
    %290 = arith.maximumf %289, %288 : vector<8x128xf32>
    %291 = vector.broadcast %cst_153 : f32 to vector<8x128xf32>
    %292 = arith.minimumf %291, %290 : vector<8x128xf32>
    %c8_154 = arith.constant 8 : index
    %c0_155 = arith.constant 0 : index
    %293 = vector.load %arg5[%c8_154, %c0_155] : memref<80x128xf32, #tpu.memory_space<vmem>>, vector<8x128xf32>
    tpu.vector_store %arg5[%c8_154, %c0_155], %292 {strides = array<i32>} : memref<80x128xf32, #tpu.memory_space<vmem>>, vector<8x128xf32>,
    %294 = tpu.iota {dimensions = array<i32: 0>} : vector<4x128xi32>
    %c2_i32 = arith.constant 2 : i32
    %c0_i32_156 = arith.constant 0 : i32
    %295 = arith.cmpi eq, %c2_i32, %c0_i32_156 : i32
    %c1_i32_157 = arith.constant 1 : i32
    %296 = arith.select %295, %c1_i32_157, %c2_i32 : i32
    %297 = vector.broadcast %296 : i32 to vector<4x128xi32>
    %298 = arith.remsi %294, %297 : vector<4x128xi32>
    %c0_i32_158 = arith.constant 0 : i32
    %299 = vector.broadcast %c0_i32_158 : i32 to vector<4x128xi32>
    %300 = arith.cmpi ne, %298, %299 : vector<4x128xi32>
    %c0_i32_159 = arith.constant 0 : i32
    %301 = vector.broadcast %c0_i32_159 : i32 to vector<4x128xi32>
    %302 = arith.cmpi slt, %298, %301 : vector<4x128xi32>
    %c0_i32_160 = arith.constant 0 : i32
    %303 = arith.cmpi slt, %296, %c0_i32_160 : i32
    %304 = vector.broadcast %303 : i1 to vector<4x128xi1>
    %305 = vector.broadcast %304 : vector<4x128xi1> to vector<4x128xi1>
    %306 = arith.xori %302, %305 : vector<4x128xi1>
    %307 = arith.andi %306, %300 : vector<4x128xi1>
    %308 = vector.broadcast %296 : i32 to vector<4x128xi32>
    %309 = arith.addi %298, %308 : vector<4x128xi32>
    %310 = arith.select %307, %309, %298 : vector<4x128xi1>, vector<4x128xi32>
    %c7_161 = arith.constant 7 : index
    %c0_162 = arith.constant 0 : index
    %311 = tpu.strided_load %arg5[%c7_161, %c0_162] {strides = array<i32: 2, 1>} : memref<80x128xf32, #tpu.memory_space<vmem>>, vector<4x128xf32>
    %c0_i32_163 = arith.constant 0 : i32
    %312 = vector.broadcast %c0_i32_163 : i32 to vector<4x128xi32>
    %313 = arith.cmpi eq, %310, %312 : vector<4x128xi32>
    %cst_164 = arith.constant 0.000000e+00 : f32
    %314 = vector.broadcast %cst_164 : f32 to vector<4x128xf32>
    %315 = arith.select %313, %314, %311 : vector<4x128xi1>, vector<4x128xf32>
    %316 = arith.truncf %315 : vector<4x128xf32> to vector<4x128xbf16>
    %c8_165 = arith.constant 8 : index
    %c0_166 = arith.constant 0 : index
    %317 = tpu.strided_load %arg5[%c8_165, %c0_166] {strides = array<i32: 2, 1>} : memref<80x128xf32, #tpu.memory_space<vmem>>, vector<4x128xf32>
    %318 = arith.truncf %317 : vector<4x128xf32> to vector<4x128xbf16>
    %c9_167 = arith.constant 9 : index
    %c0_168 = arith.constant 0 : index
    %319 = tpu.strided_load %arg5[%c9_167, %c0_168] {strides = array<i32: 2, 1>} : memref<80x128xf32, #tpu.memory_space<vmem>>, vector<4x128xf32>
    %320 = arith.truncf %319 : vector<4x128xf32> to vector<4x128xbf16>
    %321 = tpu.concatenate %316, %318, %320 in 1 : vector<4x128xbf16>, vector<4x128xbf16>, vector<4x128xbf16> -> vector<4x384xbf16>
    %c2944 = arith.constant 2944 : index
    %c0_169 = arith.constant 0 : index
    %322 = vector.load %arg2[%c2944, %c0_169] : memref<6784x128xbf16, #tpu.memory_space<vmem>>, vector<384x128xbf16>
    %cst_170 = arith.constant dense<0.000000e+00> : vector<4x128xf32>
    %323 = tpu.matmul %321, %322, %cst_170 {dimension_numbers = #tpu.dot_dimension_numbers<[1], [0], [0], [1], [0, 0, 1, 1], [], []>} : vector<4x384xbf16>, vector<384x128xbf16>, vector<4x128xf32> -> vector<4x128xf32>
    %c11 = arith.constant 11 : index
    %c0_171 = arith.constant 0 : index
    %324 = vector.load %arg3[%c11, %c0_171] : memref<28x128xf32, #tpu.memory_space<vmem>>, vector<1x128xf32>
    %325 = vector.broadcast %324 : vector<1x128xf32> to vector<4x128xf32>
    %326 = arith.addf %323, %325 : vector<4x128xf32>
    %cst_172 = arith.constant 0.000000e+00 : f32
    %cst_173 = arith.constant 6.000000e+00 : f32
    %327 = vector.broadcast %cst_172 : f32 to vector<4x128xf32>
    %328 = arith.maximumf %327, %326 : vector<4x128xf32>
    %329 = vector.broadcast %cst_173 : f32 to vector<4x128xf32>
    %330 = arith.minimumf %329, %328 : vector<4x128xf32>
    %331 = arith.truncf %330 : vector<4x128xf32> to vector<4x128xbf16>
    %c3328 = arith.constant 3328 : index
    %c0_174 = arith.constant 0 : index
    %332 = vector.load %arg2[%c3328, %c0_174] : memref<6784x128xbf16, #tpu.memory_space<vmem>>, vector<128x128xbf16>
    %cst_175 = arith.constant dense<0.000000e+00> : vector<4x128xf32>
    %333 = tpu.matmul %331, %332, %cst_175 {dimension_numbers = #tpu.dot_dimension_numbers<[1], [0], [0], [1], [0, 0, 1, 1], [], []>} : vector<4x128xbf16>, vector<128x128xbf16>, vector<4x128xf32> -> vector<4x128xf32>
    %c12 = arith.constant 12 : index
    %c0_176 = arith.constant 0 : index
    %334 = vector.load %arg3[%c12, %c0_176] : memref<28x128xf32, #tpu.memory_space<vmem>>, vector<1x128xf32>
    %335 = vector.broadcast %334 : vector<1x128xf32> to vector<4x128xf32>
    %336 = arith.addf %333, %335 : vector<4x128xf32>
    %cst_177 = arith.constant 0.000000e+00 : f32
    %cst_178 = arith.constant 6.000000e+00 : f32
    %337 = vector.broadcast %cst_177 : f32 to vector<4x128xf32>
    %338 = arith.maximumf %337, %336 : vector<4x128xf32>
    %339 = vector.broadcast %cst_178 : f32 to vector<4x128xf32>
    %340 = arith.minimumf %339, %338 : vector<4x128xf32>
    %c8_179 = arith.constant 8 : index
    %c0_180 = arith.constant 0 : index
    %341 = vector.load %arg5[%c8_179, %c0_180] : memref<80x128xf32, #tpu.memory_space<vmem>>, vector<4x128xf32>
    tpu.vector_store %arg5[%c8_179, %c0_180], %340 {strides = array<i32>} : memref<80x128xf32, #tpu.memory_space<vmem>>, vector<4x128xf32>,
    %342 = tpu.iota {dimensions = array<i32: 0>} : vector<4x128xi32>
    %c2_i32_181 = arith.constant 2 : i32
    %c0_i32_182 = arith.constant 0 : i32
    %343 = arith.cmpi eq, %c2_i32_181, %c0_i32_182 : i32
    %c1_i32_183 = arith.constant 1 : i32
    %344 = arith.select %343, %c1_i32_183, %c2_i32_181 : i32
    %345 = vector.broadcast %344 : i32 to vector<4x128xi32>
    %346 = arith.remsi %342, %345 : vector<4x128xi32>
    %c0_i32_184 = arith.constant 0 : i32
    %347 = vector.broadcast %c0_i32_184 : i32 to vector<4x128xi32>
    %348 = arith.cmpi ne, %346, %347 : vector<4x128xi32>
    %c0_i32_185 = arith.constant 0 : i32
    %349 = vector.broadcast %c0_i32_185 : i32 to vector<4x128xi32>
    %350 = arith.cmpi slt, %346, %349 : vector<4x128xi32>
    %c0_i32_186 = arith.constant 0 : i32
    %351 = arith.cmpi slt, %344, %c0_i32_186 : i32
    %352 = vector.broadcast %351 : i1 to vector<4x128xi1>
    %353 = vector.broadcast %352 : vector<4x128xi1> to vector<4x128xi1>
    %354 = arith.xori %350, %353 : vector<4x128xi1>
    %355 = arith.andi %354, %348 : vector<4x128xi1>
    %356 = vector.broadcast %344 : i32 to vector<4x128xi32>
    %357 = arith.addi %346, %356 : vector<4x128xi32>
    %358 = arith.select %355, %357, %346 : vector<4x128xi1>, vector<4x128xi32>
    %c7_187 = arith.constant 7 : index
    %c0_188 = arith.constant 0 : index
    %359 = vector.load %arg5[%c7_187, %c0_188] : memref<80x128xf32, #tpu.memory_space<vmem>>, vector<4x128xf32>
    %c0_i32_189 = arith.constant 0 : i32
    %360 = vector.broadcast %c0_i32_189 : i32 to vector<4x128xi32>
    %361 = arith.cmpi eq, %358, %360 : vector<4x128xi32>
    %cst_190 = arith.constant 0.000000e+00 : f32
    %362 = vector.broadcast %cst_190 : f32 to vector<4x128xf32>
    %363 = arith.select %361, %362, %359 : vector<4x128xi1>, vector<4x128xf32>
    %364 = arith.truncf %363 : vector<4x128xf32> to vector<4x128xbf16>
    %c8_191 = arith.constant 8 : index
    %c0_192 = arith.constant 0 : index
    %365 = vector.load %arg5[%c8_191, %c0_192] : memref<80x128xf32, #tpu.memory_space<vmem>>, vector<4x128xf32>
    %366 = arith.truncf %365 : vector<4x128xf32> to vector<4x128xbf16>
    %c9_193 = arith.constant 9 : index
    %c0_194 = arith.constant 0 : index
    %367 = vector.load %arg5[%c9_193, %c0_194] : memref<80x128xf32, #tpu.memory_space<vmem>>, vector<4x128xf32>
    %c1_i32_195 = arith.constant 1 : i32
    %368 = vector.broadcast %c1_i32_195 : i32 to vector<4x128xi32>
    %369 = arith.cmpi eq, %358, %368 : vector<4x128xi32>
    %cst_196 = arith.constant 0.000000e+00 : f32
    %370 = vector.broadcast %cst_196 : f32 to vector<4x128xf32>
    %371 = arith.select %369, %370, %367 : vector<4x128xi1>, vector<4x128xf32>
    %372 = arith.truncf %371 : vector<4x128xf32> to vector<4x128xbf16>
    %373 = tpu.concatenate %364, %366, %372 in 1 : vector<4x128xbf16>, vector<4x128xbf16>, vector<4x128xbf16> -> vector<4x384xbf16>
    %c3456 = arith.constant 3456 : index
    %c0_197 = arith.constant 0 : index
    %374 = vector.load %arg2[%c3456, %c0_197] : memref<6784x128xbf16, #tpu.memory_space<vmem>>, vector<384x128xbf16>
    %cst_198 = arith.constant dense<0.000000e+00> : vector<4x128xf32>
    %375 = tpu.matmul %373, %374, %cst_198 {dimension_numbers = #tpu.dot_dimension_numbers<[1], [0], [0], [1], [0, 0, 1, 1], [], []>} : vector<4x384xbf16>, vector<384x128xbf16>, vector<4x128xf32> -> vector<4x128xf32>
    %c13 = arith.constant 13 : index
    %c0_199 = arith.constant 0 : index
    %376 = vector.load %arg3[%c13, %c0_199] : memref<28x128xf32, #tpu.memory_space<vmem>>, vector<1x128xf32>
    %377 = vector.broadcast %376 : vector<1x128xf32> to vector<4x128xf32>
    %378 = arith.addf %375, %377 : vector<4x128xf32>
    %cst_200 = arith.constant 0.000000e+00 : f32
    %cst_201 = arith.constant 6.000000e+00 : f32
    %379 = vector.broadcast %cst_200 : f32 to vector<4x128xf32>
    %380 = arith.maximumf %379, %378 : vector<4x128xf32>
    %381 = vector.broadcast %cst_201 : f32 to vector<4x128xf32>
    %382 = arith.minimumf %381, %380 : vector<4x128xf32>
    %383 = arith.truncf %382 : vector<4x128xf32> to vector<4x128xbf16>
    %c3840 = arith.constant 3840 : index
    %c0_202 = arith.constant 0 : index
    %384 = vector.load %arg2[%c3840, %c0_202] : memref<6784x128xbf16, #tpu.memory_space<vmem>>, vector<128x128xbf16>
    %cst_203 = arith.constant dense<0.000000e+00> : vector<4x128xf32>
    %385 = tpu.matmul %383, %384, %cst_203 {dimension_numbers = #tpu.dot_dimension_numbers<[1], [0], [0], [1], [0, 0, 1, 1], [], []>} : vector<4x128xbf16>, vector<128x128xbf16>, vector<4x128xf32> -> vector<4x128xf32>
    %c14 = arith.constant 14 : index
    %c0_204 = arith.constant 0 : index
    %386 = vector.load %arg3[%c14, %c0_204] : memref<28x128xf32, #tpu.memory_space<vmem>>, vector<1x128xf32>
    %387 = vector.broadcast %386 : vector<1x128xf32> to vector<4x128xf32>
    %388 = arith.addf %385, %387 : vector<4x128xf32>
    %cst_205 = arith.constant 0.000000e+00 : f32
    %cst_206 = arith.constant 6.000000e+00 : f32
    %389 = vector.broadcast %cst_205 : f32 to vector<4x128xf32>
    %390 = arith.maximumf %389, %388 : vector<4x128xf32>
    %391 = vector.broadcast %cst_206 : f32 to vector<4x128xf32>
    %392 = arith.minimumf %391, %390 : vector<4x128xf32>
    %c8_207 = arith.constant 8 : index
    %c0_208 = arith.constant 0 : index
    %393 = vector.load %arg5[%c8_207, %c0_208] : memref<80x128xf32, #tpu.memory_space<vmem>>, vector<4x128xf32>
    tpu.vector_store %arg5[%c8_207, %c0_208], %392 {strides = array<i32>} : memref<80x128xf32, #tpu.memory_space<vmem>>, vector<4x128xf32>,
    %394 = tpu.iota {dimensions = array<i32: 0>} : vector<4x128xi32>
    %c2_i32_209 = arith.constant 2 : i32
    %c0_i32_210 = arith.constant 0 : i32
    %395 = arith.cmpi eq, %c2_i32_209, %c0_i32_210 : i32
    %c1_i32_211 = arith.constant 1 : i32
    %396 = arith.select %395, %c1_i32_211, %c2_i32_209 : i32
    %397 = vector.broadcast %396 : i32 to vector<4x128xi32>
    %398 = arith.remsi %394, %397 : vector<4x128xi32>
    %c0_i32_212 = arith.constant 0 : i32
    %399 = vector.broadcast %c0_i32_212 : i32 to vector<4x128xi32>
    %400 = arith.cmpi ne, %398, %399 : vector<4x128xi32>
    %c0_i32_213 = arith.constant 0 : i32
    %401 = vector.broadcast %c0_i32_213 : i32 to vector<4x128xi32>
    %402 = arith.cmpi slt, %398, %401 : vector<4x128xi32>
    %c0_i32_214 = arith.constant 0 : i32
    %403 = arith.cmpi slt, %396, %c0_i32_214 : i32
    %404 = vector.broadcast %403 : i1 to vector<4x128xi1>
    %405 = vector.broadcast %404 : vector<4x128xi1> to vector<4x128xi1>
    %406 = arith.xori %402, %405 : vector<4x128xi1>
    %407 = arith.andi %406, %400 : vector<4x128xi1>
    %408 = vector.broadcast %396 : i32 to vector<4x128xi32>
    %409 = arith.addi %398, %408 : vector<4x128xi32>
    %410 = arith.select %407, %409, %398 : vector<4x128xi1>, vector<4x128xi32>
    %c7_215 = arith.constant 7 : index
    %c0_216 = arith.constant 0 : index
    %411 = vector.load %arg5[%c7_215, %c0_216] : memref<80x128xf32, #tpu.memory_space<vmem>>, vector<4x128xf32>
    %c0_i32_217 = arith.constant 0 : i32
    %412 = vector.broadcast %c0_i32_217 : i32 to vector<4x128xi32>
    %413 = arith.cmpi eq, %410, %412 : vector<4x128xi32>
    %cst_218 = arith.constant 0.000000e+00 : f32
    %414 = vector.broadcast %cst_218 : f32 to vector<4x128xf32>
    %415 = arith.select %413, %414, %411 : vector<4x128xi1>, vector<4x128xf32>
    %416 = arith.truncf %415 : vector<4x128xf32> to vector<4x128xbf16>
    %c8_219 = arith.constant 8 : index
    %c0_220 = arith.constant 0 : index
    %417 = vector.load %arg5[%c8_219, %c0_220] : memref<80x128xf32, #tpu.memory_space<vmem>>, vector<4x128xf32>
    %418 = arith.truncf %417 : vector<4x128xf32> to vector<4x128xbf16>
    %c9_221 = arith.constant 9 : index
    %c0_222 = arith.constant 0 : index
    %419 = vector.load %arg5[%c9_221, %c0_222] : memref<80x128xf32, #tpu.memory_space<vmem>>, vector<4x128xf32>
    %c1_i32_223 = arith.constant 1 : i32
    %420 = vector.broadcast %c1_i32_223 : i32 to vector<4x128xi32>
    %421 = arith.cmpi eq, %410, %420 : vector<4x128xi32>
    %cst_224 = arith.constant 0.000000e+00 : f32
    %422 = vector.broadcast %cst_224 : f32 to vector<4x128xf32>
    %423 = arith.select %421, %422, %419 : vector<4x128xi1>, vector<4x128xf32>
    %424 = arith.truncf %423 : vector<4x128xf32> to vector<4x128xbf16>
    %425 = tpu.concatenate %416, %418, %424 in 1 : vector<4x128xbf16>, vector<4x128xbf16>, vector<4x128xbf16> -> vector<4x384xbf16>
    %c3968 = arith.constant 3968 : index
    %c0_225 = arith.constant 0 : index
    %426 = vector.load %arg2[%c3968, %c0_225] : memref<6784x128xbf16, #tpu.memory_space<vmem>>, vector<384x128xbf16>
    %cst_226 = arith.constant dense<0.000000e+00> : vector<4x128xf32>
    %427 = tpu.matmul %425, %426, %cst_226 {dimension_numbers = #tpu.dot_dimension_numbers<[1], [0], [0], [1], [0, 0, 1, 1], [], []>} : vector<4x384xbf16>, vector<384x128xbf16>, vector<4x128xf32> -> vector<4x128xf32>
    %c15 = arith.constant 15 : index
    %c0_227 = arith.constant 0 : index
    %428 = vector.load %arg3[%c15, %c0_227] : memref<28x128xf32, #tpu.memory_space<vmem>>, vector<1x128xf32>
    %429 = vector.broadcast %428 : vector<1x128xf32> to vector<4x128xf32>
    %430 = arith.addf %427, %429 : vector<4x128xf32>
    %cst_228 = arith.constant 0.000000e+00 : f32
    %cst_229 = arith.constant 6.000000e+00 : f32
    %431 = vector.broadcast %cst_228 : f32 to vector<4x128xf32>
    %432 = arith.maximumf %431, %430 : vector<4x128xf32>
    %433 = vector.broadcast %cst_229 : f32 to vector<4x128xf32>
    %434 = arith.minimumf %433, %432 : vector<4x128xf32>
    %435 = arith.truncf %434 : vector<4x128xf32> to vector<4x128xbf16>
    %c4352 = arith.constant 4352 : index
    %c0_230 = arith.constant 0 : index
    %436 = vector.load %arg2[%c4352, %c0_230] : memref<6784x128xbf16, #tpu.memory_space<vmem>>, vector<128x128xbf16>
    %cst_231 = arith.constant dense<0.000000e+00> : vector<4x128xf32>
    %437 = tpu.matmul %435, %436, %cst_231 {dimension_numbers = #tpu.dot_dimension_numbers<[1], [0], [0], [1], [0, 0, 1, 1], [], []>} : vector<4x128xbf16>, vector<128x128xbf16>, vector<4x128xf32> -> vector<4x128xf32>
    %c16 = arith.constant 16 : index
    %c0_232 = arith.constant 0 : index
    %438 = vector.load %arg3[%c16, %c0_232] : memref<28x128xf32, #tpu.memory_space<vmem>>, vector<1x128xf32>
    %439 = vector.broadcast %438 : vector<1x128xf32> to vector<4x128xf32>
    %440 = arith.addf %437, %439 : vector<4x128xf32>
    %cst_233 = arith.constant 0.000000e+00 : f32
    %cst_234 = arith.constant 6.000000e+00 : f32
    %441 = vector.broadcast %cst_233 : f32 to vector<4x128xf32>
    %442 = arith.maximumf %441, %440 : vector<4x128xf32>
    %443 = vector.broadcast %cst_234 : f32 to vector<4x128xf32>
    %444 = arith.minimumf %443, %442 : vector<4x128xf32>
    %c8_235 = arith.constant 8 : index
    %c0_236 = arith.constant 0 : index
    %445 = vector.load %arg5[%c8_235, %c0_236] : memref<80x128xf32, #tpu.memory_space<vmem>>, vector<4x128xf32>
    tpu.vector_store %arg5[%c8_235, %c0_236], %444 {strides = array<i32>} : memref<80x128xf32, #tpu.memory_space<vmem>>, vector<4x128xf32>,
    %446 = tpu.iota {dimensions = array<i32: 0>} : vector<4x128xi32>
    %c2_i32_237 = arith.constant 2 : i32
    %c0_i32_238 = arith.constant 0 : i32
    %447 = arith.cmpi eq, %c2_i32_237, %c0_i32_238 : i32
    %c1_i32_239 = arith.constant 1 : i32
    %448 = arith.select %447, %c1_i32_239, %c2_i32_237 : i32
    %449 = vector.broadcast %448 : i32 to vector<4x128xi32>
    %450 = arith.remsi %446, %449 : vector<4x128xi32>
    %c0_i32_240 = arith.constant 0 : i32
    %451 = vector.broadcast %c0_i32_240 : i32 to vector<4x128xi32>
    %452 = arith.cmpi ne, %450, %451 : vector<4x128xi32>
    %c0_i32_241 = arith.constant 0 : i32
    %453 = vector.broadcast %c0_i32_241 : i32 to vector<4x128xi32>
    %454 = arith.cmpi slt, %450, %453 : vector<4x128xi32>
    %c0_i32_242 = arith.constant 0 : i32
    %455 = arith.cmpi slt, %448, %c0_i32_242 : i32
    %456 = vector.broadcast %455 : i1 to vector<4x128xi1>
    %457 = vector.broadcast %456 : vector<4x128xi1> to vector<4x128xi1>
    %458 = arith.xori %454, %457 : vector<4x128xi1>
    %459 = arith.andi %458, %452 : vector<4x128xi1>
    %460 = vector.broadcast %448 : i32 to vector<4x128xi32>
    %461 = arith.addi %450, %460 : vector<4x128xi32>
    %462 = arith.select %459, %461, %450 : vector<4x128xi1>, vector<4x128xi32>
    %c7_243 = arith.constant 7 : index
    %c0_244 = arith.constant 0 : index
    %463 = vector.load %arg5[%c7_243, %c0_244] : memref<80x128xf32, #tpu.memory_space<vmem>>, vector<4x128xf32>
    %c0_i32_245 = arith.constant 0 : i32
    %464 = vector.broadcast %c0_i32_245 : i32 to vector<4x128xi32>
    %465 = arith.cmpi eq, %462, %464 : vector<4x128xi32>
    %cst_246 = arith.constant 0.000000e+00 : f32
    %466 = vector.broadcast %cst_246 : f32 to vector<4x128xf32>
    %467 = arith.select %465, %466, %463 : vector<4x128xi1>, vector<4x128xf32>
    %468 = arith.truncf %467 : vector<4x128xf32> to vector<4x128xbf16>
    %c8_247 = arith.constant 8 : index
    %c0_248 = arith.constant 0 : index
    %469 = vector.load %arg5[%c8_247, %c0_248] : memref<80x128xf32, #tpu.memory_space<vmem>>, vector<4x128xf32>
    %470 = arith.truncf %469 : vector<4x128xf32> to vector<4x128xbf16>
    %c9_249 = arith.constant 9 : index
    %c0_250 = arith.constant 0 : index
    %471 = vector.load %arg5[%c9_249, %c0_250] : memref<80x128xf32, #tpu.memory_space<vmem>>, vector<4x128xf32>
    %c1_i32_251 = arith.constant 1 : i32
    %472 = vector.broadcast %c1_i32_251 : i32 to vector<4x128xi32>
    %473 = arith.cmpi eq, %462, %472 : vector<4x128xi32>
    %cst_252 = arith.constant 0.000000e+00 : f32
    %474 = vector.broadcast %cst_252 : f32 to vector<4x128xf32>
    %475 = arith.select %473, %474, %471 : vector<4x128xi1>, vector<4x128xf32>
    %476 = arith.truncf %475 : vector<4x128xf32> to vector<4x128xbf16>
    %477 = tpu.concatenate %468, %470, %476 in 1 : vector<4x128xbf16>, vector<4x128xbf16>, vector<4x128xbf16> -> vector<4x384xbf16>
    %c4480 = arith.constant 4480 : index
    %c0_253 = arith.constant 0 : index
    %478 = vector.load %arg2[%c4480, %c0_253] : memref<6784x128xbf16, #tpu.memory_space<vmem>>, vector<384x128xbf16>
    %cst_254 = arith.constant dense<0.000000e+00> : vector<4x128xf32>
    %479 = tpu.matmul %477, %478, %cst_254 {dimension_numbers = #tpu.dot_dimension_numbers<[1], [0], [0], [1], [0, 0, 1, 1], [], []>} : vector<4x384xbf16>, vector<384x128xbf16>, vector<4x128xf32> -> vector<4x128xf32>
    %c17 = arith.constant 17 : index
    %c0_255 = arith.constant 0 : index
    %480 = vector.load %arg3[%c17, %c0_255] : memref<28x128xf32, #tpu.memory_space<vmem>>, vector<1x128xf32>
    %481 = vector.broadcast %480 : vector<1x128xf32> to vector<4x128xf32>
    %482 = arith.addf %479, %481 : vector<4x128xf32>
    %cst_256 = arith.constant 0.000000e+00 : f32
    %cst_257 = arith.constant 6.000000e+00 : f32
    %483 = vector.broadcast %cst_256 : f32 to vector<4x128xf32>
    %484 = arith.maximumf %483, %482 : vector<4x128xf32>
    %485 = vector.broadcast %cst_257 : f32 to vector<4x128xf32>
    %486 = arith.minimumf %485, %484 : vector<4x128xf32>
    %487 = arith.truncf %486 : vector<4x128xf32> to vector<4x128xbf16>
    %c4864 = arith.constant 4864 : index
    %c0_258 = arith.constant 0 : index
    %488 = vector.load %arg2[%c4864, %c0_258] : memref<6784x128xbf16, #tpu.memory_space<vmem>>, vector<128x128xbf16>
    %cst_259 = arith.constant dense<0.000000e+00> : vector<4x128xf32>
    %489 = tpu.matmul %487, %488, %cst_259 {dimension_numbers = #tpu.dot_dimension_numbers<[1], [0], [0], [1], [0, 0, 1, 1], [], []>} : vector<4x128xbf16>, vector<128x128xbf16>, vector<4x128xf32> -> vector<4x128xf32>
    %c18 = arith.constant 18 : index
    %c0_260 = arith.constant 0 : index
    %490 = vector.load %arg3[%c18, %c0_260] : memref<28x128xf32, #tpu.memory_space<vmem>>, vector<1x128xf32>
    %491 = vector.broadcast %490 : vector<1x128xf32> to vector<4x128xf32>
    %492 = arith.addf %489, %491 : vector<4x128xf32>
    %cst_261 = arith.constant 0.000000e+00 : f32
    %cst_262 = arith.constant 6.000000e+00 : f32
    %493 = vector.broadcast %cst_261 : f32 to vector<4x128xf32>
    %494 = arith.maximumf %493, %492 : vector<4x128xf32>
    %495 = vector.broadcast %cst_262 : f32 to vector<4x128xf32>
    %496 = arith.minimumf %495, %494 : vector<4x128xf32>
    %c8_263 = arith.constant 8 : index
    %c0_264 = arith.constant 0 : index
    %497 = vector.load %arg5[%c8_263, %c0_264] : memref<80x128xf32, #tpu.memory_space<vmem>>, vector<4x128xf32>
    tpu.vector_store %arg5[%c8_263, %c0_264], %496 {strides = array<i32>} : memref<80x128xf32, #tpu.memory_space<vmem>>, vector<4x128xf32>,
    %498 = tpu.iota {dimensions = array<i32: 0>} : vector<4x128xi32>
    %c2_i32_265 = arith.constant 2 : i32
    %c0_i32_266 = arith.constant 0 : i32
    %499 = arith.cmpi eq, %c2_i32_265, %c0_i32_266 : i32
    %c1_i32_267 = arith.constant 1 : i32
    %500 = arith.select %499, %c1_i32_267, %c2_i32_265 : i32
    %501 = vector.broadcast %500 : i32 to vector<4x128xi32>
    %502 = arith.remsi %498, %501 : vector<4x128xi32>
    %c0_i32_268 = arith.constant 0 : i32
    %503 = vector.broadcast %c0_i32_268 : i32 to vector<4x128xi32>
    %504 = arith.cmpi ne, %502, %503 : vector<4x128xi32>
    %c0_i32_269 = arith.constant 0 : i32
    %505 = vector.broadcast %c0_i32_269 : i32 to vector<4x128xi32>
    %506 = arith.cmpi slt, %502, %505 : vector<4x128xi32>
    %c0_i32_270 = arith.constant 0 : i32
    %507 = arith.cmpi slt, %500, %c0_i32_270 : i32
    %508 = vector.broadcast %507 : i1 to vector<4x128xi1>
    %509 = vector.broadcast %508 : vector<4x128xi1> to vector<4x128xi1>
    %510 = arith.xori %506, %509 : vector<4x128xi1>
    %511 = arith.andi %510, %504 : vector<4x128xi1>
    %512 = vector.broadcast %500 : i32 to vector<4x128xi32>
    %513 = arith.addi %502, %512 : vector<4x128xi32>
    %514 = arith.select %511, %513, %502 : vector<4x128xi1>, vector<4x128xi32>
    %c7_271 = arith.constant 7 : index
    %c0_272 = arith.constant 0 : index
    %515 = vector.load %arg5[%c7_271, %c0_272] : memref<80x128xf32, #tpu.memory_space<vmem>>, vector<4x128xf32>
    %c0_i32_273 = arith.constant 0 : i32
    %516 = vector.broadcast %c0_i32_273 : i32 to vector<4x128xi32>
    %517 = arith.cmpi eq, %514, %516 : vector<4x128xi32>
    %cst_274 = arith.constant 0.000000e+00 : f32
    %518 = vector.broadcast %cst_274 : f32 to vector<4x128xf32>
    %519 = arith.select %517, %518, %515 : vector<4x128xi1>, vector<4x128xf32>
    %520 = arith.truncf %519 : vector<4x128xf32> to vector<4x128xbf16>
    %c8_275 = arith.constant 8 : index
    %c0_276 = arith.constant 0 : index
    %521 = vector.load %arg5[%c8_275, %c0_276] : memref<80x128xf32, #tpu.memory_space<vmem>>, vector<4x128xf32>
    %522 = arith.truncf %521 : vector<4x128xf32> to vector<4x128xbf16>
    %c9_277 = arith.constant 9 : index
    %c0_278 = arith.constant 0 : index
    %523 = vector.load %arg5[%c9_277, %c0_278] : memref<80x128xf32, #tpu.memory_space<vmem>>, vector<4x128xf32>
    %c1_i32_279 = arith.constant 1 : i32
    %524 = vector.broadcast %c1_i32_279 : i32 to vector<4x128xi32>
    %525 = arith.cmpi eq, %514, %524 : vector<4x128xi32>
    %cst_280 = arith.constant 0.000000e+00 : f32
    %526 = vector.broadcast %cst_280 : f32 to vector<4x128xf32>
    %527 = arith.select %525, %526, %523 : vector<4x128xi1>, vector<4x128xf32>
    %528 = arith.truncf %527 : vector<4x128xf32> to vector<4x128xbf16>
    %529 = tpu.concatenate %520, %522, %528 in 1 : vector<4x128xbf16>, vector<4x128xbf16>, vector<4x128xbf16> -> vector<4x384xbf16>
    %c4992 = arith.constant 4992 : index
    %c0_281 = arith.constant 0 : index
    %530 = vector.load %arg2[%c4992, %c0_281] : memref<6784x128xbf16, #tpu.memory_space<vmem>>, vector<384x128xbf16>
    %cst_282 = arith.constant dense<0.000000e+00> : vector<4x128xf32>
    %531 = tpu.matmul %529, %530, %cst_282 {dimension_numbers = #tpu.dot_dimension_numbers<[1], [0], [0], [1], [0, 0, 1, 1], [], []>} : vector<4x384xbf16>, vector<384x128xbf16>, vector<4x128xf32> -> vector<4x128xf32>
    %c19 = arith.constant 19 : index
    %c0_283 = arith.constant 0 : index
    %532 = vector.load %arg3[%c19, %c0_283] : memref<28x128xf32, #tpu.memory_space<vmem>>, vector<1x128xf32>
    %533 = vector.broadcast %532 : vector<1x128xf32> to vector<4x128xf32>
    %534 = arith.addf %531, %533 : vector<4x128xf32>
    %cst_284 = arith.constant 0.000000e+00 : f32
    %cst_285 = arith.constant 6.000000e+00 : f32
    %535 = vector.broadcast %cst_284 : f32 to vector<4x128xf32>
    %536 = arith.maximumf %535, %534 : vector<4x128xf32>
    %537 = vector.broadcast %cst_285 : f32 to vector<4x128xf32>
    %538 = arith.minimumf %537, %536 : vector<4x128xf32>
    %539 = arith.truncf %538 : vector<4x128xf32> to vector<4x128xbf16>
    %c5376 = arith.constant 5376 : index
    %c0_286 = arith.constant 0 : index
    %540 = vector.load %arg2[%c5376, %c0_286] : memref<6784x128xbf16, #tpu.memory_space<vmem>>, vector<128x128xbf16>
    %cst_287 = arith.constant dense<0.000000e+00> : vector<4x128xf32>
    %541 = tpu.matmul %539, %540, %cst_287 {dimension_numbers = #tpu.dot_dimension_numbers<[1], [0], [0], [1], [0, 0, 1, 1], [], []>} : vector<4x128xbf16>, vector<128x128xbf16>, vector<4x128xf32> -> vector<4x128xf32>
    %c20 = arith.constant 20 : index
    %c0_288 = arith.constant 0 : index
    %542 = vector.load %arg3[%c20, %c0_288] : memref<28x128xf32, #tpu.memory_space<vmem>>, vector<1x128xf32>
    %543 = vector.broadcast %542 : vector<1x128xf32> to vector<4x128xf32>
    %544 = arith.addf %541, %543 : vector<4x128xf32>
    %cst_289 = arith.constant 0.000000e+00 : f32
    %cst_290 = arith.constant 6.000000e+00 : f32
    %545 = vector.broadcast %cst_289 : f32 to vector<4x128xf32>
    %546 = arith.maximumf %545, %544 : vector<4x128xf32>
    %547 = vector.broadcast %cst_290 : f32 to vector<4x128xf32>
    %548 = arith.minimumf %547, %546 : vector<4x128xf32>
    %c8_291 = arith.constant 8 : index
    %c0_292 = arith.constant 0 : index
    %549 = vector.load %arg5[%c8_291, %c0_292] : memref<80x128xf32, #tpu.memory_space<vmem>>, vector<4x128xf32>
    tpu.vector_store %arg5[%c8_291, %c0_292], %548 {strides = array<i32>} : memref<80x128xf32, #tpu.memory_space<vmem>>, vector<4x128xf32>,
    %550 = tpu.iota {dimensions = array<i32: 0>} : vector<4x128xi32>
    %c2_i32_293 = arith.constant 2 : i32
    %c0_i32_294 = arith.constant 0 : i32
    %551 = arith.cmpi eq, %c2_i32_293, %c0_i32_294 : i32
    %c1_i32_295 = arith.constant 1 : i32
    %552 = arith.select %551, %c1_i32_295, %c2_i32_293 : i32
    %553 = vector.broadcast %552 : i32 to vector<4x128xi32>
    %554 = arith.remsi %550, %553 : vector<4x128xi32>
    %c0_i32_296 = arith.constant 0 : i32
    %555 = vector.broadcast %c0_i32_296 : i32 to vector<4x128xi32>
    %556 = arith.cmpi ne, %554, %555 : vector<4x128xi32>
    %c0_i32_297 = arith.constant 0 : i32
    %557 = vector.broadcast %c0_i32_297 : i32 to vector<4x128xi32>
    %558 = arith.cmpi slt, %554, %557 : vector<4x128xi32>
    %c0_i32_298 = arith.constant 0 : i32
    %559 = arith.cmpi slt, %552, %c0_i32_298 : i32
    %560 = vector.broadcast %559 : i1 to vector<4x128xi1>
    %561 = vector.broadcast %560 : vector<4x128xi1> to vector<4x128xi1>
    %562 = arith.xori %558, %561 : vector<4x128xi1>
    %563 = arith.andi %562, %556 : vector<4x128xi1>
    %564 = vector.broadcast %552 : i32 to vector<4x128xi32>
    %565 = arith.addi %554, %564 : vector<4x128xi32>
    %566 = arith.select %563, %565, %554 : vector<4x128xi1>, vector<4x128xi32>
    %c7_299 = arith.constant 7 : index
    %c0_300 = arith.constant 0 : index
    %567 = vector.load %arg5[%c7_299, %c0_300] : memref<80x128xf32, #tpu.memory_space<vmem>>, vector<4x128xf32>
    %c0_i32_301 = arith.constant 0 : i32
    %568 = vector.broadcast %c0_i32_301 : i32 to vector<4x128xi32>
    %569 = arith.cmpi eq, %566, %568 : vector<4x128xi32>
    %cst_302 = arith.constant 0.000000e+00 : f32
    %570 = vector.broadcast %cst_302 : f32 to vector<4x128xf32>
    %571 = arith.select %569, %570, %567 : vector<4x128xi1>, vector<4x128xf32>
    %572 = arith.truncf %571 : vector<4x128xf32> to vector<4x128xbf16>
    %c8_303 = arith.constant 8 : index
    %c0_304 = arith.constant 0 : index
    %573 = vector.load %arg5[%c8_303, %c0_304] : memref<80x128xf32, #tpu.memory_space<vmem>>, vector<4x128xf32>
    %574 = arith.truncf %573 : vector<4x128xf32> to vector<4x128xbf16>
    %c9_305 = arith.constant 9 : index
    %c0_306 = arith.constant 0 : index
    %575 = vector.load %arg5[%c9_305, %c0_306] : memref<80x128xf32, #tpu.memory_space<vmem>>, vector<4x128xf32>
    %c1_i32_307 = arith.constant 1 : i32
    %576 = vector.broadcast %c1_i32_307 : i32 to vector<4x128xi32>
    %577 = arith.cmpi eq, %566, %576 : vector<4x128xi32>
    %cst_308 = arith.constant 0.000000e+00 : f32
    %578 = vector.broadcast %cst_308 : f32 to vector<4x128xf32>
    %579 = arith.select %577, %578, %575 : vector<4x128xi1>, vector<4x128xf32>
    %580 = arith.truncf %579 : vector<4x128xf32> to vector<4x128xbf16>
    %581 = tpu.concatenate %572, %574, %580 in 1 : vector<4x128xbf16>, vector<4x128xbf16>, vector<4x128xbf16> -> vector<4x384xbf16>
    %c5504 = arith.constant 5504 : index
    %c0_309 = arith.constant 0 : index
    %582 = vector.load %arg2[%c5504, %c0_309] : memref<6784x128xbf16, #tpu.memory_space<vmem>>, vector<384x128xbf16>
    %cst_310 = arith.constant dense<0.000000e+00> : vector<4x128xf32>
    %583 = tpu.matmul %581, %582, %cst_310 {dimension_numbers = #tpu.dot_dimension_numbers<[1], [0], [0], [1], [0, 0, 1, 1], [], []>} : vector<4x384xbf16>, vector<384x128xbf16>, vector<4x128xf32> -> vector<4x128xf32>
    %c21 = arith.constant 21 : index
    %c0_311 = arith.constant 0 : index
    %584 = vector.load %arg3[%c21, %c0_311] : memref<28x128xf32, #tpu.memory_space<vmem>>, vector<1x128xf32>
    %585 = vector.broadcast %584 : vector<1x128xf32> to vector<4x128xf32>
    %586 = arith.addf %583, %585 : vector<4x128xf32>
    %cst_312 = arith.constant 0.000000e+00 : f32
    %cst_313 = arith.constant 6.000000e+00 : f32
    %587 = vector.broadcast %cst_312 : f32 to vector<4x128xf32>
    %588 = arith.maximumf %587, %586 : vector<4x128xf32>
    %589 = vector.broadcast %cst_313 : f32 to vector<4x128xf32>
    %590 = arith.minimumf %589, %588 : vector<4x128xf32>
    %591 = arith.truncf %590 : vector<4x128xf32> to vector<4x128xbf16>
    %c5888 = arith.constant 5888 : index
    %c0_314 = arith.constant 0 : index
    %592 = vector.load %arg2[%c5888, %c0_314] : memref<6784x128xbf16, #tpu.memory_space<vmem>>, vector<128x128xbf16>
    %cst_315 = arith.constant dense<0.000000e+00> : vector<4x128xf32>
    %593 = tpu.matmul %591, %592, %cst_315 {dimension_numbers = #tpu.dot_dimension_numbers<[1], [0], [0], [1], [0, 0, 1, 1], [], []>} : vector<4x128xbf16>, vector<128x128xbf16>, vector<4x128xf32> -> vector<4x128xf32>
    %c22 = arith.constant 22 : index
    %c0_316 = arith.constant 0 : index
    %594 = vector.load %arg3[%c22, %c0_316] : memref<28x128xf32, #tpu.memory_space<vmem>>, vector<1x128xf32>
    %595 = vector.broadcast %594 : vector<1x128xf32> to vector<4x128xf32>
    %596 = arith.addf %593, %595 : vector<4x128xf32>
    %cst_317 = arith.constant 0.000000e+00 : f32
    %cst_318 = arith.constant 6.000000e+00 : f32
    %597 = vector.broadcast %cst_317 : f32 to vector<4x128xf32>
    %598 = arith.maximumf %597, %596 : vector<4x128xf32>
    %599 = vector.broadcast %cst_318 : f32 to vector<4x128xf32>
    %600 = arith.minimumf %599, %598 : vector<4x128xf32>
    %c8_319 = arith.constant 8 : index
    %c0_320 = arith.constant 0 : index
    %601 = vector.load %arg5[%c8_319, %c0_320] : memref<80x128xf32, #tpu.memory_space<vmem>>, vector<4x128xf32>
    tpu.vector_store %arg5[%c8_319, %c0_320], %600 {strides = array<i32>} : memref<80x128xf32, #tpu.memory_space<vmem>>, vector<4x128xf32>,
    %c8_321 = arith.constant 8 : index
    %c0_322 = arith.constant 0 : index
    %602 = tpu.strided_load %arg5[%c8_321, %c0_322] {strides = array<i32: 2, 1>} : memref<80x128xf32, #tpu.memory_space<vmem>>, vector<2x128xf32>
    %603 = arith.truncf %602 : vector<2x128xf32> to vector<2x128xbf16>
    %c9_323 = arith.constant 9 : index
    %c0_324 = arith.constant 0 : index
    %604 = tpu.strided_load %arg5[%c9_323, %c0_324] {strides = array<i32: 2, 1>} : memref<80x128xf32, #tpu.memory_space<vmem>>, vector<2x128xf32>
    %605 = arith.truncf %604 : vector<2x128xf32> to vector<2x128xbf16>
    %606 = tpu.concatenate %603, %605 in 1 : vector<2x128xbf16>, vector<2x128xbf16> -> vector<2x256xbf16>
    %c6016 = arith.constant 6016 : index
    %c0_325 = arith.constant 0 : index
    %607 = vector.load %arg2[%c6016, %c0_325] : memref<6784x128xbf16, #tpu.memory_space<vmem>>, vector<256x128xbf16>
    %cst_326 = arith.constant dense<0.000000e+00> : vector<2x128xf32>
    %608 = tpu.matmul %606, %607, %cst_326 {dimension_numbers = #tpu.dot_dimension_numbers<[1], [0], [0], [1], [0, 0, 1, 1], [], []>} : vector<2x256xbf16>, vector<256x128xbf16>, vector<2x128xf32> -> vector<2x128xf32>
    %c23 = arith.constant 23 : index
    %c0_327 = arith.constant 0 : index
    %609 = vector.load %arg3[%c23, %c0_327] : memref<28x128xf32, #tpu.memory_space<vmem>>, vector<1x128xf32>
    %610 = vector.broadcast %609 : vector<1x128xf32> to vector<2x128xf32>
    %611 = arith.addf %608, %610 : vector<2x128xf32>
    %cst_328 = arith.constant 0.000000e+00 : f32
    %cst_329 = arith.constant 6.000000e+00 : f32
    %612 = vector.broadcast %cst_328 : f32 to vector<2x128xf32>
    %613 = arith.maximumf %612, %611 : vector<2x128xf32>
    %614 = vector.broadcast %cst_329 : f32 to vector<2x128xf32>
    %615 = arith.minimumf %614, %613 : vector<2x128xf32>
    %616 = arith.truncf %615 : vector<2x128xf32> to vector<2x128xbf16>
    %c6272 = arith.constant 6272 : index
    %c0_330 = arith.constant 0 : index
    %617 = vector.load %arg2[%c6272, %c0_330] : memref<6784x128xbf16, #tpu.memory_space<vmem>>, vector<128x128xbf16>
    %cst_331 = arith.constant dense<0.000000e+00> : vector<2x128xf32>
    %618 = tpu.matmul %616, %617, %cst_331 {dimension_numbers = #tpu.dot_dimension_numbers<[1], [0], [0], [1], [0, 0, 1, 1], [], []>} : vector<2x128xbf16>, vector<128x128xbf16>, vector<2x128xf32> -> vector<2x128xf32>
    %c24 = arith.constant 24 : index
    %c0_332 = arith.constant 0 : index
    %619 = vector.load %arg3[%c24, %c0_332] : memref<28x128xf32, #tpu.memory_space<vmem>>, vector<1x128xf32>
    %620 = vector.broadcast %619 : vector<1x128xf32> to vector<2x128xf32>
    %621 = arith.addf %618, %620 : vector<2x128xf32>
    %cst_333 = arith.constant 0.000000e+00 : f32
    %cst_334 = arith.constant 6.000000e+00 : f32
    %622 = vector.broadcast %cst_333 : f32 to vector<2x128xf32>
    %623 = arith.maximumf %622, %621 : vector<2x128xf32>
    %624 = vector.broadcast %cst_334 : f32 to vector<2x128xf32>
    %625 = arith.minimumf %624, %623 : vector<2x128xf32>
    %c8_335 = arith.constant 8 : index
    %c0_336 = arith.constant 0 : index
    %626 = vector.load %arg5[%c8_335, %c0_336] : memref<80x128xf32, #tpu.memory_space<vmem>>, vector<2x128xf32>
    tpu.vector_store %arg5[%c8_335, %c0_336], %625 {strides = array<i32>} : memref<80x128xf32, #tpu.memory_space<vmem>>, vector<2x128xf32>,
    %c8_337 = arith.constant 8 : index
    %c0_338 = arith.constant 0 : index
    %627 = vector.load %arg5[%c8_337, %c0_338] : memref<80x128xf32, #tpu.memory_space<vmem>>, vector<2x128xf32>
    %628 = arith.truncf %627 : vector<2x128xf32> to vector<2x128xbf16>
    %c6400 = arith.constant 6400 : index
    %c0_339 = arith.constant 0 : index
    %629 = vector.load %arg2[%c6400, %c0_339] : memref<6784x128xbf16, #tpu.memory_space<vmem>>, vector<128x128xbf16>
    %cst_340 = arith.constant dense<0.000000e+00> : vector<2x128xf32>
    %630 = tpu.matmul %628, %629, %cst_340 {dimension_numbers = #tpu.dot_dimension_numbers<[1], [0], [0], [1], [0, 0, 1, 1], [], []>} : vector<2x128xbf16>, vector<128x128xbf16>, vector<2x128xf32> -> vector<2x128xf32>
    %c25 = arith.constant 25 : index
    %c0_341 = arith.constant 0 : index
    %631 = vector.load %arg3[%c25, %c0_341] : memref<28x128xf32, #tpu.memory_space<vmem>>, vector<1x128xf32>
    %632 = vector.broadcast %631 : vector<1x128xf32> to vector<2x128xf32>
    %633 = arith.addf %630, %632 : vector<2x128xf32>
    %cst_342 = arith.constant 0.000000e+00 : f32
    %cst_343 = arith.constant 6.000000e+00 : f32
    %634 = vector.broadcast %cst_342 : f32 to vector<2x128xf32>
    %635 = arith.maximumf %634, %633 : vector<2x128xf32>
    %636 = vector.broadcast %cst_343 : f32 to vector<2x128xf32>
    %637 = arith.minimumf %636, %635 : vector<2x128xf32>
    %638 = arith.truncf %637 : vector<2x128xf32> to vector<2x128xbf16>
    %c6528 = arith.constant 6528 : index
    %c0_344 = arith.constant 0 : index
    %639 = vector.load %arg2[%c6528, %c0_344] : memref<6784x128xbf16, #tpu.memory_space<vmem>>, vector<128x128xbf16>
    %cst_345 = arith.constant dense<0.000000e+00> : vector<2x128xf32>
    %640 = tpu.matmul %638, %639, %cst_345 {dimension_numbers = #tpu.dot_dimension_numbers<[1], [0], [0], [1], [0, 0, 1, 1], [], []>} : vector<2x128xbf16>, vector<128x128xbf16>, vector<2x128xf32> -> vector<2x128xf32>
    %c26 = arith.constant 26 : index
    %c0_346 = arith.constant 0 : index
    %641 = vector.load %arg3[%c26, %c0_346] : memref<28x128xf32, #tpu.memory_space<vmem>>, vector<1x128xf32>
    %642 = vector.broadcast %641 : vector<1x128xf32> to vector<2x128xf32>
    %643 = arith.addf %640, %642 : vector<2x128xf32>
    %cst_347 = arith.constant 0.000000e+00 : f32
    %cst_348 = arith.constant 6.000000e+00 : f32
    %644 = vector.broadcast %cst_347 : f32 to vector<2x128xf32>
    %645 = arith.maximumf %644, %643 : vector<2x128xf32>
    %646 = vector.broadcast %cst_348 : f32 to vector<2x128xf32>
    %647 = arith.minimumf %646, %645 : vector<2x128xf32>
    %648 = arith.truncf %647 : vector<2x128xf32> to vector<2x128xbf16>
    %c6656 = arith.constant 6656 : index
    %c0_349 = arith.constant 0 : index
    %649 = vector.load %arg2[%c6656, %c0_349] : memref<6784x128xbf16, #tpu.memory_space<vmem>>, vector<128x128xbf16>
    %cst_350 = arith.constant dense<0.000000e+00> : vector<2x128xf32>
    %650 = tpu.matmul %648, %649, %cst_350 {dimension_numbers = #tpu.dot_dimension_numbers<[1], [0], [0], [1], [0, 0, 1, 1], [], []>} : vector<2x128xbf16>, vector<128x128xbf16>, vector<2x128xf32> -> vector<2x128xf32>
    %c27 = arith.constant 27 : index
    %c0_351 = arith.constant 0 : index
    %651 = vector.load %arg3[%c27, %c0_351] : memref<28x128xf32, #tpu.memory_space<vmem>>, vector<1x128xf32>
    %652 = vector.broadcast %651 : vector<1x128xf32> to vector<2x128xf32>
    %653 = arith.addf %650, %652 : vector<2x128xf32>
    %654 = tpu.iota {dimensions = array<i32: 1>} : vector<2x128xi32>
    %c5_i32 = arith.constant 5 : i32
    %655 = vector.broadcast %c5_i32 : i32 to vector<2x128xi32>
    %656 = arith.cmpi slt, %654, %655 : vector<2x128xi32>
    %cst_352 = arith.constant -1.000000e+30 : f32
    %657 = vector.broadcast %cst_352 : f32 to vector<2x128xf32>
    %658 = arith.select %656, %653, %657 : vector<2x128xi1>, vector<2x128xf32>
    %cst_353 = arith.constant dense<0xFF800000> : vector<2xf32>
    %659 = vector.multi_reduction <maximumf>, %658, %cst_353 [1] : vector<2x128xf32> to vector<2xf32>
    %660 = vector.shape_cast %659 : vector<2xf32> to vector<2x1xf32>
    %c5_i32_354 = arith.constant 5 : i32
    %661 = vector.broadcast %c5_i32_354 : i32 to vector<2x128xi32>
    %662 = arith.cmpi slt, %654, %661 : vector<2x128xi32>
    %663 = vector.broadcast %660 : vector<2x1xf32> to vector<2x128xf32>
    %664 = arith.subf %658, %663 : vector<2x128xf32>
    %665 = math.exp %664 : vector<2x128xf32>
    %cst_355 = arith.constant 0.000000e+00 : f32
    %666 = vector.broadcast %cst_355 : f32 to vector<2x128xf32>
    %667 = arith.select %662, %665, %666 : vector<2x128xi1>, vector<2x128xf32>
    %cst_356 = arith.constant dense<0.000000e+00> : vector<2xf32>
    %668 = vector.multi_reduction <add>, %667, %cst_356 [1] : vector<2x128xf32> to vector<2xf32>
    %669 = vector.shape_cast %668 : vector<2xf32> to vector<2x1xf32>
    %670 = vector.broadcast %669 : vector<2x1xf32> to vector<2x128xf32>
    %671 = arith.divf %667, %670 : vector<2x128xf32>
    %c0_357 = arith.constant 0 : index
    %c0_358 = arith.constant 0 : index
    %c0_359 = arith.constant 0 : index
    %672 = vector.load %arg4[%c0_357, %c0_358, %c0_359] : memref<1x2x128xf32, #tpu.memory_space<vmem>>, vector<1x2x128xf32>
    %673 = vector.shape_cast %672 : vector<1x2x128xf32> to vector<2x128xf32>
    %674 = vector.shape_cast %671 : vector<2x128xf32> to vector<1x2x128xf32>
    tpu.vector_store %arg4[%c0_357, %c0_358, %c0_359], %674 {strides = array<i32>} : memref<1x2x128xf32, #tpu.memory_space<vmem>>, vector<1x2x128xf32>,
    return
  }
  func.func @transform_0(%arg0: i32) -> (i32, i32) {
    %c0_i32 = arith.constant 0 : i32
    %c0_i32_0 = arith.constant 0 : i32
    return %arg0, %c0_i32 : i32, i32
  }
  func.func @transform_1(%arg0: i32) -> (i32, i32) {
    %c0_i32 = arith.constant 0 : i32
    %c0_i32_0 = arith.constant 0 : i32
    %c0_i32_1 = arith.constant 0 : i32
    return %c0_i32, %c0_i32_0 : i32, i32
  }
  func.func @transform_2(%arg0: i32) -> (i32, i32) {
    %c0_i32 = arith.constant 0 : i32
    %c0_i32_0 = arith.constant 0 : i32
    %c0_i32_1 = arith.constant 0 : i32
    return %c0_i32, %c0_i32_0 : i32, i32
  }
  func.func @transform_3(%arg0: i32) -> (i32, i32, i32) {
    %c0_i32 = arith.constant 0 : i32
    %c0_i32_0 = arith.constant 0 : i32
    %c0_i32_1 = arith.constant 0 : i32
    return %arg0, %c0_i32, %c0_i32_0 : i32, i32, i32
  }
}

</mosaic_0001>

<bundles_post_ra>
// kernel: tpu_custom_call.1
= control target key start
LH: loop header
LB: loop body
LE: loop exit
PB: predicated region body
PF: predicated region fallthrough
CT: control target
= control target key end

     0   :  { %8 = vsyncpa [#allocation4], 0  ;;  %s8347_s0 = inlined_call_operand.hbm [shape: f32[64,128], index: 0, kind: input, shape index: {}]   ;;  %s8348_s1 = inlined_call_operand.hbm [shape: bf16[6784,128], index: 1, kind: input, shape index: {}]   ;;  %s8349_s2 = inlined_call_operand.hbm [shape: f32[28,128], index: 2, kind: input, shape index: {}]   ;;  %s8350_s3 = inlined_call_operand.hbm [shape: f32[1,2,128], index: 3, kind: output, shape index: {}]  }
   0x1   :  { %9 = vsyncpa [#allocation7], 0 }
   0x2   :  { %10 = vsyncpa [#allocation5], 0  ;;  %s7878_s12 = smov [#allocation6]   ;;  %s7784_s16 = scalar_lea.hbm %s8348_s1, 54272 }
   0x3   :  { %s28_s13 = sshll.u32 %s7878_s12, 4  ;;  %p7785_p0 = scmp.ne.s32.totalorder %s8348_s1, %s7784_s16  ;;  %s29_s13 = int_to_ptr.vmem [resolvable:$true] %s28_s13 }
   0x4   :  { %p7788_p1 = scmp.lt.u32.totalorder %s7784_s16, %s8348_s1 }
   0x6   :  { %p7790_p2 = pnand %p7788_p1, %p7785_p0 }
   0x8   :  { %7793 = shalt.err (!%p7790_p2)
}
   0x9   :  { %s7794_s21 = scalar_lea.vmem %s29_s13, 54272  ;;  %p7799_p4 = scmp.lt.s32.totalorder %s29_s13, %s29_s13 }
   0xa   :  { %p7795_p3 = scmp.ne.s32.totalorder %s29_s13, %s7794_s21  ;;  %p7800_p5 = scmp.lt.s32.totalorder %s7794_s21, %s7794_s21 }
   0xc   :  { %p7801_p6 = por %p7800_p5, %p7799_p4 }
   0xe   :  { %p7802_p7 = pnand %p7801_p6, %p7795_p3 }
  0x10   :  { %7805 = shalt.err (!%p7802_p7)
}
  0x11   :  { %s7879_s22 = smov 64   ;;  %s7880_s23 = smov 4  }
  0x12   :  { %34 = dma.hbm_to_vmem [thread:$0]  %s8348_s1, 54272, %s29_s13, [#allocation7], %s7879_s22, %s7879_s22, %s7880_s23  }
  0x13   :  { %s7881_s26 = smov [#allocation3]   ;;  %s7806_s30 = scalar_lea.hbm %s8347_s0, 1024 }
  0x14   :  { %s16_s27 = sshll.u32 %s7881_s26, 4  ;;  %p7807_p8 = scmp.ne.s32.totalorder %s8347_s0, %s7806_s30  ;;  %s17_s27 = int_to_ptr.vmem [resolvable:$true] %s16_s27 }
  0x15   :  { %p7810_p9 = scmp.lt.u32.totalorder %s7806_s30, %s8347_s0 }
  0x17   :  { %p7812_p10 = pnand %p7810_p9, %p7807_p8 }
  0x19   :  { %7815 = shalt.err (!%p7812_p10)
}
  0x1a   :  { %s7816_s8 = scalar_lea.vmem %s17_s27, 1024  ;;  %p7821_p12 = scmp.lt.s32.totalorder %s17_s27, %s17_s27 }
  0x1b   :  { %p7817_p11 = scmp.ne.s32.totalorder %s17_s27, %s7816_s8  ;;  %p7822_p13 = scmp.lt.s32.totalorder %s7816_s8, %s7816_s8 }
  0x1d   :  { %p7823_p0 = por %p7822_p13, %p7821_p12 }
  0x1f   :  { %p7824_p1 = pnand %p7823_p0, %p7817_p11 }
  0x21   :  { %7827 = shalt.err (!%p7824_p1)
}
  0x22   :  { %s7882_s1 = smov 128   ;;  %s7883_s9 = smov 8  }
  0x23   :  { %22 = dma.hbm_to_vmem [thread:$0]  %s8347_s0, 1024, %s17_s27, [#allocation4], %s7882_s1, %s7882_s1, %s7883_s9  }
  0x24   :  { %s7884_s12 = smov [#allocation8]   ;;  %s7828_s16 = scalar_lea.hbm %s8349_s2, 512 }
  0x25   :  { %s40_s13 = sshll.u32 %s7884_s12, 4  ;;  %p7829_p2 = scmp.ne.s32.totalorder %s8349_s2, %s7828_s16  ;;  %s41_s13 = int_to_ptr.vmem [resolvable:$true] %s40_s13 }
  0x26   :  { %p7832_p3 = scmp.lt.u32.totalorder %s7828_s16, %s8349_s2 }
  0x28   :  { %p7834_p4 = pnand %p7832_p3, %p7829_p2 }
  0x2a   :  { %7837 = shalt.err (!%p7834_p4)
}
  0x2b   :  { %s7838_s21 = scalar_lea.vmem %s41_s13, 512  ;;  %p7843_p6 = scmp.lt.s32.totalorder %s41_s13, %s41_s13 }
  0x2c   :  { %p7839_p5 = scmp.ne.s32.totalorder %s41_s13, %s7838_s21  ;;  %p7844_p7 = scmp.lt.s32.totalorder %s7838_s21, %s7838_s21 }
  0x2e   :  { %p7845_p8 = por %p7844_p7, %p7843_p6 }
  0x30   :  { %p7846_p9 = pnand %p7845_p8, %p7839_p5 }
  0x32   :  { %7849 = shalt.err (!%p7846_p9)
}
  0x33   :  { %46 = dma.hbm_to_vmem [thread:$0]  %s8349_s2, 512, %s41_s13, [#allocation7], %s7882_s1, %s7882_s1, %s7883_s9  }
  0x34   :  { %7872 = dma.done.wait [#allocation4], 1024  }
  0x35   :  { %7873 = vsyncadd [#allocation4], 4294966272 }
  0x36   :  { %7874 = dma.done.wait [#allocation7], 54784  }
  0x37   :  { %7875 = vsyncadd [#allocation7], 4294912512  ;;  %v7885_v0 = vmov 0.0   ;;  %v7353_v1 = vld [vmem:[#allocation6 + $0x40] sm:$0xff]   ;;  %v7356_v4 = vld [vmem:[#allocation6 + $0x48] sm:$0xff]   ;;  %v83_v17 = vlaneseq  ;;  %vm7886_vm1 = vmmov 1  }
  0x38   :  { %66 = vst [vmem:[#allocation2 + $0x48] sm:$0xff] %v7885_v0  ;;  %57 = vst [vmem:[#allocation2] sm:$0xff] %v7885_v0  ;;  %v7354_v2 = vld [vmem:[#allocation6] sm:$0xff]   ;;  %6258 = vmatprep.subr.bf16.mxu0 %v7353_v1  ;;  %v7357_v5 = vld [vmem:[#allocation6 + $0x8] sm:$0xff]   ;;  %vm7887_vm9 = vmmov 0   ;;  %s7888_s2 = smov [#allocation9]  }
  0x39   :  { %v7355_v3 = vld [vmem:[#allocation6 + $0x80] sm:$0xff]   ;;  %6259 = vmatpush3.bf16.msra.mxu0 %v7354_v2  ;;  %v7358_v6 = vld [vmem:[#allocation6 + $0x88] sm:$0xff]   ;;  %v7359_v7 = vld [vmem:[#allocation6 + $0x50] sm:$0xff]   ;;  %v7946_v21 = vshrl.u32 %v83_v17, 7  ;;  %s5675_s23 = sshll.u32 %s7888_s2, 4  ;;  %s5676_s23 = int_to_ptr.vmem [resolvable:$true] %s5675_s23 }
  0x3a   :  { %6802 = vmatprep.subr.bf16.mxu1 %v7355_v3  ;;  %6260 = vmatprep.subr.bf16.mxu0 %v7356_v4  ;;  %v7360_v8 = vld [vmem:[#allocation6 + $0x10] sm:$0xff]   ;;  %v7362_v10 = vld [vmem:[#allocation6 + $0x58] sm:$0xff]   ;;  %v7365_v13 = vld [vmem:[#allocation6 + $0x60] sm:$0xff]   ;;  %s7850_s24 = scalar_lea.vmem %s5676_s23, 32  ;;  %p7855_p11 = scmp.lt.s32.totalorder %s5676_s23, %s5676_s23 }
  0x3b   :  { %6803 = vmatpush3.bf16.msra.mxu1 %v7355_v3  ;;  %v7361_v9 = vld [vmem:[#allocation6 + $0x90] sm:$0xff]   ;;  %v7363_v11 = vld [vmem:[#allocation6 + $0x18] sm:$0xff]   ;;  %v7367_v14 = vld [vmem:[#allocation6 + $0xa0] sm:$0xff]   ;;  %v86_v25 = vadd.s32 16, %v7946_v21  ;;  %v92_v29 = vand.u32 15, %v7946_v21  ;;  %p7851_p10 = scmp.ne.s32.totalorder %s5676_s23, %s7850_s24  ;;  %p7856_p12 = scmp.lt.s32.totalorder %s7850_s24, %s7850_s24 }
  0x3c   :  { %6804 = vmatprep.subr.bf16.mxu1 %v7358_v6  ;;  %v7364_v12 = vld [vmem:[#allocation6 + $0x98] sm:$0xff]   ;;  %v7366_v15 = vld [vmem:[#allocation6 + $0x20] sm:$0xff]   ;;  %v7368_v16 = vld [vmem:[#allocation6 + $0x68] sm:$0xff]  }
  0x3d   :  { %6261 = vmatpush3.bf16.msra.mxu0 %v7357_v5  ;;  %v7370_v18 = vld [vmem:[#allocation6 + $0xa8] sm:$0xff]   ;;  %v7371_v20 = vld [vmem:[#allocation6 + $0x70] sm:$0xff]   ;;  %v7374_v24 = vld [vmem:[#allocation6 + $0x78] sm:$0xff]   ;;  %v106_v37 = vand.u32 15, %v86_v25  ;;  %vm6250_vm0 = vcmp.ne.s32.totalorder %v92_v29, 0  ;;  %p7857_p13 = por %p7856_p12, %p7855_p11 }
  0x3e   :  { %6262 = vmatprep.subr.bf16.mxu0 %v7359_v7  ;;  %v7369_v19 = vld [vmem:[#allocation6 + $0x28] sm:$0xff]   ;;  %v7372_v22 = vld [vmem:[#allocation6 + $0x30] sm:$0xff]   ;;  %v67_v26 = vld [vmem:[#allocation3] sm:$0xff] }
  0x3f   :  { %6805 = vmatpush3.bf16.msra.mxu1 %v7358_v6  ;;  %v7373_v23 = vld [vmem:[#allocation6 + $0xb0] sm:$0xff]   ;;  %v68_v27 = vld [vmem:[#allocation3 + $0x8] sm:$0xff]  ;;  %v7376_v30 = vld [vmem:[#allocation6 + $0xb8] sm:$0xff]   ;;  %75 = vst [vmem:[#allocation2 + $0x8] sm:$0xff] %v67_v26  ;;  %vm7955_vm3 = vcmp.ne.s32.totalorder %v106_v37, 0  ;;  %p7858_p0 = pnand %p7857_p13, %p7851_p10 }
  0x40   :  { %6806 = vmatprep.subr.bf16.mxu1 %v7361_v9  ;;  %v69_v28 = vld [vmem:[#allocation3 + $0x10] sm:$0xff]  ;;  %v70_v31 = vld [vmem:[#allocation3 + $0x18] sm:$0xff]  ;;  %76 = vst [vmem:[#allocation2 + $0x10] sm:$0xff] %v68_v27  ;;  %v71_v32 = vld [vmem:[#allocation3 + $0x20] sm:$0xff] }
  0x41   :  { %6263 = vmatpush3.bf16.msra.mxu0 %v7360_v8  ;;  %77 = vst [vmem:[#allocation2 + $0x18] sm:$0xff] %v69_v28  ;;  %78 = vst [vmem:[#allocation2 + $0x20] sm:$0xff] %v70_v31  ;;  %v72_v33 = vld [vmem:[#allocation3 + $0x28] sm:$0xff]  ;;  %v73_v34 = vld [vmem:[#allocation3 + $0x30] sm:$0xff] }
  0x42   :  { %6264 = vmatprep.subr.bf16.mxu0 %v7362_v10  ;;  %v74_v35 = vld [vmem:[#allocation3 + $0x38] sm:$0xff]  ;;  %79 = vst [vmem:[#allocation2 + $0x28] sm:$0xff] %v71_v32  ;;  %80 = vst [vmem:[#allocation2 + $0x30] sm:$0xff] %v72_v33  ;;  %v7377_v38 = vld [vmem:[#allocation6 + $0x100] sm:$0xff]  }
  0x43   :  { %6807 = vmatpush3.bf16.msra.mxu1 %v7361_v9  ;;  %v7375_v36 = vld [vmem:[#allocation6 + $0x38] sm:$0xff]   ;;  %81 = vst [vmem:[#allocation2 + $0x38] sm:$0xff] %v73_v34  ;;  %82 = vst [vmem:[#allocation2 + $0x40] sm:$0xff] %v74_v35  ;;  %v7378_v44 = vld [vmem:[#allocation6 + $0xc0] sm:$0xff]  }
  0x44   :  { %6808 = vmatprep.subr.bf16.mxu1 %v7364_v12  ;;  %vm7951_vm2 = vmpackc.low %vm7886_vm1, %vm6250_vm0  ;;  %v7379_v57 = vld [vmem:[#allocation6 + $0x108] sm:$0xff]   ;;  %v7381_v63 = vld [vmem:[#allocation6 + $0x140] sm:$0xff]  }
  0x45   :  { %6265 = vmatpush3.bf16.msra.mxu0 %v7363_v11  ;;  %vm7962_vm4 = vmpackc.low %vm7886_vm1, %vm7955_vm3  ;;  %v7380_v61 = vld [vmem:[#allocation6 + $0xc8] sm:$0xff]   ;;  %v7382_v0 = vld [vmem:[#allocation6 + $0x110] sm:$0xff]  }
  0x46   :  { %6266 = vmatprep.subr.bf16.mxu0 %v7365_v13  ;;  %v7383_v1 = vld [vmem:[#allocation6 + $0xd0] sm:$0xff]   ;;  %v7384_v2 = vld [vmem:[#allocation6 + $0x148] sm:$0xff]   ;;  %v7385_v3 = vld [vmem:[#allocation6 + $0x118] sm:$0xff]  }
  0x47   :  { %6809 = vmatpush3.bf16.msra.mxu1 %v7364_v12  ;;  %v155_v41 = vld [vmem:[#allocation2 + $0x8] ss:$2 sm:$0xff]  ;;  %v137_v42 = vld [vmem:[#allocation2 + $0x7] ss:$2 sm:$0xff]  ;;  %v7391_v9 = vld [vmem:[#allocation6 + $0x128] sm:$0xff]  }
  0x48   :  { %6810 = vmatprep.subr.bf16.mxu1 %v7367_v14  ;;  %v165_v43 = vld [vmem:[#allocation2 + $0x9] ss:$2 sm:$0xff]  ;;  %v157_v45 = vld [vmem:[#allocation2 + $0x18] ss:$2 sm:$0xff]  ;;  %v167_v47 = vld [vmem:[#allocation2 + $0x19] ss:$2 sm:$0xff] }
  0x49   :  { %6267 = vmatpush3.bf16.msra.mxu0 %v7366_v15  ;;  %v139_v46 = vld [vmem:[#allocation2 + $0x17] ss:$2 sm:$0xff]  ;;  %v162_v48 = vpack.c.bf16 %v157_v45, %v155_v41  ;;  %v172_v50 = vpack.c.bf16 %v167_v47, %v165_v43  ;;  %v159_v53 = vld [vmem:[#allocation2 + $0x28] ss:$2 sm:$0xff]  ;;  %v141_v59 = vld [vmem:[#allocation2 + $0x27] ss:$2 sm:$0xff] }
  0x4a   :  { %6268 = vmatprep.subr.bf16.mxu0 %v7368_v16  ;;  %v5712_v49 = vpack.c.bf16 %v139_v46, %v137_v42  ;;  %v169_v51 = vld [vmem:[#allocation2 + $0x29] ss:$2 sm:$0xff]  ;;  %v171_v52 = vld [vmem:[#allocation2 + $0x39] ss:$2 sm:$0xff]  ;;  %v161_v55 = vld [vmem:[#allocation2 + $0x38] ss:$2 sm:$0xff] }
  0x4b   :  { %6811 = vmatpush3.bf16.msra.mxu1 %v7367_v14  ;;  %v173_v54 = vpack.c.bf16 %v171_v52, %v169_v51  ;;  %403 = vmatprep.mubr.bf16.mxu0 %v162_v48  ;;  %v163_v58 = vpack.c.bf16 %v161_v55, %v159_v53  ;;  %v143_v60 = vld [vmem:[#allocation2 + $0x37] ss:$2 sm:$0xff]  ;;  %v7386_v4 = vld [vmem:[#allocation6 + $0xd8] sm:$0xff]   ;;  %v5685_v25 = vld [vmem:[#allocation8] ss:$0 sm:$0xff] }
  0x4c   :  { %6812 = vmatprep.subr.bf16.mxu1 %v7370_v18  ;;  %6818 = vmatprep.mubr.bf16.mxu1 %v172_v50  ;;  %v5716_v62 = vpack.c.bf16 %v143_v60, %v141_v59  ;;  %v7387_v5 = vld [vmem:[#allocation6 + $0x150] sm:$0xff]   ;;  %v7388_v6 = vld [vmem:[#allocation6 + $0x120] sm:$0xff]   ;;  %v7390_v8 = vld [vmem:[#allocation6 + $0x158] sm:$0xff]  }
  0x4d   :  { %6269 = vmatpush3.bf16.msra.mxu0 %v7369_v19  ;;  %v7389_v7 = vld [vmem:[#allocation6 + $0xe0] sm:$0xff]   ;;  %v7392_v10 = vld [vmem:[#allocation6 + $0xe8] sm:$0xff]   ;;  %v7394_v12 = vld [vmem:[#allocation6 + $0x130] sm:$0xff]  }
  0x4e   :  { %6270 = vmatprep.subr.bf16.mxu0 %v7371_v20  ;;  %v7393_v11 = vld [vmem:[#allocation6 + $0x160] sm:$0xff]   ;;  %v7395_v13 = vld [vmem:[#allocation6 + $0xf0] sm:$0xff]   ;;  %v7396_v14 = vld [vmem:[#allocation6 + $0x168] sm:$0xff]   ;;  %v7971_v20 = vadd.s32 8, %v7946_v21 }
  0x4f   :  { %6813 = vmatpush3.bf16.msra.mxu1 %v7370_v18  ;;  %v7397_v15 = vld [vmem:[#allocation6 + $0x138] sm:$0xff]   ;;  %v7399_v18 = vld [vmem:[#allocation6 + $0x170] sm:$0xff]  }
  0x50   :  { %6814 = vmatprep.subr.bf16.mxu1 %v7373_v23  ;;  %v7398_v16 = vld [vmem:[#allocation6 + $0xf8] sm:$0xff]   ;;  %v7403_v39 = vld [vmem:[#allocation6 + $0x190] sm:$0xff]  }
  0x51   :  { %6271 = vmatpush3.bf16.msra.mxu0 %v7372_v22  ;;  %v7400_v19 = vld [vmem:[#allocation6 + $0x178] sm:$0xff]   ;;  %v99_v22 = vand.u32 15, %v7971_v20 }
  0x52   :  { %6272 = vmatprep.subr.bf16.mxu0 %v7374_v24  ;;  %v7401_v24 = vld [vmem:[#allocation6 + $0x180] sm:$0xff]   ;;  %v7999_v56 = vld [vmem:[#allocation2 + $0x48] sm:$0xff] }
  0x53   :  { %6815 = vmatpush3.bf16.msra.mxu1 %v7373_v23  ;;  %v87_v23 = vadd.s32 24, %v7946_v21  ;;  %vm7975_vm5 = vcmp.ne.s32.totalorder %v99_v22, 15  ;;  %v7408_v22 = vld [vmem:[#allocation6 + $0x1b8] sm:$0xff]  }
  0x54   :  { %6816 = vmatprep.subr.bf16.mxu1 %v7376_v30  ;;  %vm7982_vm7 = vmpackc.low %vm7975_vm5, %vm7886_vm1 }
  0x55   :  { %6273 = vmatpush3.bf16.msra.mxu0 %v7375_v36  ;;  %v113_v53 = vand.u32 15, %v87_v23  ;;  %v7409_v23 = vld [vmem:[#allocation6 + $0x200] sm:$0xff]  }
  0x56   :  { %6296 = vmatprep.subr.bf16.mxu0 %v7377_v38 }
  0x57   :  { %6817 = vmatpush3.bf16.msra.mxu1 %v7376_v30  ;;  %vm6247_vm6 = vcmp.ne.s32.totalorder %v113_v53, 15 }
  0x58   :  { %5713 = vmatmul.mubr.msk.bf16.vlgmr.msra.gmra.mrb[0].mxu0 %vm7951_vm2, %v5712_v49  ;;  %6822 = vmatprep.subr.bf16.mxu1 %v7381_v63  ;;  %vm7987_vm8 = vmpackc.low %vm6247_vm6, %vm7886_vm1 }
  0x59   :  { %411 = vmatprep.mubr.bf16.mxu0 %v163_v58  ;;  %6297 = vmatpush3.bf16.msra.mxu0 %v7378_v44 }
  0x5a   :  { %6819 = vmatmul.mubr.bf16.vlgmr.msra.gmra.mrb[0].mxu1 %v173_v54  ;;  %6298 = vmatprep.subr.bf16.mxu0 %v7379_v57 }
  0x5b   :  { %6823 = vmatpush3.bf16.msra.mxu1 %v7381_v63 }
  0x5c   :  { %6824 = vmatprep.subr.bf16.mxu1 %v7384_v2 }
  0x5d   :  { %6299 = vmatpush3.bf16.msra.mxu0 %v7380_v61 }
  0x5e   :  { %6300 = vmatprep.subr.bf16.mxu0 %v7382_v0  ;;  %v7402_v0 = vld [vmem:[#allocation6 + $0x188] sm:$0xff]  }
  0x5f   :  { %6825 = vmatpush3.bf16.msra.mxu1 %v7384_v2 }
  0x60   :  { %5717 = vmatmul.mubr.msk.bf16.gmra.mrb[4].mxu0 %vm7962_vm4, %v5716_v62  ;;  %6826 = vmatprep.subr.bf16.mxu1 %v7387_v5 }
  0x61   :  { %6301 = vmatpush3.bf16.msra.mxu0 %v7383_v1 }
  0x62   :  { %6302 = vmatprep.subr.bf16.mxu0 %v7385_v3  ;;  %v7413_v3 = vld [vmem:[#allocation6 + $0x248] sm:$0xff]  }
  0x63   :  { %6827 = vmatpush3.bf16.msra.mxu1 %v7387_v5 }
  0x64   :  { %6828 = vmatprep.subr.bf16.mxu1 %v7390_v8 }
  0x65   :  { %6303 = vmatpush3.bf16.msra.mxu0 %v7386_v4 }
  0x66   :  { %6304 = vmatprep.subr.bf16.mxu0 %v7388_v6 }
  0x67   :  { %6829 = vmatpush3.bf16.msra.mxu1 %v7390_v8 }
  0x68   :  { %6830 = vmatprep.subr.bf16.mxu1 %v7393_v11 }
  0x69   :  { %6305 = vmatpush3.bf16.msra.mxu0 %v7389_v7 }
  0x6a   :  { %6306 = vmatprep.subr.bf16.mxu0 %v7391_v9 }
  0x6b   :  { %6831 = vmatpush3.bf16.msra.mxu1 %v7393_v11 }
  0x6c   :  { %6832 = vmatprep.subr.bf16.mxu1 %v7396_v14 }
  0x6d   :  { %6307 = vmatpush3.bf16.msra.mxu0 %v7392_v10 }
  0x6e   :  { %6308 = vmatprep.subr.bf16.mxu0 %v7394_v12 }
  0x6f   :  { %6833 = vmatpush3.bf16.msra.mxu1 %v7396_v14 }
  0x70   :  { %6834 = vmatprep.subr.bf16.mxu1 %v7399_v18 }
  0x71   :  { %6309 = vmatpush3.bf16.msra.mxu0 %v7395_v13 }
  0x72   :  { %6310 = vmatprep.subr.bf16.mxu0 %v7397_v15  ;;  %v7404_v15 = vld [vmem:[#allocation6 + $0x198] sm:$0xff]  }
  0x73   :  { %6835 = vmatpush3.bf16.msra.mxu1 %v7399_v18  ;;  %v7406_v18 = vld [vmem:[#allocation6 + $0x1a8] sm:$0xff]  }
  0x74   :  { %6836 = vmatprep.subr.bf16.mxu1 %v7400_v19 }
  0x75   :  { %6311 = vmatpush3.bf16.msra.mxu0 %v7398_v16  ;;  %v7405_v16 = vld [vmem:[#allocation6 + $0x1a0] sm:$0xff]  }
  0x76   :  { %6842 = vmatprep.subr.bf16.mxu0 %v7401_v24 }
  0x77   :  { %6837 = vmatpush3.bf16.msra.mxu1 %v7400_v19  ;;  %v7407_v19 = vld [vmem:[#allocation6 + $0x1b0] sm:$0xff]  }
  0x78   :  { %6344 = vmatprep.subr.bf16.mxu1 %v7409_v23 }
 0x12b   :  { %v6274_v26 = vpop.f32.mrb[0].mxu0 }
 0x12c   :  { %v6275_v28 = vpop.f32.mrb[1].mxu0 }
 0x12d   :  { %v6820_v27 = vpop.f32.mrb[0].mxu1  ;;  %v6276_v30 = vadd.f32 %v6275_v28, %v6274_v26  ;;  %v6277_v31 = vpop.f32.mrb[2].mxu0  ;;  %v7414_v26 = vld [vmem:[#allocation6 + $0x1c8] sm:$0xff]   ;;  %v7417_v28 = vld [vmem:[#allocation6 + $0x1d0] sm:$0xff]  }
 0x12e   :  { %v454_v29 = vpop.f32.mrb[1].mxu1  ;;  %v6278_v33 = vpop.f32.mrb[3].mxu0 }
 0x12f   :  { %v6821_v32 = vpop.f32.mrb[2].mxu1  ;;  %v406_v35 = vadd.f32 %v6276_v30, %v5685_v25  ;;  %v6279_v36 = vadd.f32 %v6278_v33, %v6277_v31 }
 0x130   :  { %v457_v34 = vpop.f32.mrb[3].mxu1 }
 0x131   :  { %v455_v37 = vadd.f32 %v454_v29, %v406_v35  ;;  %v409_v38 = vadd.f32 %v6279_v36, %v5685_v25  ;;  %v5718_v35 = vld [vmem:[#allocation8 + $0x1] ss:$0 sm:$0xff] }
 0x133   :  { %v469_v40 = vmax.f32 %v455_v37, 0.0  ;;  %v458_v41 = vadd.f32 %v457_v34, %v409_v38  ;;  %v6280_v42 = vpop.f32.mrb[4].mxu0 }
 0x134   :  { %v6281_v43 = vpop.f32.mrb[5].mxu0 }
 0x135   :  { %v473_v44 = vmin.f32 %v469_v40, 6.0  ;;  %v470_v45 = vmax.f32 %v458_v41, 0.0  ;;  %v6282_v46 = vadd.f32 %v6281_v43, %v6280_v42  ;;  %v6283_v47 = vpop.f32.mrb[6].mxu0 }
 0x136   :  { %v6284_v48 = vpop.f32.mrb[7].mxu0 }
 0x137   :  { %477 = vst [vmem:[#allocation2 + $0x8] sm:$0xff] %v473_v44  ;;  %v474_v50 = vmin.f32 %v470_v45, 6.0  ;;  %v414_v51 = vadd.f32 %v6282_v46, %v5685_v25  ;;  %v6285_v52 = vadd.f32 %v6284_v48, %v6283_v47 }
 0x139   :  { %478 = vst [vmem:[#allocation2 + $0x10] sm:$0xff] %v474_v50  ;;  %v463_v54 = vadd.f32 %v6820_v27, %v414_v51  ;;  %v417_v55 = vadd.f32 %v6285_v52, %v5685_v25  ;;  %v495_v57 = vpack.c.bf16 %v474_v50, %v473_v44  ;;  %v7412_v25 = vld [vmem:[#allocation6 + $0x208] sm:$0xff]   ;;  %v7415_v27 = vld [vmem:[#allocation6 + $0x210] sm:$0xff]  }
 0x13b   :  { %v471_v58 = vmax.f32 %v463_v54, 0.0  ;;  %v466_v59 = vadd.f32 %v6821_v32, %v417_v55  ;;  %740 = vmatprep.mubr.bf16.mxu0 %v495_v57 }
 0x13d   :  { %v475_v60 = vmin.f32 %v471_v58, 6.0  ;;  %v472_v61 = vmax.f32 %v466_v59, 0.0 }
 0x13e   :  { %v481_v1 = vld [vmem:[#allocation2 + $0x7] sm:$0xff] }
 0x13f   :  { %479 = vst [vmem:[#allocation2 + $0x18] sm:$0xff] %v475_v60  ;;  %v476_v63 = vmin.f32 %v472_v61, 6.0 }
 0x140   :  { %v482_v2 = vld [vmem:[#allocation2 + $0xf] sm:$0xff] }
 0x141   :  { %480 = vst [vmem:[#allocation2 + $0x20] sm:$0xff] %v476_v63  ;;  %v5745_v4 = vpack.c.bf16 %v482_v2, %v481_v1  ;;  %v496_v5 = vpack.c.bf16 %v476_v63, %v475_v60  ;;  %v497_v6 = vld [vmem:[#allocation2 + $0x9] sm:$0xff] }
 0x142   :  { %v7410_v1 = vld [vmem:[#allocation6 + $0x240] sm:$0xff]  }
 0x143   :  { %5746 = vmatmul.mubr.msk.bf16.vlgmr.msra.gmra.mrb[8].mxu0 %vm7951_vm2, %v5745_v4  ;;  %v7416_v4 = vld [vmem:[#allocation6 + $0x250] sm:$0xff]  }
 0x144   :  { %748 = vmatprep.mubr.bf16.mxu0 %v496_v5  ;;  %6843 = vmatpush3.bf16.msra.mxu0 %v7401_v24  ;;  %v7411_v24 = vld [vmem:[#allocation6 + $0x1c0] sm:$0xff]   ;;  %v7418_v5 = vld [vmem:[#allocation6 + $0x218] sm:$0xff]  }
 0x145   :  { %6844 = vmatprep.subr.bf16.mxu0 %v7402_v0 }
 0x146   :  { %v498_v7 = vld [vmem:[#allocation2 + $0x11] sm:$0xff] }
 0x147   :  { %v483_v8 = vld [vmem:[#allocation2 + $0x17] sm:$0xff]  ;;  %v5753_v9 = vpack.c.bf16 %v498_v7, %v497_v6  ;;  %v7419_v6 = vld [vmem:[#allocation6 + $0x258] sm:$0xff]  }
 0x148   :  { %v499_v10 = vld [vmem:[#allocation2 + $0x19] sm:$0xff]  ;;  %v500_v11 = vld [vmem:[#allocation2 + $0x21] sm:$0xff]  ;;  %6845 = vmatpush3.bf16.msra.mxu0 %v7402_v0 }
 0x149   :  { %v484_v12 = vld [vmem:[#allocation2 + $0x1f] sm:$0xff]  ;;  %6838 = vmatprep.mubr.msk.bf16.mxu1 %vm7982_vm7, %v5753_v9  ;;  %v5757_v13 = vpack.c.bf16 %v500_v11, %v499_v10  ;;  %6846 = vmatprep.subr.bf16.mxu0 %v7403_v39  ;;  %v7420_v7 = vld [vmem:[#allocation6 + $0x1d8] sm:$0xff]   ;;  %v7422_v9 = vld [vmem:[#allocation6 + $0x260] sm:$0xff]  }
 0x14a   :  { %v5749_v14 = vpack.c.bf16 %v484_v12, %v483_v8  ;;  %v7421_v8 = vld [vmem:[#allocation6 + $0x220] sm:$0xff]   ;;  %v7424_v11 = vld [vmem:[#allocation6 + $0x228] sm:$0xff]  }
 0x14b   :  { %6839 = vmatmul.mubr.msk.bf16.vlgmr.msra.gmra.mrb[4].mxu1 %vm7987_vm8, %v5757_v13  ;;  %v7423_v10 = vld [vmem:[#allocation6 + $0x1e0] sm:$0xff]   ;;  %v7425_v12 = vld [vmem:[#allocation6 + $0x268] sm:$0xff]  }
 0x14c   :  { %5750 = vmatmul.mubr.msk.bf16.gmra.mrb[12].mxu0 %vm7962_vm4, %v5749_v14  ;;  %6345 = vmatpush3.bf16.msra.mxu1 %v7411_v24  ;;  %v7426_v13 = vld [vmem:[#allocation6 + $0x1e8] sm:$0xff]   ;;  %v7427_v14 = vld [vmem:[#allocation6 + $0x230] sm:$0xff]  }
 0x14d   :  { %6847 = vmatpush3.bf16.msra.mxu0 %v7403_v39  ;;  %6346 = vmatprep.subr.bf16.mxu1 %v7412_v25  ;;  %v7428_v39 = vld [vmem:[#allocation6 + $0x270] sm:$0xff]  }
 0x14e   :  { %6848 = vmatprep.subr.bf16.mxu0 %v7404_v15 }
 0x150   :  { %6347 = vmatpush3.bf16.msra.mxu1 %v7414_v26 }
 0x151   :  { %6849 = vmatpush3.bf16.msra.mxu0 %v7404_v15  ;;  %6348 = vmatprep.subr.bf16.mxu1 %v7415_v27  ;;  %v7429_v15 = vld [vmem:[#allocation6 + $0x1f0] sm:$0xff]  }
 0x152   :  { %6850 = vmatprep.subr.bf16.mxu0 %v7405_v16 }
 0x154   :  { %6349 = vmatpush3.bf16.msra.mxu1 %v7417_v28 }
 0x155   :  { %6851 = vmatpush3.bf16.msra.mxu0 %v7405_v16  ;;  %6350 = vmatprep.subr.bf16.mxu1 %v7418_v5  ;;  %v7430_v16 = vld [vmem:[#allocation6 + $0x238] sm:$0xff]  }
 0x156   :  { %6852 = vmatprep.subr.bf16.mxu0 %v7406_v18 }
 0x158   :  { %6351 = vmatpush3.bf16.msra.mxu1 %v7420_v7  ;;  %v5768_v7 = vld [vmem:[#allocation8 + $0x3] ss:$0 sm:$0xff] }
 0x159   :  { %6853 = vmatpush3.bf16.msra.mxu0 %v7406_v18  ;;  %6352 = vmatprep.subr.bf16.mxu1 %v7421_v8  ;;  %v7431_v18 = vld [vmem:[#allocation6 + $0x278] sm:$0xff]  }
 0x15a   :  { %6854 = vmatprep.subr.bf16.mxu0 %v7407_v19 }
 0x15c   :  { %6353 = vmatpush3.bf16.msra.mxu1 %v7423_v10 }
 0x15d   :  { %6855 = vmatpush3.bf16.msra.mxu0 %v7407_v19  ;;  %6354 = vmatprep.subr.bf16.mxu1 %v7424_v11  ;;  %v7432_v19 = vld [vmem:[#allocation6 + $0x1f8] sm:$0xff]  }
 0x15e   :  { %6856 = vmatprep.subr.bf16.mxu0 %v7408_v22 }
 0x160   :  { %6355 = vmatpush3.bf16.msra.mxu1 %v7426_v13 }
 0x161   :  { %6857 = vmatpush3.bf16.msra.mxu0 %v7408_v22  ;;  %6356 = vmatprep.subr.bf16.mxu1 %v7427_v14  ;;  %v5759_v22 = vld [vmem:[#allocation8 + $0x2] ss:$0 sm:$0xff] }
 0x162   :  { %6862 = vmatprep.subr.bf16.mxu0 %v7999_v56 }
 0x164   :  { %6357 = vmatpush3.bf16.msra.mxu1 %v7429_v15 }
 0x165   :  { %6358 = vmatprep.subr.bf16.mxu1 %v7430_v16 }
 0x168   :  { %6359 = vmatpush3.bf16.msra.mxu1 %v7432_v19 }
 0x169   :  { %6882 = vmatprep.subr.bf16.mxu1 %v7999_v56 }
 0x216   :  { %v6312_v29 = vpop.f32.mrb[8].mxu0 }
 0x217   :  { %v6313_v30 = vpop.f32.mrb[9].mxu0 }
 0x218   :  { %v6314_v31 = vadd.f32 %v6313_v30, %v6312_v29  ;;  %v6315_v32 = vpop.f32.mrb[10].mxu0 }
 0x219   :  { %v6316_v33 = vpop.f32.mrb[11].mxu0 }
 0x21a   :  { %v6317_v34 = vadd.f32 %v6316_v33, %v6315_v32  ;;  %v743_v38 = vadd.f32 %v6314_v31, %v5718_v35 }
 0x21c   :  { %v746_v46 = vadd.f32 %v6317_v34, %v5718_v35 }
 0x21e   :  { %v6840_v36 = vpop.f32.mrb[4].mxu1 }
 0x21f   :  { %v6318_v37 = vpop.f32.mrb[12].mxu0  ;;  %v791_v40 = vpop.f32.mrb[5].mxu1 }
 0x220   :  { %v6319_v41 = vpop.f32.mrb[13].mxu0  ;;  %v792_v42 = vadd.f32 %v791_v40, %v743_v38  ;;  %v6841_v44 = vpop.f32.mrb[6].mxu1  ;;  %v950_v40 = vand.u32 7, %v7946_v21 }
 0x221   :  { %v6320_v43 = vadd.f32 %v6319_v41, %v6318_v37  ;;  %v6321_v45 = vpop.f32.mrb[14].mxu0  ;;  %v794_v47 = vpop.f32.mrb[7].mxu1  ;;  %v957_v41 = vand.u32 7, %v7971_v20  ;;  %v7466_v20 = vld [vmem:[#allocation6 + $0x388] sm:$0xff]  }
 0x222   :  { %v6322_v48 = vpop.f32.mrb[15].mxu0  ;;  %v806_v49 = vmax.f32 %v792_v42, 0.0  ;;  %v795_v51 = vadd.f32 %v794_v47, %v746_v46  ;;  %vm8022_vm11 = vcmp.ne.s32.totalorder %v950_v40, 0  ;;  %vm6249_vm14 = vcmp.ne.s32.totalorder %v950_v40, 7  ;;  %v7467_v40 = vld [vmem:[#allocation6 + $0x390] sm:$0xff]   ;;  %v7469_v42 = vld [vmem:[#allocation6 + $0x3a0] sm:$0xff]  }
 0x223   :  { %v751_v50 = vadd.f32 %v6320_v43, %v5718_v35  ;;  %v6323_v52 = vadd.f32 %v6322_v48, %v6321_v45  ;;  %vm8016_vm10 = vcmp.ne.s32.totalorder %v957_v41, 0  ;;  %vm6248_vm13 = vcmp.ne.s32.totalorder %v957_v41, 7  ;;  %v7468_v41 = vld [vmem:[#allocation6 + $0x398] sm:$0xff]   ;;  %v7470_v43 = vld [vmem:[#allocation6 + $0x3a8] sm:$0xff]  }
 0x224   :  { %v807_v54 = vmax.f32 %v795_v51, 0.0  ;;  %v810_v57 = vmin.f32 %v806_v49, 6.0  ;;  %vm5795_vm12 = vmpackc.low %vm8016_vm10, %vm8022_vm11 }
 0x225   :  { %v800_v53 = vadd.f32 %v6840_v36, %v751_v50  ;;  %v754_v55 = vadd.f32 %v6323_v52, %v5718_v35  ;;  %v7433_v52 = vld [vmem:[#allocation6 + $0x280] sm:$0xff]   ;;  %vm5839_vm15 = vmpackc.low %vm6248_vm13, %vm6249_vm14 }
 0x226   :  { %v811_v59 = vmin.f32 %v807_v54, 6.0  ;;  %v7434_v54 = vld [vmem:[#allocation6 + $0x288] sm:$0xff]  }
 0x227   :  { %v808_v58 = vmax.f32 %v800_v53, 0.0  ;;  %v803_v60 = vadd.f32 %v6841_v44, %v754_v55  ;;  %v7435_v55 = vld [vmem:[#allocation6 + $0x290] sm:$0xff]  }
 0x228   :  { %v814_v61 = vpack.c.bf16 %v811_v59, %v810_v57  ;;  %v7436_v57 = vld [vmem:[#allocation6 + $0x298] sm:$0xff]   ;;  %v7438_v59 = vld [vmem:[#allocation6 + $0x2a8] sm:$0xff]  }
 0x229   :  { %v809_v62 = vmax.f32 %v803_v60, 0.0  ;;  %v812_v63 = vmin.f32 %v808_v58, 6.0  ;;  %v7437_v58 = vld [vmem:[#allocation6 + $0x2a0] sm:$0xff]   ;;  %v7439_v60 = vld [vmem:[#allocation6 + $0x2b0] sm:$0xff]  }
 0x22a   :  { %6858 = vmatprep.mubr.bf16.mxu0 %v814_v61  ;;  %v7440_v61 = vld [vmem:[#allocation6 + $0x2b8] sm:$0xff]  }
 0x22b   :  { %v813_v0 = vmin.f32 %v809_v62, 6.0  ;;  %v7441_v62 = vld [vmem:[#allocation6 + $0x300] sm:$0xff]  }
 0x22d   :  { %v815_v2 = vpack.c.bf16 %v813_v0, %v812_v63  ;;  %v7443_v63 = vld [vmem:[#allocation6 + $0x2c0] sm:$0xff]   ;;  %v7444_v0 = vld [vmem:[#allocation6 + $0x308] sm:$0xff]  }
 0x22f   :  { %6859 = vmatmul.mubr.bf16.vlgmr.msra.gmra.mrb[16].mxu0 %v815_v2  ;;  %v7447_v2 = vld [vmem:[#allocation6 + $0x310] sm:$0xff]  }
 0x230   :  { %6863 = vmatpush3.bf16.msra.mxu0 %v7410_v1  ;;  %6878 = vmatprep.mubr.msk.bf16.mxu0 %vm7887_vm9, %v7999_v56  ;;  %v7446_v1 = vld [vmem:[#allocation6 + $0x2c8] sm:$0xff]  }
 0x231   :  { %6864 = vmatprep.subr.bf16.mxu0 %v7999_v56 }
 0x234   :  { %6865 = vmatpush3.bf16.msra.mxu0 %v7413_v3  ;;  %v7449_v3 = vld [vmem:[#allocation6 + $0x2d0] sm:$0xff]  }
 0x235   :  { %6866 = vmatprep.subr.bf16.mxu0 %v7999_v56 }
 0x238   :  { %6867 = vmatpush3.bf16.msra.mxu0 %v7416_v4 }
 0x239   :  { %6868 = vmatprep.subr.bf16.mxu0 %v7999_v56 }
 0x23c   :  { %6869 = vmatpush3.bf16.msra.mxu0 %v7419_v6 }
 0x23d   :  { %6870 = vmatprep.subr.bf16.mxu0 %v7999_v56 }
 0x240   :  { %6871 = vmatpush3.bf16.msra.mxu0 %v7422_v9 }
 0x241   :  { %6872 = vmatprep.subr.bf16.mxu0 %v7999_v56 }
 0x244   :  { %6873 = vmatpush3.bf16.msra.mxu0 %v7425_v12 }
 0x245   :  { %6874 = vmatprep.subr.bf16.mxu0 %v7999_v56 }
 0x248   :  { %6875 = vmatpush3.bf16.msra.mxu0 %v7428_v39 }
 0x249   :  { %6876 = vmatprep.subr.bf16.mxu0 %v7999_v56 }
 0x24c   :  { %6877 = vmatpush3.bf16.msra.mxu0 %v7431_v18 }
 0x24d   :  { %6384 = vmatprep.subr.bf16.mxu0 %v7441_v62 }
 0x302   :  { %v6860_v23 = vpop.f32.mrb[16].mxu0 }
 0x303   :  { %v928_v24 = vadd.f32 %v6860_v23, %v5759_v22  ;;  %v919_v25 = vpop.f32.mrb[17].mxu0 }
 0x304   :  { %v920_v26 = vadd.f32 %v5759_v22, %v919_v25  ;;  %v6861_v27 = vpop.f32.mrb[18].mxu0  ;;  %v7442_v25 = vld [vmem:[#allocation6 + $0x340] sm:$0xff]  }
 0x305   :  { %v936_v28 = vmax.f32 %v928_v24, 0.0  ;;  %v931_v29 = vadd.f32 %v6861_v27, %v5759_v22  ;;  %v922_v30 = vpop.f32.mrb[19].mxu0  ;;  %v7445_v27 = vld [vmem:[#allocation6 + $0x348] sm:$0xff]  }
 0x306   :  { %v934_v31 = vmax.f32 %v920_v26, 0.0  ;;  %v923_v32 = vadd.f32 %v5759_v22, %v922_v30  ;;  %v7451_v30 = vld [vmem:[#allocation6 + $0x358] sm:$0xff]  }
 0x307   :  { %v940_v33 = vmin.f32 %v936_v28, 6.0  ;;  %v937_v34 = vmax.f32 %v931_v29, 0.0  ;;  %v7448_v28 = vld [vmem:[#allocation6 + $0x350] sm:$0xff]   ;;  %v7450_v29 = vld [vmem:[#allocation6 + $0x318] sm:$0xff]  }
 0x308   :  { %v938_v35 = vmin.f32 %v934_v31, 6.0  ;;  %v935_v36 = vmax.f32 %v923_v32, 0.0  ;;  %v7452_v31 = vld [vmem:[#allocation6 + $0x2d8] sm:$0xff]   ;;  %v7453_v32 = vld [vmem:[#allocation6 + $0x320] sm:$0xff]  }
 0x309   :  { %944 = vst [vmem:[#allocation2 + $0x18] sm:$0xff] %v940_v33  ;;  %v941_v37 = vmin.f32 %v937_v34, 6.0  ;;  %v7454_v33 = vld [vmem:[#allocation6 + $0x360] sm:$0xff]  }
 0x30a   :  { %942 = vst [vmem:[#allocation2 + $0x8] sm:$0xff] %v938_v35  ;;  %v939_v38 = vmin.f32 %v935_v36, 6.0  ;;  %v7455_v34 = vld [vmem:[#allocation6 + $0x2e0] sm:$0xff]   ;;  %v7456_v35 = vld [vmem:[#allocation6 + $0x328] sm:$0xff]  }
 0x30b   :  { %945 = vst [vmem:[#allocation2 + $0x20] sm:$0xff] %v941_v37  ;;  %v7457_v36 = vld [vmem:[#allocation6 + $0x368] sm:$0xff]  }
 0x30c   :  { %943 = vst [vmem:[#allocation2 + $0x10] sm:$0xff] %v939_v38  ;;  %v7458_v37 = vld [vmem:[#allocation6 + $0x2e8] sm:$0xff]   ;;  %v7459_v38 = vld [vmem:[#allocation6 + $0x330] sm:$0xff]  }
 0x312   :  { %v978_v44 = vld [vmem:[#allocation2 + $0x18] ss:$2 sm:$0xff]  ;;  %v981_v45 = vld [vmem:[#allocation2 + $0x19] ss:$2 sm:$0xff] }
 0x313   :  { %v977_v46 = vld [vmem:[#allocation2 + $0x8] ss:$2 sm:$0xff]  ;;  %v980_v47 = vld [vmem:[#allocation2 + $0x9] ss:$2 sm:$0xff] }
 0x314   :  { %v970_v48 = vld [vmem:[#allocation2 + $0x7] ss:$2 sm:$0xff]  ;;  %v979_v49 = vpack.c.bf16 %v978_v44, %v977_v46  ;;  %v982_v50 = vpack.c.bf16 %v981_v45, %v980_v47  ;;  %v971_v51 = vld [vmem:[#allocation2 + $0x17] ss:$2 sm:$0xff] }
 0x315   :  { %v5796_v53 = vpack.c.bf16 %v971_v51, %v970_v48  ;;  %v7460_v44 = vld [vmem:[#allocation6 + $0x370] sm:$0xff]   ;;  %v7462_v46 = vld [vmem:[#allocation6 + $0x338] sm:$0xff]  }
 0x316   :  { %1212 = vmatprep.mubr.bf16.mxu1 %v979_v49  ;;  %6879 = vmatmul.mubr.bf16.vlgmr.msra.gmra.mrb[20].mxu0 %v982_v50  ;;  %v7461_v45 = vld [vmem:[#allocation6 + $0x2f0] sm:$0xff]   ;;  %v7463_v47 = vld [vmem:[#allocation6 + $0x378] sm:$0xff]   ;;  %v5798_v49 = vld [vmem:[#allocation8 + $0x4] ss:$0 sm:$0xff] }
 0x317   :  { %5797 = vmatmul.mubr.msk.bf16.vlgmr.msra.gmra.mrb[8].mxu1 %vm5795_vm12, %v5796_v53  ;;  %6385 = vmatpush3.bf16.msra.mxu0 %v7443_v63  ;;  %v7464_v48 = vld [vmem:[#allocation6 + $0x2f8] sm:$0xff]   ;;  %v7465_v63 = vld [vmem:[#allocation6 + $0x380] sm:$0xff]  }
 0x318   :  { %6883 = vmatpush3.bf16.msra.mxu1 %v7433_v52  ;;  %6898 = vmatprep.mubr.msk.bf16.mxu1 %vm7887_vm9, %v7999_v56 }
 0x319   :  { %6884 = vmatprep.subr.bf16.mxu1 %v7999_v56  ;;  %6386 = vmatprep.subr.bf16.mxu0 %v7444_v0 }
 0x31b   :  { %6387 = vmatpush3.bf16.msra.mxu0 %v7446_v1 }
 0x31c   :  { %6885 = vmatpush3.bf16.msra.mxu1 %v7434_v54  ;;  %6388 = vmatprep.subr.bf16.mxu0 %v7447_v2 }
 0x31d   :  { %6886 = vmatprep.subr.bf16.mxu1 %v7999_v56 }
 0x31f   :  { %6389 = vmatpush3.bf16.msra.mxu0 %v7449_v3 }
 0x320   :  { %6887 = vmatpush3.bf16.msra.mxu1 %v7435_v55  ;;  %6390 = vmatprep.subr.bf16.mxu0 %v7450_v29 }
 0x321   :  { %6888 = vmatprep.subr.bf16.mxu1 %v7999_v56 }
 0x323   :  { %6391 = vmatpush3.bf16.msra.mxu0 %v7452_v31 }
 0x324   :  { %6889 = vmatpush3.bf16.msra.mxu1 %v7436_v57  ;;  %6392 = vmatprep.subr.bf16.mxu0 %v7453_v32 }
 0x325   :  { %6890 = vmatprep.subr.bf16.mxu1 %v7999_v56 }
 0x327   :  { %6393 = vmatpush3.bf16.msra.mxu0 %v7455_v34  ;;  %v7474_v34 = vld [vmem:[#allocation6 + $0x440] sm:$0xff]  }
 0x328   :  { %6891 = vmatpush3.bf16.msra.mxu1 %v7437_v58  ;;  %6394 = vmatprep.subr.bf16.mxu0 %v7456_v35 }
 0x329   :  { %6892 = vmatprep.subr.bf16.mxu1 %v7999_v56 }
 0x32b   :  { %6395 = vmatpush3.bf16.msra.mxu0 %v7458_v37  ;;  %v7480_v37 = vld [vmem:[#allocation6 + $0x450] sm:$0xff]  }
 0x32c   :  { %6893 = vmatpush3.bf16.msra.mxu1 %v7438_v59  ;;  %6396 = vmatprep.subr.bf16.mxu0 %v7459_v38  ;;  %v7482_v38 = vld [vmem:[#allocation6 + $0x418] sm:$0xff]  }
 0x32d   :  { %6894 = vmatprep.subr.bf16.mxu1 %v7999_v56 }
 0x32f   :  { %6397 = vmatpush3.bf16.msra.mxu0 %v7461_v45  ;;  %v7484_v45 = vld [vmem:[#allocation6 + $0x3d8] sm:$0xff]  }
 0x330   :  { %6895 = vmatpush3.bf16.msra.mxu1 %v7439_v60  ;;  %6398 = vmatprep.subr.bf16.mxu0 %v7462_v46  ;;  %v7485_v46 = vld [vmem:[#allocation6 + $0x420] sm:$0xff]  }
 0x331   :  { %6896 = vmatprep.subr.bf16.mxu1 %v7999_v56 }
 0x333   :  { %6399 = vmatpush3.bf16.msra.mxu0 %v7464_v48  ;;  %v7487_v48 = vld [vmem:[#allocation6 + $0x3e0] sm:$0xff]  }
 0x334   :  { %6897 = vmatpush3.bf16.msra.mxu1 %v7440_v61  ;;  %6922 = vmatprep.subr.bf16.mxu0 %v7999_v56 }
 0x335   :  { %6902 = vmatprep.subr.bf16.mxu1 %v7999_v56 }
 0x3e9   :  { %v1255_v4 = vpop.f32.mrb[20].mxu0 }
 0x3ea   :  { %v6360_v5 = vpop.f32.mrb[8].mxu1  ;;  %v6880_v6 = vpop.f32.mrb[21].mxu0 }
 0x3eb   :  { %v6361_v8 = vpop.f32.mrb[9].mxu1  ;;  %v1258_v9 = vpop.f32.mrb[22].mxu0  ;;  %v7472_v6 = vld [vmem:[#allocation6 + $0x3b8] sm:$0xff]  }
 0x3ec   :  { %v6362_v10 = vadd.f32 %v6361_v8, %v6360_v5  ;;  %v6363_v11 = vpop.f32.mrb[10].mxu1  ;;  %v6881_v12 = vpop.f32.mrb[23].mxu0  ;;  %v7471_v5 = vld [vmem:[#allocation6 + $0x3b0] sm:$0xff]   ;;  %v7475_v8 = vld [vmem:[#allocation6 + $0x3c0] sm:$0xff]  }
 0x3ed   :  { %v6364_v13 = vpop.f32.mrb[11].mxu1  ;;  %v7481_v12 = vld [vmem:[#allocation6 + $0x3d0] sm:$0xff]  }
 0x3ee   :  { %v1215_v14 = vadd.f32 %v6362_v10, %v5768_v7  ;;  %v6365_v39 = vadd.f32 %v6364_v13, %v6363_v11  ;;  %v7478_v10 = vld [vmem:[#allocation6 + $0x3c8] sm:$0xff]   ;;  %v7479_v11 = vld [vmem:[#allocation6 + $0x410] sm:$0xff]  }
 0x3f0   :  { %v1256_v15 = vadd.f32 %v1255_v4, %v1215_v14  ;;  %v1218_v16 = vadd.f32 %v6365_v39, %v5768_v7  ;;  %v7473_v7 = vld [vmem:[#allocation6 + $0x400] sm:$0xff]  }
 0x3f2   :  { %v1262_v18 = vmax.f32 %v1256_v15, 0.0  ;;  %v1259_v19 = vadd.f32 %v1258_v9, %v1218_v16  ;;  %v7476_v9 = vld [vmem:[#allocation6 + $0x408] sm:$0xff]   ;;  %v5807_v15 = vld [vmem:[#allocation8 + $0x5] ss:$0 sm:$0xff] }
 0x3f4   :  { %v1263_v22 = vmax.f32 %v1259_v19, 0.0  ;;  %v1264_v23 = vmin.f32 %v1262_v18, 6.0 }
 0x3f6   :  { %v1265_v24 = vmin.f32 %v1263_v22, 6.0 }
 0x3f8   :  { %v1266_v26 = vpack.c.bf16 %v1265_v24, %v1264_v23 }
 0x3fa   :  { %6899 = vmatmul.mubr.bf16.vlgmr.msra.gmra.mrb[12].mxu1 %v1266_v26 }
 0x3fb   :  { %6903 = vmatpush3.bf16.msra.mxu1 %v7442_v25  ;;  %6918 = vmatprep.mubr.msk.bf16.mxu1 %vm7887_vm9, %v7999_v56 }
 0x3fc   :  { %6904 = vmatprep.subr.bf16.mxu1 %v7999_v56 }
 0x3ff   :  { %6905 = vmatpush3.bf16.msra.mxu1 %v7445_v27 }
 0x400   :  { %6906 = vmatprep.subr.bf16.mxu1 %v7999_v56 }
 0x403   :  { %6907 = vmatpush3.bf16.msra.mxu1 %v7448_v28 }
 0x404   :  { %6908 = vmatprep.subr.bf16.mxu1 %v7999_v56 }
 0x407   :  { %6909 = vmatpush3.bf16.msra.mxu1 %v7451_v30 }
 0x408   :  { %6910 = vmatprep.subr.bf16.mxu1 %v7999_v56 }
 0x40b   :  { %6911 = vmatpush3.bf16.msra.mxu1 %v7454_v33 }
 0x40c   :  { %6912 = vmatprep.subr.bf16.mxu1 %v7999_v56 }
 0x40f   :  { %6913 = vmatpush3.bf16.msra.mxu1 %v7457_v36  ;;  %v7477_v36 = vld [vmem:[#allocation6 + $0x448] sm:$0xff]  }
 0x410   :  { %6914 = vmatprep.subr.bf16.mxu1 %v7999_v56 }
 0x413   :  { %6915 = vmatpush3.bf16.msra.mxu1 %v7460_v44  ;;  %v7483_v44 = vld [vmem:[#allocation6 + $0x458] sm:$0xff]  }
 0x414   :  { %6916 = vmatprep.subr.bf16.mxu1 %v7999_v56 }
 0x417   :  { %6917 = vmatpush3.bf16.msra.mxu1 %v7463_v47  ;;  %v7486_v47 = vld [vmem:[#allocation6 + $0x460] sm:$0xff]  }
 0x418   :  { %6424 = vmatprep.subr.bf16.mxu1 %v7473_v7 }
 0x4cd   :  { %v1370_v50 = vpop.f32.mrb[12].mxu1 }
 0x4ce   :  { %v1371_v51 = vadd.f32 %v5798_v49, %v1370_v50  ;;  %v6900_v52 = vpop.f32.mrb[13].mxu1  ;;  %v7489_v50 = vld [vmem:[#allocation6 + $0x468] sm:$0xff]  }
 0x4cf   :  { %v1373_v53 = vpop.f32.mrb[14].mxu1  ;;  %v7491_v52 = vld [vmem:[#allocation6 + $0x430] sm:$0xff]  }
 0x4d0   :  { %v1377_v54 = vmax.f32 %v1371_v51, 0.0  ;;  %v1374_v55 = vadd.f32 %v5798_v49, %v1373_v53  ;;  %v6901_v57 = vpop.f32.mrb[15].mxu1  ;;  %v7488_v49 = vld [vmem:[#allocation6 + $0x428] sm:$0xff]   ;;  %v7492_v53 = vld [vmem:[#allocation6 + $0x470] sm:$0xff]  }
 0x4d1   :  { %v7490_v51 = vld [vmem:[#allocation6 + $0x3e8] sm:$0xff]   ;;  %v7495_v57 = vld [vmem:[#allocation6 + $0x478] sm:$0xff]  }
 0x4d2   :  { %v1379_v58 = vmin.f32 %v1377_v54, 6.0  ;;  %v1378_v59 = vmax.f32 %v1374_v55, 0.0  ;;  %v7493_v54 = vld [vmem:[#allocation6 + $0x3f0] sm:$0xff]   ;;  %v7494_v55 = vld [vmem:[#allocation6 + $0x438] sm:$0xff]  }
 0x4d4   :  { %1381 = vst [vmem:[#allocation2 + $0x8] sm:$0xff] %v1379_v58  ;;  %v1380_v60 = vmin.f32 %v1378_v59, 6.0  ;;  %v5842_v59 = vld [vmem:[#allocation8 + $0x6] ss:$0 sm:$0xff] }
 0x4d6   :  { %1382 = vst [vmem:[#allocation2 + $0x10] sm:$0xff] %v1380_v60  ;;  %v1390_v61 = vpack.c.bf16 %v1380_v60, %v1379_v58  ;;  %v7496_v58 = vld [vmem:[#allocation6 + $0x3f8] sm:$0xff]  }
 0x4d8   :  { %1627 = vmatprep.mubr.bf16.mxu0 %v1390_v61 }
 0x4db   :  { %v1383_v62 = vld [vmem:[#allocation2 + $0x7] sm:$0xff] }
 0x4dd   :  { %v1391_v0 = vld [vmem:[#allocation2 + $0x9] sm:$0xff]  ;;  %v1392_v1 = vld [vmem:[#allocation2 + $0x11] sm:$0xff] }
 0x4de   :  { %v1384_v2 = vld [vmem:[#allocation2 + $0xf] sm:$0xff]  ;;  %v5840_v3 = vpack.c.bf16 %v1392_v1, %v1391_v0 }
 0x4df   :  { %v5835_v4 = vpack.c.bf16 %v1384_v2, %v1383_v62 }
 0x4e0   :  { %6919 = vmatmul.mubr.msk.bf16.vlgmr.msra.gmra.mrb[16].mxu1 %vm5839_vm15, %v5840_v3 }
 0x4e1   :  { %5836 = vmatmul.mubr.msk.bf16.vlgmr.msra.gmra.mrb[24].mxu0 %vm5795_vm12, %v5835_v4  ;;  %6425 = vmatpush3.bf16.msra.mxu1 %v7475_v8 }
 0x4e2   :  { %6923 = vmatpush3.bf16.msra.mxu0 %v7465_v63  ;;  %6938 = vmatprep.mubr.msk.bf16.mxu0 %vm7887_vm9, %v7999_v56 }
 0x4e3   :  { %6924 = vmatprep.subr.bf16.mxu0 %v7999_v56  ;;  %6426 = vmatprep.subr.bf16.mxu1 %v7476_v9  ;;  %v7497_v9 = vld [vmem:[#allocation6 + $0x480] sm:$0xff]  }
 0x4e5   :  { %6427 = vmatpush3.bf16.msra.mxu1 %v7478_v10  ;;  %v7498_v10 = vld [vmem:[#allocation6 + $0x488] sm:$0xff]  }
 0x4e6   :  { %6925 = vmatpush3.bf16.msra.mxu0 %v7466_v20  ;;  %6428 = vmatprep.subr.bf16.mxu1 %v7479_v11  ;;  %v7499_v11 = vld [vmem:[#allocation6 + $0x490] sm:$0xff]  }
 0x4e7   :  { %6926 = vmatprep.subr.bf16.mxu0 %v7999_v56 }
 0x4e9   :  { %6429 = vmatpush3.bf16.msra.mxu1 %v7481_v12  ;;  %v7500_v12 = vld [vmem:[#allocation6 + $0x498] sm:$0xff]  }
 0x4ea   :  { %6927 = vmatpush3.bf16.msra.mxu0 %v7467_v40  ;;  %6430 = vmatprep.subr.bf16.mxu1 %v7482_v38  ;;  %v1802_v40 = vand.u32 3, %v7946_v21 }
 0x4eb   :  { %6928 = vmatprep.subr.bf16.mxu0 %v7999_v56 }
 0x4ec   :  { %vm8087_vm0 = vcmp.ne.s32.totalorder %v1802_v40, 0  ;;  %vm6255_vm2 = vcmp.ne.s32.totalorder %v1802_v40, 3  ;;  %v7531_v40 = vld [vmem:[#allocation6 + $0x590] sm:$0xff]  }
 0x4ed   :  { %6431 = vmatpush3.bf16.msra.mxu1 %v7484_v45  ;;  %vm5878_vm1 = vmpackc.low %vm8087_vm0, %vm8087_vm0 }
 0x4ee   :  { %6929 = vmatpush3.bf16.msra.mxu0 %v7468_v41  ;;  %6432 = vmatprep.subr.bf16.mxu1 %v7485_v46  ;;  %v7506_v46 = vld [vmem:[#allocation6 + $0x540] sm:$0xff]   ;;  %vm5922_vm3 = vmpackc.low %vm6255_vm2, %vm6255_vm2 }
 0x4ef   :  { %6930 = vmatprep.subr.bf16.mxu0 %v7999_v56  ;;  %v7533_v41 = vld [vmem:[#allocation6 + $0x5a0] sm:$0xff]  }
 0x4f1   :  { %6433 = vmatpush3.bf16.msra.mxu1 %v7487_v48  ;;  %v7509_v48 = vld [vmem:[#allocation6 + $0x548] sm:$0xff]  }
 0x4f2   :  { %6931 = vmatpush3.bf16.msra.mxu0 %v7469_v42  ;;  %6434 = vmatprep.subr.bf16.mxu1 %v7488_v49  ;;  %v7512_v49 = vld [vmem:[#allocation6 + $0x550] sm:$0xff]  }
 0x4f3   :  { %6932 = vmatprep.subr.bf16.mxu0 %v7999_v56 }
 0x4f5   :  { %6435 = vmatpush3.bf16.msra.mxu1 %v7490_v51  ;;  %v7517_v51 = vld [vmem:[#allocation6 + $0x520] sm:$0xff]  }
 0x4f6   :  { %6933 = vmatpush3.bf16.msra.mxu0 %v7470_v43  ;;  %6436 = vmatprep.subr.bf16.mxu1 %v7491_v52  ;;  %v7518_v52 = vld [vmem:[#allocation6 + $0x560] sm:$0xff]  }
 0x4f7   :  { %6934 = vmatprep.subr.bf16.mxu0 %v7999_v56 }
 0x4f9   :  { %6437 = vmatpush3.bf16.msra.mxu1 %v7493_v54  ;;  %v7520_v54 = vld [vmem:[#allocation6 + $0x528] sm:$0xff]  }
 0x4fa   :  { %6935 = vmatpush3.bf16.msra.mxu0 %v7471_v5  ;;  %6438 = vmatprep.subr.bf16.mxu1 %v7494_v55  ;;  %v7521_v55 = vld [vmem:[#allocation6 + $0x568] sm:$0xff]  }
 0x4fb   :  { %6936 = vmatprep.subr.bf16.mxu0 %v7999_v56 }
 0x4fd   :  { %6439 = vmatpush3.bf16.msra.mxu1 %v7496_v58  ;;  %v7523_v58 = vld [vmem:[#allocation6 + $0x530] sm:$0xff]  }
 0x4fe   :  { %6937 = vmatpush3.bf16.msra.mxu0 %v7472_v6  ;;  %6962 = vmatprep.subr.bf16.mxu1 %v7999_v56 }
 0x4ff   :  { %6942 = vmatprep.subr.bf16.mxu0 %v7999_v56 }
 0x5b3   :  { %v1670_v13 = vpop.f32.mrb[16].mxu1 }
 0x5b4   :  { %v6400_v14 = vpop.f32.mrb[24].mxu0  ;;  %v6920_v39 = vpop.f32.mrb[17].mxu1 }
 0x5b5   :  { %v6401_v16 = vpop.f32.mrb[25].mxu0  ;;  %v1673_v19 = vpop.f32.mrb[18].mxu1  ;;  %v7503_v39 = vld [vmem:[#allocation6 + $0x4b0] sm:$0xff]  }
 0x5b6   :  { %v6402_v18 = vadd.f32 %v6401_v16, %v6400_v14  ;;  %v6403_v22 = vpop.f32.mrb[26].mxu0  ;;  %v6921_v23 = vpop.f32.mrb[19].mxu1  ;;  %v7502_v14 = vld [vmem:[#allocation6 + $0x4a8] sm:$0xff]   ;;  %v7505_v16 = vld [vmem:[#allocation6 + $0x500] sm:$0xff]  }
 0x5b7   :  { %v6404_v24 = vpop.f32.mrb[27].mxu0  ;;  %v7511_v23 = vld [vmem:[#allocation6 + $0x510] sm:$0xff]  }
 0x5b8   :  { %v1630_v25 = vadd.f32 %v6402_v18, %v5807_v15  ;;  %v6405_v26 = vadd.f32 %v6404_v24, %v6403_v22  ;;  %v7507_v18 = vld [vmem:[#allocation6 + $0x4c0] sm:$0xff]   ;;  %v7510_v22 = vld [vmem:[#allocation6 + $0x4c8] sm:$0xff]   ;;  %v7513_v24 = vld [vmem:[#allocation6 + $0x4d0] sm:$0xff]  }
 0x5ba   :  { %v1671_v27 = vadd.f32 %v1670_v13, %v1630_v25  ;;  %v1633_v28 = vadd.f32 %v6405_v26, %v5807_v15  ;;  %v7501_v13 = vld [vmem:[#allocation6 + $0x4a0] sm:$0xff]   ;;  %v7504_v15 = vld [vmem:[#allocation6 + $0x4b8] sm:$0xff]  }
 0x5bb   :  { %v7514_v25 = vld [vmem:[#allocation6 + $0x518] sm:$0xff]  }
 0x5bc   :  { %v1677_v29 = vmax.f32 %v1671_v27, 0.0  ;;  %v1674_v30 = vadd.f32 %v1673_v19, %v1633_v28  ;;  %v7508_v19 = vld [vmem:[#allocation6 + $0x508] sm:$0xff]   ;;  %v7516_v26 = vld [vmem:[#allocation6 + $0x4d8] sm:$0xff]  }
 0x5be   :  { %v1678_v31 = vmax.f32 %v1674_v30, 0.0  ;;  %v1679_v32 = vmin.f32 %v1677_v29, 6.0  ;;  %v5851_v30 = vld [vmem:[#allocation8 + $0x7] ss:$0 sm:$0xff] }
 0x5c0   :  { %v1680_v33 = vmin.f32 %v1678_v31, 6.0 }
 0x5c2   :  { %v1681_v35 = vpack.c.bf16 %v1680_v33, %v1679_v32 }
 0x5c4   :  { %6939 = vmatmul.mubr.bf16.vlgmr.msra.gmra.mrb[28].mxu0 %v1681_v35 }
 0x5c5   :  { %6943 = vmatpush3.bf16.msra.mxu0 %v7474_v34  ;;  %6958 = vmatprep.mubr.msk.bf16.mxu0 %vm7887_vm9, %v7999_v56 }
 0x5c6   :  { %6944 = vmatprep.subr.bf16.mxu0 %v7999_v56 }
 0x5c9   :  { %6945 = vmatpush3.bf16.msra.mxu0 %v7477_v36 }
 0x5ca   :  { %6946 = vmatprep.subr.bf16.mxu0 %v7999_v56 }
 0x5cd   :  { %6947 = vmatpush3.bf16.msra.mxu0 %v7480_v37 }
 0x5ce   :  { %6948 = vmatprep.subr.bf16.mxu0 %v7999_v56 }
 0x5d1   :  { %6949 = vmatpush3.bf16.msra.mxu0 %v7483_v44 }
 0x5d2   :  { %6950 = vmatprep.subr.bf16.mxu0 %v7999_v56 }
 0x5d5   :  { %6951 = vmatpush3.bf16.msra.mxu0 %v7486_v47 }
 0x5d6   :  { %6952 = vmatprep.subr.bf16.mxu0 %v7999_v56 }
 0x5d9   :  { %6953 = vmatpush3.bf16.msra.mxu0 %v7489_v50  ;;  %v7515_v50 = vld [vmem:[#allocation6 + $0x558] sm:$0xff]  }
 0x5da   :  { %6954 = vmatprep.subr.bf16.mxu0 %v7999_v56 }
 0x5dd   :  { %6955 = vmatpush3.bf16.msra.mxu0 %v7492_v53  ;;  %v7519_v53 = vld [vmem:[#allocation6 + $0x4e0] sm:$0xff]  }
 0x5de   :  { %6956 = vmatprep.subr.bf16.mxu0 %v7999_v56 }
 0x5e1   :  { %6957 = vmatpush3.bf16.msra.mxu0 %v7495_v57  ;;  %v7522_v57 = vld [vmem:[#allocation6 + $0x4e8] sm:$0xff]  }
 0x5e2   :  { %6464 = vmatprep.subr.bf16.mxu0 %v7505_v16  ;;  %v7539_v16 = vld [vmem:[#allocation6 + $0x5c0] sm:$0xff]  }
 0x697   :  { %v1785_v60 = vpop.f32.mrb[28].mxu0 }
 0x698   :  { %v1786_v61 = vadd.f32 %v5842_v59, %v1785_v60  ;;  %v6940_v62 = vpop.f32.mrb[29].mxu0  ;;  %v7525_v60 = vld [vmem:[#allocation6 + $0x4f0] sm:$0xff]  }
 0x699   :  { %v1788_v63 = vpop.f32.mrb[30].mxu0  ;;  %v7527_v62 = vld [vmem:[#allocation6 + $0x578] sm:$0xff]  }
 0x69a   :  { %v1792_v0 = vmax.f32 %v1786_v61, 0.0  ;;  %v1789_v1 = vadd.f32 %v5842_v59, %v1788_v63  ;;  %v6941_v2 = vpop.f32.mrb[31].mxu0  ;;  %v7524_v59 = vld [vmem:[#allocation6 + $0x570] sm:$0xff]   ;;  %v7526_v61 = vld [vmem:[#allocation6 + $0x538] sm:$0xff]  }
 0x69b   :  { %v7528_v63 = vld [vmem:[#allocation6 + $0x4f8] sm:$0xff]  }
 0x69c   :  { %v1794_v3 = vmin.f32 %v1792_v0, 6.0  ;;  %v1793_v4 = vmax.f32 %v1789_v1, 0.0  ;;  %v5881_v0 = vld [vmem:[#allocation8 + $0x8] ss:$0 sm:$0xff] }
 0x69e   :  { %1796 = vst [vmem:[#allocation2 + $0x8] sm:$0xff] %v1794_v3  ;;  %v1795_v20 = vmin.f32 %v1793_v4, 6.0 }
 0x6a0   :  { %1797 = vst [vmem:[#allocation2 + $0x10] sm:$0xff] %v1795_v20 }
 0x6a7   :  { %v1814_v42 = vld [vmem:[#allocation2 + $0x8] ss:$2 sm:$0xff]  ;;  %v1816_v43 = vld [vmem:[#allocation2 + $0x9] ss:$2 sm:$0xff] }
 0x6a8   :  { %v1810_v5 = vld [vmem:[#allocation2 + $0x7] ss:$2 sm:$0xff]  ;;  %v1815_v6 = vpack.c.bf16 %v1814_v42, %v1814_v42  ;;  %v1817_v7 = vpack.c.bf16 %v1816_v43, %v1816_v43 }
 0x6a9   :  { %v5879_v8 = vpack.c.bf16 %v1810_v5, %v1810_v5 }
 0x6aa   :  { %2047 = vmatprep.mubr.bf16.mxu1 %v1815_v6  ;;  %6959 = vmatmul.mubr.bf16.vlgmr.msra.gmra.mrb[32].mxu0 %v1817_v7 }
 0x6ab   :  { %5880 = vmatmul.mubr.msk.bf16.vlgmr.msra.gmra.mrb[20].mxu1 %vm5878_vm1, %v5879_v8  ;;  %6465 = vmatpush3.bf16.msra.mxu0 %v7507_v18  ;;  %v7529_v8 = vld [vmem:[#allocation6 + $0x580] sm:$0xff]   ;;  %v7540_v18 = vld [vmem:[#allocation6 + $0x608] sm:$0xff]  }
 0x6ac   :  { %6963 = vmatpush3.bf16.msra.mxu1 %v7497_v9  ;;  %6978 = vmatprep.mubr.msk.bf16.mxu1 %vm7887_vm9, %v7999_v56 }
 0x6ad   :  { %6964 = vmatprep.subr.bf16.mxu1 %v7999_v56  ;;  %6466 = vmatprep.subr.bf16.mxu0 %v7508_v19  ;;  %v7542_v19 = vld [vmem:[#allocation6 + $0x5c8] sm:$0xff]  }
 0x6af   :  { %6467 = vmatpush3.bf16.msra.mxu0 %v7510_v22  ;;  %v7543_v22 = vld [vmem:[#allocation6 + $0x610] sm:$0xff]  }
 0x6b0   :  { %6965 = vmatpush3.bf16.msra.mxu1 %v7498_v10  ;;  %6468 = vmatprep.subr.bf16.mxu0 %v7511_v23  ;;  %v7545_v23 = vld [vmem:[#allocation6 + $0x5d0] sm:$0xff]  }
 0x6b1   :  { %6966 = vmatprep.subr.bf16.mxu1 %v7999_v56 }
 0x6b3   :  { %6469 = vmatpush3.bf16.msra.mxu0 %v7513_v24  ;;  %v7546_v24 = vld [vmem:[#allocation6 + $0x618] sm:$0xff]  }
 0x6b4   :  { %6967 = vmatpush3.bf16.msra.mxu1 %v7499_v11  ;;  %6470 = vmatprep.subr.bf16.mxu0 %v7514_v25  ;;  %v7530_v11 = vld [vmem:[#allocation6 + $0x588] sm:$0xff]   ;;  %v7548_v25 = vld [vmem:[#allocation6 + $0x5d8] sm:$0xff]  }
 0x6b5   :  { %6968 = vmatprep.subr.bf16.mxu1 %v7999_v56 }
 0x6b7   :  { %6471 = vmatpush3.bf16.msra.mxu0 %v7516_v26 }
 0x6b8   :  { %6969 = vmatpush3.bf16.msra.mxu1 %v7500_v12  ;;  %6472 = vmatprep.subr.bf16.mxu0 %v7517_v51  ;;  %v8128_v12 = vld [vmem:[#allocation2 + $0x48] sm:$0xff]  ;;  %v7550_v51 = vld [vmem:[#allocation6 + $0x660] sm:$0xff]  }
 0x6b9   :  { %6970 = vmatprep.subr.bf16.mxu1 %v7999_v56 }
 0x6bb   :  { %6473 = vmatpush3.bf16.msra.mxu0 %v7519_v53  ;;  %v7552_v53 = vld [vmem:[#allocation6 + $0x628] sm:$0xff]  }
 0x6bc   :  { %6971 = vmatpush3.bf16.msra.mxu1 %v7501_v13  ;;  %6474 = vmatprep.subr.bf16.mxu0 %v7520_v54  ;;  %v7532_v13 = vld [vmem:[#allocation6 + $0x598] sm:$0xff]   ;;  %v7553_v54 = vld [vmem:[#allocation6 + $0x668] sm:$0xff]  }
 0x6bd   :  { %6972 = vmatprep.subr.bf16.mxu1 %v7999_v56 }
 0x6bf   :  { %6475 = vmatpush3.bf16.msra.mxu0 %v7522_v57  ;;  %v7555_v57 = vld [vmem:[#allocation6 + $0x630] sm:$0xff]  }
 0x6c0   :  { %6973 = vmatpush3.bf16.msra.mxu1 %v7502_v14  ;;  %6476 = vmatprep.subr.bf16.mxu0 %v7523_v58  ;;  %v7535_v14 = vld [vmem:[#allocation6 + $0x5b0] sm:$0xff]  }
 0x6c1   :  { %6974 = vmatprep.subr.bf16.mxu1 %v7999_v56  ;;  %v7556_v58 = vld [vmem:[#allocation6 + $0x670] sm:$0xff]  }
 0x6c3   :  { %6477 = vmatpush3.bf16.msra.mxu0 %v7525_v60  ;;  %v7558_v60 = vld [vmem:[#allocation6 + $0x638] sm:$0xff]  }
 0x6c4   :  { %6975 = vmatpush3.bf16.msra.mxu1 %v7503_v39  ;;  %6478 = vmatprep.subr.bf16.mxu0 %v7526_v61  ;;  %v7536_v39 = vld [vmem:[#allocation6 + $0x5b8] sm:$0xff]  }
 0x6c5   :  { %6976 = vmatprep.subr.bf16.mxu1 %v7999_v56  ;;  %v7559_v61 = vld [vmem:[#allocation6 + $0x678] sm:$0xff]  }
 0x6c7   :  { %6479 = vmatpush3.bf16.msra.mxu0 %v7528_v63  ;;  %v5925_v63 = vld [vmem:[#allocation8 + $0xa] ss:$0 sm:$0xff] }
 0x6c8   :  { %6977 = vmatpush3.bf16.msra.mxu1 %v7504_v15  ;;  %7002 = vmatprep.subr.bf16.mxu0 %v7999_v56  ;;  %v7537_v15 = vld [vmem:[#allocation6 + $0x600] sm:$0xff]  }
 0x6c9   :  { %6982 = vmatprep.subr.bf16.mxu1 %v7999_v56 }
 0x77d   :  { %v2089_v27 = vpop.f32.mrb[32].mxu0 }
 0x77e   :  { %v6440_v28 = vpop.f32.mrb[20].mxu1  ;;  %v6960_v29 = vpop.f32.mrb[33].mxu0 }
 0x77f   :  { %v6441_v31 = vpop.f32.mrb[21].mxu1  ;;  %v2092_v32 = vpop.f32.mrb[34].mxu0  ;;  %v5890_v29 = vld [vmem:[#allocation8 + $0x9] ss:$0 sm:$0xff] }
 0x780   :  { %v6442_v33 = vadd.f32 %v6441_v31, %v6440_v28  ;;  %v6443_v34 = vpop.f32.mrb[22].mxu1  ;;  %v6961_v35 = vpop.f32.mrb[35].mxu0 }
 0x781   :  { %v6444_v36 = vpop.f32.mrb[23].mxu1 }
 0x782   :  { %v2050_v37 = vadd.f32 %v6442_v33, %v5851_v30 }
 0x784   :  { %v2090_v38 = vadd.f32 %v2089_v27, %v2050_v37 }
 0x786   :  { %v2095_v44 = vmax.f32 %v2090_v38, 0.0 }
 0x788   :  { %v2096_v45 = vmin.f32 %v2095_v44, 6.0 }
 0x78a   :  { %v2097_v47 = vpack.c.bf16 %v2096_v45, %v2096_v45  ;;  %v7538_v45 = vld [vmem:[#allocation6 + $0x640] sm:$0xff]  }
 0x78c   :  { %6979 = vmatmul.mubr.bf16.vlgmr.msra.gmra.mrb[24].mxu1 %v2097_v47  ;;  %v7541_v47 = vld [vmem:[#allocation6 + $0x648] sm:$0xff]  }
 0x78d   :  { %6983 = vmatpush3.bf16.msra.mxu1 %v7506_v46  ;;  %6998 = vmatprep.mubr.msk.bf16.mxu1 %vm7887_vm9, %v7999_v56 }
 0x78e   :  { %6984 = vmatprep.subr.bf16.mxu1 %v7999_v56 }
 0x791   :  { %6985 = vmatpush3.bf16.msra.mxu1 %v7509_v48  ;;  %v7544_v48 = vld [vmem:[#allocation6 + $0x650] sm:$0xff]  }
 0x792   :  { %6986 = vmatprep.subr.bf16.mxu1 %v7999_v56 }
 0x795   :  { %6987 = vmatpush3.bf16.msra.mxu1 %v7512_v49  ;;  %v7547_v49 = vld [vmem:[#allocation6 + $0x658] sm:$0xff]  }
 0x796   :  { %6988 = vmatprep.subr.bf16.mxu1 %v7999_v56 }
 0x799   :  { %6989 = vmatpush3.bf16.msra.mxu1 %v7515_v50  ;;  %v7549_v50 = vld [vmem:[#allocation6 + $0x620] sm:$0xff]  }
 0x79a   :  { %6990 = vmatprep.subr.bf16.mxu1 %v7999_v56 }
 0x79d   :  { %6991 = vmatpush3.bf16.msra.mxu1 %v7518_v52  ;;  %v7551_v52 = vld [vmem:[#allocation6 + $0x5e0] sm:$0xff]  }
 0x79e   :  { %6992 = vmatprep.subr.bf16.mxu1 %v7999_v56 }
 0x7a1   :  { %6993 = vmatpush3.bf16.msra.mxu1 %v7521_v55  ;;  %v7554_v55 = vld [vmem:[#allocation6 + $0x5e8] sm:$0xff]  }
 0x7a2   :  { %6994 = vmatprep.subr.bf16.mxu1 %v7999_v56 }
 0x7a5   :  { %6995 = vmatpush3.bf16.msra.mxu1 %v7524_v59  ;;  %v7557_v59 = vld [vmem:[#allocation6 + $0x5f0] sm:$0xff]  }
 0x7a6   :  { %6996 = vmatprep.subr.bf16.mxu1 %v7999_v56 }
 0x7a9   :  { %6997 = vmatpush3.bf16.msra.mxu1 %v7527_v62  ;;  %v7560_v62 = vld [vmem:[#allocation6 + $0x5f8] sm:$0xff]  }
 0x7aa   :  { %6504 = vmatprep.subr.bf16.mxu1 %v7537_v15  ;;  %v7567_v15 = vld [vmem:[#allocation6 + $0x6b0] sm:$0xff]  }
 0x85f   :  { %v2201_v1 = vpop.f32.mrb[24].mxu1 }
 0x860   :  { %v2202_v2 = vadd.f32 %v5881_v0, %v2201_v1  ;;  %v6980_v3 = vpop.f32.mrb[25].mxu1 }
 0x861   :  { %v2204_v4 = vpop.f32.mrb[26].mxu1 }
 0x862   :  { %v2207_v20 = vmax.f32 %v2202_v2, 0.0  ;;  %v6981_v42 = vpop.f32.mrb[27].mxu1 }
 0x864   :  { %v2208_v43 = vmin.f32 %v2207_v20, 6.0 }
 0x866   :  { %2209 = vst [vmem:[#allocation2 + $0x8] sm:$0xff] %v2208_v43  ;;  %v2214_v5 = vpack.c.bf16 %v2208_v43, %v2208_v43  ;;  %v2615_v43 = vand.u32 1, %v7946_v21  ;;  %v7594_v21 = vld [vmem:[#allocation6 + $0x788] sm:$0xff]  }
 0x868   :  { %2448 = vmatprep.mubr.bf16.mxu0 %v2214_v5  ;;  %vm6256_vm4 = vcmp.ne.s32.totalorder %v2615_v43, 0  ;;  %vm6257_vm6 = vcmp.ne.s32.totalorder %v2615_v43, 1  ;;  %v7595_v43 = vld [vmem:[#allocation6 + $0x790] sm:$0xff]  }
 0x869   :  { %vm8151_vm5 = vmpackc.low %vm6256_vm4, %vm6256_vm4 }
 0x86a   :  { %vm8179_vm7 = vmpackc.low %vm6257_vm6, %vm6257_vm6 }
 0x86d   :  { %v2215_v6 = vld [vmem:[#allocation2 + $0x9] sm:$0xff] }
 0x86e   :  { %v2210_v7 = vld [vmem:[#allocation2 + $0x7] sm:$0xff]  ;;  %v5923_v9 = vpack.c.bf16 %v2215_v6, %v2215_v6 }
 0x86f   :  { %v5918_v10 = vpack.c.bf16 %v2210_v7, %v2210_v7 }
 0x870   :  { %6999 = vmatmul.mubr.msk.bf16.vlgmr.msra.gmra.mrb[28].mxu1 %vm5922_vm3, %v5923_v9 }
 0x871   :  { %5919 = vmatmul.mubr.msk.bf16.vlgmr.msra.gmra.mrb[36].mxu0 %vm5878_vm1, %v5918_v10  ;;  %6505 = vmatpush3.bf16.msra.mxu1 %v7539_v16  ;;  %v7568_v16 = vld [vmem:[#allocation6 + $0x6b8] sm:$0xff]   ;;  %v7725_v10 = vld [vmem:[#allocation6 + $0xba0] sm:$0xff]  }
 0x872   :  { %7003 = vmatpush3.bf16.msra.mxu0 %v7529_v8  ;;  %7018 = vmatprep.mubr.msk.bf16.mxu0 %vm7887_vm9, %v7999_v56  ;;  %v7534_v56 = vld [vmem:[#allocation6 + $0x5a8] sm:$0xff]  }
 0x873   :  { %7004 = vmatprep.subr.bf16.mxu0 %v8128_v12  ;;  %6506 = vmatprep.subr.bf16.mxu1 %v7540_v18  ;;  %v7569_v18 = vld [vmem:[#allocation6 + $0x700] sm:$0xff]  }
 0x875   :  { %6507 = vmatpush3.bf16.msra.mxu1 %v7542_v19  ;;  %v7571_v19 = vld [vmem:[#allocation6 + $0x6c0] sm:$0xff]  }
 0x876   :  { %7005 = vmatpush3.bf16.msra.mxu0 %v7530_v11  ;;  %6508 = vmatprep.subr.bf16.mxu1 %v7543_v22  ;;  %v7561_v11 = vld [vmem:[#allocation6 + $0x680] sm:$0xff]   ;;  %v7572_v22 = vld [vmem:[#allocation6 + $0x708] sm:$0xff]  }
 0x877   :  { %7006 = vmatprep.subr.bf16.mxu0 %v8128_v12 }
 0x879   :  { %6509 = vmatpush3.bf16.msra.mxu1 %v7545_v23  ;;  %v7574_v23 = vld [vmem:[#allocation6 + $0x6c8] sm:$0xff]  }
 0x87a   :  { %7007 = vmatpush3.bf16.msra.mxu0 %v7531_v40  ;;  %6510 = vmatprep.subr.bf16.mxu1 %v7546_v24  ;;  %v7575_v24 = vld [vmem:[#allocation6 + $0x710] sm:$0xff]  }
 0x87b   :  { %7008 = vmatprep.subr.bf16.mxu0 %v8128_v12 }
 0x87d   :  { %6511 = vmatpush3.bf16.msra.mxu1 %v7548_v25  ;;  %v7577_v25 = vld [vmem:[#allocation6 + $0x6d0] sm:$0xff]  }
 0x87e   :  { %7009 = vmatpush3.bf16.msra.mxu0 %v7532_v13  ;;  %6512 = vmatprep.subr.bf16.mxu1 %v7549_v50  ;;  %v7562_v13 = vld [vmem:[#allocation6 + $0x688] sm:$0xff]   ;;  %v7576_v50 = vld [vmem:[#allocation6 + $0x750] sm:$0xff]  }
 0x87f   :  { %7010 = vmatprep.subr.bf16.mxu0 %v8128_v12 }
 0x881   :  { %6513 = vmatpush3.bf16.msra.mxu1 %v7551_v52  ;;  %v7581_v52 = vld [vmem:[#allocation6 + $0x720] sm:$0xff]  }
 0x882   :  { %7011 = vmatpush3.bf16.msra.mxu0 %v7533_v41  ;;  %6514 = vmatprep.subr.bf16.mxu1 %v7552_v53  ;;  %v7563_v41 = vld [vmem:[#allocation6 + $0x690] sm:$0xff]   ;;  %v7582_v53 = vld [vmem:[#allocation6 + $0x760] sm:$0xff]  }
 0x883   :  { %7012 = vmatprep.subr.bf16.mxu0 %v8128_v12 }
 0x885   :  { %6515 = vmatpush3.bf16.msra.mxu1 %v7554_v55  ;;  %v7584_v55 = vld [vmem:[#allocation6 + $0x728] sm:$0xff]  }
 0x886   :  { %7013 = vmatpush3.bf16.msra.mxu0 %v7534_v56  ;;  %6516 = vmatprep.subr.bf16.mxu1 %v7555_v57  ;;  %v7564_v56 = vld [vmem:[#allocation6 + $0x698] sm:$0xff]   ;;  %v7585_v57 = vld [vmem:[#allocation6 + $0x768] sm:$0xff]  }
 0x887   :  { %7014 = vmatprep.subr.bf16.mxu0 %v8128_v12 }
 0x889   :  { %6517 = vmatpush3.bf16.msra.mxu1 %v7557_v59  ;;  %v7587_v59 = vld [vmem:[#allocation6 + $0x730] sm:$0xff]  }
 0x88a   :  { %7015 = vmatpush3.bf16.msra.mxu0 %v7535_v14  ;;  %6518 = vmatprep.subr.bf16.mxu1 %v7558_v60  ;;  %v7565_v14 = vld [vmem:[#allocation6 + $0x6a0] sm:$0xff]   ;;  %v7588_v60 = vld [vmem:[#allocation6 + $0x770] sm:$0xff]  }
 0x88b   :  { %7016 = vmatprep.subr.bf16.mxu0 %v8128_v12 }
 0x88d   :  { %6519 = vmatpush3.bf16.msra.mxu1 %v7560_v62  ;;  %v7590_v62 = vld [vmem:[#allocation6 + $0x738] sm:$0xff]  }
 0x88e   :  { %7017 = vmatpush3.bf16.msra.mxu0 %v7536_v39  ;;  %7042 = vmatprep.subr.bf16.mxu1 %v8128_v12  ;;  %v7566_v39 = vld [vmem:[#allocation6 + $0x6a8] sm:$0xff]  }
 0x88f   :  { %7022 = vmatprep.subr.bf16.mxu0 %v8128_v12 }
 0x943   :  { %v2490_v26 = vpop.f32.mrb[28].mxu1 }
 0x944   :  { %v6480_v27 = vpop.f32.mrb[36].mxu0  ;;  %v7000_v28 = vpop.f32.mrb[29].mxu1 }
 0x945   :  { %v6481_v30 = vpop.f32.mrb[37].mxu0  ;;  %v2493_v32 = vpop.f32.mrb[30].mxu1 }
 0x946   :  { %v6482_v31 = vadd.f32 %v6481_v30, %v6480_v27  ;;  %v6483_v33 = vpop.f32.mrb[38].mxu0  ;;  %v7001_v34 = vpop.f32.mrb[31].mxu1  ;;  %v7580_v27 = vld [vmem:[#allocation6 + $0x6d8] sm:$0xff]  }
 0x947   :  { %v6484_v35 = vpop.f32.mrb[39].mxu0 }
 0x948   :  { %v2451_v36 = vadd.f32 %v6482_v31, %v5890_v29  ;;  %v5934_v31 = vld [vmem:[#allocation8 + $0xb] ss:$0 sm:$0xff] }
 0x94a   :  { %v2491_v37 = vadd.f32 %v2490_v26, %v2451_v36  ;;  %v7578_v26 = vld [vmem:[#allocation6 + $0x718] sm:$0xff]  }
 0x94c   :  { %v2496_v38 = vmax.f32 %v2491_v37, 0.0 }
 0x94e   :  { %v2497_v44 = vmin.f32 %v2496_v38, 6.0 }
 0x950   :  { %v2498_v46 = vpack.c.bf16 %v2497_v44, %v2497_v44 }
 0x952   :  { %7019 = vmatmul.mubr.bf16.vlgmr.msra.gmra.mrb[40].mxu0 %v2498_v46 }
 0x953   :  { %7023 = vmatpush3.bf16.msra.mxu0 %v7538_v45  ;;  %7038 = vmatprep.mubr.msk.bf16.mxu0 %vm7887_vm9, %v8128_v12 }
 0x954   :  { %7024 = vmatprep.subr.bf16.mxu0 %v8128_v12 }
 0x957   :  { %7025 = vmatpush3.bf16.msra.mxu0 %v7541_v47  ;;  %v7570_v47 = vld [vmem:[#allocation6 + $0x740] sm:$0xff]  }
 0x958   :  { %7026 = vmatprep.subr.bf16.mxu0 %v8128_v12 }
 0x95b   :  { %7027 = vmatpush3.bf16.msra.mxu0 %v7544_v48 }
 0x95c   :  { %7028 = vmatprep.subr.bf16.mxu0 %v8128_v12 }
 0x95f   :  { %7029 = vmatpush3.bf16.msra.mxu0 %v7547_v49  ;;  %v7573_v49 = vld [vmem:[#allocation6 + $0x748] sm:$0xff]  }
 0x960   :  { %7030 = vmatprep.subr.bf16.mxu0 %v8128_v12 }
 0x963   :  { %7031 = vmatpush3.bf16.msra.mxu0 %v7550_v51  ;;  %v7579_v51 = vld [vmem:[#allocation6 + $0x758] sm:$0xff]  }
 0x964   :  { %7032 = vmatprep.subr.bf16.mxu0 %v8128_v12 }
 0x967   :  { %7033 = vmatpush3.bf16.msra.mxu0 %v7553_v54  ;;  %v7583_v54 = vld [vmem:[#allocation6 + $0x6e0] sm:$0xff]  }
 0x968   :  { %7034 = vmatprep.subr.bf16.mxu0 %v8128_v12 }
 0x96b   :  { %7035 = vmatpush3.bf16.msra.mxu0 %v7556_v58  ;;  %v7586_v58 = vld [vmem:[#allocation6 + $0x6e8] sm:$0xff]  }
 0x96c   :  { %7036 = vmatprep.subr.bf16.mxu0 %v8128_v12 }
 0x96f   :  { %7037 = vmatpush3.bf16.msra.mxu0 %v7559_v61  ;;  %v7589_v61 = vld [vmem:[#allocation6 + $0x6f0] sm:$0xff]  }
 0x970   :  { %6544 = vmatprep.subr.bf16.mxu0 %v7569_v18  ;;  %v7600_v18 = vld [vmem:[#allocation6 + $0x7b8] sm:$0xff]  }
 0xa25   :  { %v2602_v0 = vpop.f32.mrb[40].mxu0 }
 0xa26   :  { %v2603_v1 = vadd.f32 %v5925_v63, %v2602_v0  ;;  %v7020_v2 = vpop.f32.mrb[41].mxu0  ;;  %v7591_v63 = vld [vmem:[#allocation6 + $0x778] sm:$0xff]  }
 0xa27   :  { %v2605_v3 = vpop.f32.mrb[42].mxu0  ;;  %v7592_v0 = vld [vmem:[#allocation6 + $0x6f8] sm:$0xff]  }
 0xa28   :  { %v2608_v4 = vmax.f32 %v2603_v1, 0.0  ;;  %v7021_v20 = vpop.f32.mrb[43].mxu0  ;;  %v5964_v1 = vld [vmem:[#allocation8 + $0xc] ss:$0 sm:$0xff] }
 0xa2a   :  { %v2609_v42 = vmin.f32 %v2608_v4, 6.0 }
 0xa2c   :  { %2610 = vst [vmem:[#allocation2 + $0x8] sm:$0xff] %v2609_v42 }
 0xa33   :  { %v2627_v5 = vld [vmem:[#allocation2 + $0x8] ss:$2 sm:$0xf]  ;;  %v2629_v6 = vld [vmem:[#allocation2 + $0x9] ss:$2 sm:$0xf] }
 0xa34   :  { %v2628_v7 = vpack.c.bf16 %v2627_v5, %v2627_v5  ;;  %v2630_v8 = vpack.c.bf16 %v2629_v6, %v2629_v6  ;;  %v2623_v9 = vld [vmem:[#allocation2 + $0x7] ss:$2 sm:$0xf] }
 0xa35   :  { %v5962_v40 = vpack.c.bf16 %v2623_v9, %v2623_v9 }
 0xa36   :  { %2860 = vmatprep.mubr.bf16.mxu1 %v2628_v7  ;;  %7039 = vmatmul.mubr.bf16.vlgmr.msra.gmra.mrb[44].mxu0 %v2630_v8  ;;  %v7726_v7 = vld [vmem:[#allocation6 + $0xba8] sm:$0xff]  }
 0xa37   :  { %5963 = vmatmul.mubr.msk.bf16.vlgmr.msra.gmra.mrb[32].mxu1 %vm8151_vm5, %v5962_v40  ;;  %6545 = vmatpush3.bf16.msra.mxu0 %v7571_v19  ;;  %v7601_v19 = vld [vmem:[#allocation6 + $0x800] sm:$0xff]  }
 0xa38   :  { %7043 = vmatpush3.bf16.msra.mxu1 %v7561_v11  ;;  %7058 = vmatprep.mubr.msk.bf16.mxu1 %vm7887_vm9, %v8128_v12 }
 0xa39   :  { %7044 = vmatprep.subr.bf16.mxu1 %v8128_v12  ;;  %6546 = vmatprep.subr.bf16.mxu0 %v7572_v22  ;;  %v7603_v22 = vld [vmem:[#allocation6 + $0x7c0] sm:$0xff]  }
 0xa3b   :  { %6547 = vmatpush3.bf16.msra.mxu0 %v7574_v23  ;;  %v7604_v23 = vld [vmem:[#allocation6 + $0x808] sm:$0xff]  }
 0xa3c   :  { %7045 = vmatpush3.bf16.msra.mxu1 %v7562_v13  ;;  %6548 = vmatprep.subr.bf16.mxu0 %v7575_v24  ;;  %v7606_v24 = vld [vmem:[#allocation6 + $0x7c8] sm:$0xff]  }
 0xa3d   :  { %7046 = vmatprep.subr.bf16.mxu1 %v8128_v12 }
 0xa3f   :  { %6549 = vmatpush3.bf16.msra.mxu0 %v7577_v25  ;;  %v7607_v25 = vld [vmem:[#allocation6 + $0x810] sm:$0xff]  }
 0xa40   :  { %7047 = vmatpush3.bf16.msra.mxu1 %v7563_v41  ;;  %6550 = vmatprep.subr.bf16.mxu0 %v7578_v26  ;;  %v7609_v26 = vld [vmem:[#allocation6 + $0x7d0] sm:$0xff]  }
 0xa41   :  { %7048 = vmatprep.subr.bf16.mxu1 %v8128_v12 }
 0xa43   :  { %6551 = vmatpush3.bf16.msra.mxu0 %v7580_v27  ;;  %v7610_v27 = vld [vmem:[#allocation6 + $0x818] sm:$0xff]  }
 0xa44   :  { %7049 = vmatpush3.bf16.msra.mxu1 %v7564_v56  ;;  %6552 = vmatprep.subr.bf16.mxu0 %v7581_v52  ;;  %v7593_v56 = vld [vmem:[#allocation6 + $0x780] sm:$0xff]   ;;  %v7611_v52 = vld [vmem:[#allocation6 + $0x858] sm:$0xff]  }
 0xa45   :  { %7050 = vmatprep.subr.bf16.mxu1 %v8128_v12 }
 0xa47   :  { %6553 = vmatpush3.bf16.msra.mxu0 %v7583_v54  ;;  %v7614_v54 = vld [vmem:[#allocation6 + $0x860] sm:$0xff]  }
 0xa48   :  { %7051 = vmatpush3.bf16.msra.mxu1 %v7565_v14  ;;  %6554 = vmatprep.subr.bf16.mxu0 %v7584_v55  ;;  %v7596_v14 = vld [vmem:[#allocation6 + $0x798] sm:$0xff]   ;;  %v7615_v55 = vld [vmem:[#allocation6 + $0x7e0] sm:$0xff]  }
 0xa49   :  { %7052 = vmatprep.subr.bf16.mxu1 %v8128_v12 }
 0xa4b   :  { %6555 = vmatpush3.bf16.msra.mxu0 %v7586_v58  ;;  %v7617_v58 = vld [vmem:[#allocation6 + $0x868] sm:$0xff]  }
 0xa4c   :  { %7053 = vmatpush3.bf16.msra.mxu1 %v7566_v39  ;;  %6556 = vmatprep.subr.bf16.mxu0 %v7587_v59  ;;  %v7597_v39 = vld [vmem:[#allocation6 + $0x7a0] sm:$0xff]   ;;  %v7618_v59 = vld [vmem:[#allocation6 + $0x7e8] sm:$0xff]  }
 0xa4d   :  { %7054 = vmatprep.subr.bf16.mxu1 %v8128_v12 }
 0xa4f   :  { %6557 = vmatpush3.bf16.msra.mxu0 %v7589_v61  ;;  %v7620_v61 = vld [vmem:[#allocation6 + $0x870] sm:$0xff]  }
 0xa50   :  { %7055 = vmatpush3.bf16.msra.mxu1 %v7567_v15  ;;  %6558 = vmatprep.subr.bf16.mxu0 %v7590_v62  ;;  %v7598_v15 = vld [vmem:[#allocation6 + $0x7a8] sm:$0xff]   ;;  %v7621_v62 = vld [vmem:[#allocation6 + $0x7f0] sm:$0xff]  }
 0xa51   :  { %7056 = vmatprep.subr.bf16.mxu1 %v8128_v12 }
 0xa53   :  { %6559 = vmatpush3.bf16.msra.mxu0 %v7592_v0  ;;  %v7623_v0 = vld [vmem:[#allocation6 + $0x878] sm:$0xff]  }
 0xa54   :  { %7057 = vmatpush3.bf16.msra.mxu1 %v7568_v16  ;;  %7082 = vmatprep.subr.bf16.mxu0 %v8128_v12  ;;  %v7599_v16 = vld [vmem:[#allocation6 + $0x7b0] sm:$0xff]  }
 0xa55   :  { %7062 = vmatprep.subr.bf16.mxu1 %v8128_v12 }
 0xb09   :  { %v2902_v28 = vpop.f32.mrb[44].mxu0 }
 0xb0a   :  { %v6520_v29 = vpop.f32.mrb[32].mxu1  ;;  %v7040_v30 = vpop.f32.mrb[45].mxu0 }
 0xb0b   :  { %v6521_v32 = vpop.f32.mrb[33].mxu1  ;;  %v2905_v33 = vpop.f32.mrb[46].mxu0 }
 0xb0c   :  { %v6522_v34 = vadd.f32 %v6521_v32, %v6520_v29  ;;  %v6523_v35 = vpop.f32.mrb[34].mxu1  ;;  %v7041_v36 = vpop.f32.mrb[47].mxu0  ;;  %v5973_v32 = vld [vmem:[#allocation8 + $0xd] ss:$0 sm:$0xff] }
 0xb0d   :  { %v6524_v37 = vpop.f32.mrb[35].mxu1 }
 0xb0e   :  { %v2863_v38 = vadd.f32 %v6522_v34, %v5934_v31 }
 0xb10   :  { %v2903_v44 = vadd.f32 %v2902_v28, %v2863_v38  ;;  %v7612_v28 = vld [vmem:[#allocation6 + $0x7d8] sm:$0xff]  }
 0xb12   :  { %v2908_v45 = vmax.f32 %v2903_v44, 0.0 }
 0xb14   :  { %v2909_v46 = vmin.f32 %v2908_v45, 6.0 }
 0xb16   :  { %v2910_v48 = vpack.c.bf16 %v2909_v46, %v2909_v46 }
 0xb18   :  { %7059 = vmatmul.mubr.bf16.vlgmr.msra.gmra.mrb[36].mxu1 %v2910_v48  ;;  %v7602_v48 = vld [vmem:[#allocation6 + $0x840] sm:$0xff]  }
 0xb19   :  { %7063 = vmatpush3.bf16.msra.mxu1 %v7570_v47  ;;  %7078 = vmatprep.mubr.msk.bf16.mxu1 %vm7887_vm9, %v8128_v12 }
 0xb1a   :  { %7064 = vmatprep.subr.bf16.mxu1 %v8128_v12 }
 0xb1d   :  { %7065 = vmatpush3.bf16.msra.mxu1 %v7573_v49 }
 0xb1e   :  { %7066 = vmatprep.subr.bf16.mxu1 %v8128_v12 }
 0xb21   :  { %7067 = vmatpush3.bf16.msra.mxu1 %v7576_v50  ;;  %v7605_v50 = vld [vmem:[#allocation6 + $0x848] sm:$0xff]  }
 0xb22   :  { %7068 = vmatprep.subr.bf16.mxu1 %v8128_v12 }
 0xb25   :  { %7069 = vmatpush3.bf16.msra.mxu1 %v7579_v51  ;;  %v7608_v51 = vld [vmem:[#allocation6 + $0x850] sm:$0xff]  }
 0xb26   :  { %7070 = vmatprep.subr.bf16.mxu1 %v8128_v12 }
 0xb29   :  { %7071 = vmatpush3.bf16.msra.mxu1 %v7582_v53  ;;  %v7613_v53 = vld [vmem:[#allocation6 + $0x820] sm:$0xff]  }
 0xb2a   :  { %7072 = vmatprep.subr.bf16.mxu1 %v8128_v12 }
 0xb2d   :  { %7073 = vmatpush3.bf16.msra.mxu1 %v7585_v57  ;;  %v7616_v57 = vld [vmem:[#allocation6 + $0x828] sm:$0xff]  }
 0xb2e   :  { %7074 = vmatprep.subr.bf16.mxu1 %v8128_v12 }
 0xb31   :  { %7075 = vmatpush3.bf16.msra.mxu1 %v7588_v60  ;;  %v7619_v60 = vld [vmem:[#allocation6 + $0x830] sm:$0xff]  }
 0xb32   :  { %7076 = vmatprep.subr.bf16.mxu1 %v8128_v12 }
 0xb35   :  { %7077 = vmatpush3.bf16.msra.mxu1 %v7591_v63  ;;  %v7622_v63 = vld [vmem:[#allocation6 + $0x838] sm:$0xff]  }
 0xb36   :  { %6584 = vmatprep.subr.bf16.mxu1 %v7601_v19  ;;  %v7632_v19 = vld [vmem:[#allocation6 + $0x8b8] sm:$0xff]  }
 0xbeb   :  { %v3014_v2 = vpop.f32.mrb[36].mxu1 }
 0xbec   :  { %v3015_v3 = vadd.f32 %v5964_v1, %v3014_v2  ;;  %v7060_v4 = vpop.f32.mrb[37].mxu1  ;;  %v7624_v1 = vld [vmem:[#allocation6 + $0x7f8] sm:$0xff]   ;;  %v6008_v2 = vld [vmem:[#allocation8 + $0xe] ss:$0 sm:$0xff] }
 0xbed   :  { %v3017_v20 = vpop.f32.mrb[38].mxu1 }
 0xbee   :  { %v3020_v42 = vmax.f32 %v3015_v3, 0.0  ;;  %v7061_v5 = vpop.f32.mrb[39].mxu1 }
 0xbf0   :  { %v3021_v6 = vmin.f32 %v3020_v42, 6.0 }
 0xbf2   :  { %3022 = vst [vmem:[#allocation2 + $0x8] sm:$0xf] %v3021_v6 }
 0xbf9   :  { %v3026_v8 = vld [vmem:[#allocation2 + $0x8] sm:$0xf] }
 0xbfa   :  { %v3028_v9 = vld [vmem:[#allocation2 + $0x9] sm:$0xf]  ;;  %v3027_v40 = vpack.c.bf16 %v3026_v8, %v3026_v8 }
 0xbfb   :  { %v3023_v11 = vld [vmem:[#allocation2 + $0x7] sm:$0xf]  ;;  %v6006_v13 = vpack.c.bf16 %v3028_v9, %v3028_v9 }
 0xbfc   :  { %v6001_v41 = vpack.c.bf16 %v3023_v11, %v3023_v11  ;;  %3261 = vmatprep.mubr.bf16.mxu0 %v3027_v40 }
 0xbfd   :  { %7079 = vmatmul.mubr.msk.bf16.vlgmr.msra.gmra.mrb[40].mxu1 %vm8179_vm7, %v6006_v13 }
 0xbfe   :  { %6002 = vmatmul.mubr.msk.bf16.vlgmr.msra.gmra.mrb[48].mxu0 %vm8151_vm5, %v6001_v41  ;;  %6585 = vmatpush3.bf16.msra.mxu1 %v7603_v22  ;;  %v7633_v22 = vld [vmem:[#allocation6 + $0x900] sm:$0xff]  }
 0xbff   :  { %7083 = vmatpush3.bf16.msra.mxu0 %v7593_v56  ;;  %7098 = vmatprep.mubr.msk.bf16.mxu0 %vm7887_vm9, %v8128_v12 }
 0xc00   :  { %7084 = vmatprep.subr.bf16.mxu0 %v8128_v12  ;;  %6586 = vmatprep.subr.bf16.mxu1 %v7604_v23  ;;  %v7635_v23 = vld [vmem:[#allocation6 + $0x8c0] sm:$0xff]  }
 0xc02   :  { %6587 = vmatpush3.bf16.msra.mxu1 %v7606_v24  ;;  %v7636_v24 = vld [vmem:[#allocation6 + $0x908] sm:$0xff]  }
 0xc03   :  { %7085 = vmatpush3.bf16.msra.mxu0 %v7594_v21  ;;  %6588 = vmatprep.subr.bf16.mxu1 %v7607_v25  ;;  %v7625_v21 = vld [vmem:[#allocation6 + $0x880] sm:$0xff]   ;;  %v7638_v25 = vld [vmem:[#allocation6 + $0x8c8] sm:$0xff]  }
 0xc04   :  { %7086 = vmatprep.subr.bf16.mxu0 %v8128_v12 }
 0xc06   :  { %6589 = vmatpush3.bf16.msra.mxu1 %v7609_v26  ;;  %v7639_v26 = vld [vmem:[#allocation6 + $0x910] sm:$0xff]  }
 0xc07   :  { %7087 = vmatpush3.bf16.msra.mxu0 %v7595_v43  ;;  %6590 = vmatprep.subr.bf16.mxu1 %v7610_v27  ;;  %v7626_v43 = vld [vmem:[#allocation6 + $0x888] sm:$0xff]   ;;  %v7641_v27 = vld [vmem:[#allocation6 + $0x8d0] sm:$0xff]  }
 0xc08   :  { %7088 = vmatprep.subr.bf16.mxu0 %v8128_v12 }
 0xc0a   :  { %6591 = vmatpush3.bf16.msra.mxu1 %v7612_v28  ;;  %v7642_v28 = vld [vmem:[#allocation6 + $0x918] sm:$0xff]  }
 0xc0b   :  { %7089 = vmatpush3.bf16.msra.mxu0 %v7596_v14  ;;  %6592 = vmatprep.subr.bf16.mxu1 %v7613_v53  ;;  %v7627_v14 = vld [vmem:[#allocation6 + $0x890] sm:$0xff]   ;;  %v7643_v53 = vld [vmem:[#allocation6 + $0x958] sm:$0xff]  }
 0xc0c   :  { %7090 = vmatprep.subr.bf16.mxu0 %v8128_v12 }
 0xc0e   :  { %6593 = vmatpush3.bf16.msra.mxu1 %v7615_v55  ;;  %v7646_v55 = vld [vmem:[#allocation6 + $0x960] sm:$0xff]  }
 0xc0f   :  { %7091 = vmatpush3.bf16.msra.mxu0 %v7597_v39  ;;  %6594 = vmatprep.subr.bf16.mxu1 %v7616_v57  ;;  %v7628_v39 = vld [vmem:[#allocation6 + $0x898] sm:$0xff]   ;;  %v7647_v57 = vld [vmem:[#allocation6 + $0x8e0] sm:$0xff]  }
 0xc10   :  { %7092 = vmatprep.subr.bf16.mxu0 %v8128_v12 }
 0xc12   :  { %6595 = vmatpush3.bf16.msra.mxu1 %v7618_v59  ;;  %v7649_v59 = vld [vmem:[#allocation6 + $0x968] sm:$0xff]  }
 0xc13   :  { %7093 = vmatpush3.bf16.msra.mxu0 %v7598_v15  ;;  %6596 = vmatprep.subr.bf16.mxu1 %v7619_v60  ;;  %v7629_v15 = vld [vmem:[#allocation6 + $0x8a0] sm:$0xff]   ;;  %v7650_v60 = vld [vmem:[#allocation6 + $0x8e8] sm:$0xff]  }
 0xc14   :  { %7094 = vmatprep.subr.bf16.mxu0 %v8128_v12 }
 0xc16   :  { %6597 = vmatpush3.bf16.msra.mxu1 %v7621_v62  ;;  %v7652_v62 = vld [vmem:[#allocation6 + $0x970] sm:$0xff]  }
 0xc17   :  { %7095 = vmatpush3.bf16.msra.mxu0 %v7599_v16  ;;  %6598 = vmatprep.subr.bf16.mxu1 %v7622_v63  ;;  %v7630_v16 = vld [vmem:[#allocation6 + $0x8a8] sm:$0xff]   ;;  %v7653_v63 = vld [vmem:[#allocation6 + $0x8f0] sm:$0xff]  }
 0xc18   :  { %7096 = vmatprep.subr.bf16.mxu0 %v8128_v12 }
 0xc1a   :  { %6599 = vmatpush3.bf16.msra.mxu1 %v7624_v1  ;;  %v7655_v1 = vld [vmem:[#allocation6 + $0x978] sm:$0xff]  }
 0xc1b   :  { %7097 = vmatpush3.bf16.msra.mxu0 %v7600_v18  ;;  %7122 = vmatprep.subr.bf16.mxu1 %v8128_v12  ;;  %v7631_v18 = vld [vmem:[#allocation6 + $0x8b0] sm:$0xff]  }
 0xc1c   :  { %7102 = vmatprep.subr.bf16.mxu0 %v8128_v12 }
 0xcd0   :  { %v3303_v29 = vpop.f32.mrb[40].mxu1 }
 0xcd1   :  { %v6560_v30 = vpop.f32.mrb[48].mxu0  ;;  %v7080_v31 = vpop.f32.mrb[41].mxu1 }
 0xcd2   :  { %v6561_v33 = vpop.f32.mrb[49].mxu0  ;;  %v3306_v34 = vpop.f32.mrb[42].mxu1 }
 0xcd3   :  { %v6562_v35 = vadd.f32 %v6561_v33, %v6560_v30  ;;  %v6563_v36 = vpop.f32.mrb[50].mxu0  ;;  %v7081_v37 = vpop.f32.mrb[43].mxu1  ;;  %v6017_v33 = vld [vmem:[#allocation8 + $0xf] ss:$0 sm:$0xff] }
 0xcd4   :  { %v6564_v38 = vpop.f32.mrb[51].mxu0 }
 0xcd5   :  { %v3264_v44 = vadd.f32 %v6562_v35, %v5973_v32 }
 0xcd7   :  { %v3304_v45 = vadd.f32 %v3303_v29, %v3264_v44  ;;  %v7644_v29 = vld [vmem:[#allocation6 + $0x8d8] sm:$0xff]  }
 0xcd9   :  { %v3309_v46 = vmax.f32 %v3304_v45, 0.0 }
 0xcdb   :  { %v3310_v47 = vmin.f32 %v3309_v46, 6.0 }
 0xcdd   :  { %v3311_v49 = vpack.c.bf16 %v3310_v47, %v3310_v47 }
 0xcdf   :  { %7099 = vmatmul.mubr.bf16.vlgmr.msra.gmra.mrb[52].mxu0 %v3311_v49  ;;  %v7634_v49 = vld [vmem:[#allocation6 + $0x940] sm:$0xff]  }
 0xce0   :  { %7103 = vmatpush3.bf16.msra.mxu0 %v7602_v48  ;;  %7118 = vmatprep.mubr.msk.bf16.mxu0 %vm7887_vm9, %v8128_v12 }
 0xce1   :  { %7104 = vmatprep.subr.bf16.mxu0 %v8128_v12 }
 0xce4   :  { %7105 = vmatpush3.bf16.msra.mxu0 %v7605_v50 }
 0xce5   :  { %7106 = vmatprep.subr.bf16.mxu0 %v8128_v12 }
 0xce8   :  { %7107 = vmatpush3.bf16.msra.mxu0 %v7608_v51  ;;  %v7637_v51 = vld [vmem:[#allocation6 + $0x948] sm:$0xff]  }
 0xce9   :  { %7108 = vmatprep.subr.bf16.mxu0 %v8128_v12 }
 0xcec   :  { %7109 = vmatpush3.bf16.msra.mxu0 %v7611_v52  ;;  %v7640_v52 = vld [vmem:[#allocation6 + $0x950] sm:$0xff]  }
 0xced   :  { %7110 = vmatprep.subr.bf16.mxu0 %v8128_v12 }
 0xcf0   :  { %7111 = vmatpush3.bf16.msra.mxu0 %v7614_v54  ;;  %v7645_v54 = vld [vmem:[#allocation6 + $0x920] sm:$0xff]  }
 0xcf1   :  { %7112 = vmatprep.subr.bf16.mxu0 %v8128_v12 }
 0xcf4   :  { %7113 = vmatpush3.bf16.msra.mxu0 %v7617_v58  ;;  %v7648_v58 = vld [vmem:[#allocation6 + $0x928] sm:$0xff]  }
 0xcf5   :  { %7114 = vmatprep.subr.bf16.mxu0 %v8128_v12 }
 0xcf8   :  { %7115 = vmatpush3.bf16.msra.mxu0 %v7620_v61  ;;  %v7651_v61 = vld [vmem:[#allocation6 + $0x930] sm:$0xff]  }
 0xcf9   :  { %7116 = vmatprep.subr.bf16.mxu0 %v8128_v12 }
 0xcfc   :  { %7117 = vmatpush3.bf16.msra.mxu0 %v7623_v0  ;;  %v7654_v0 = vld [vmem:[#allocation6 + $0x938] sm:$0xff]  }
 0xcfd   :  { %6624 = vmatprep.subr.bf16.mxu0 %v7633_v22  ;;  %v7664_v22 = vld [vmem:[#allocation6 + $0x9b8] sm:$0xff]  }
 0xdb2   :  { %v3415_v3 = vpop.f32.mrb[52].mxu0 }
 0xdb3   :  { %v3416_v4 = vadd.f32 %v6008_v2, %v3415_v3  ;;  %v7100_v20 = vpop.f32.mrb[53].mxu0  ;;  %v7656_v2 = vld [vmem:[#allocation6 + $0x8f8] sm:$0xff]   ;;  %v6052_v3 = vld [vmem:[#allocation8 + $0x10] ss:$0 sm:$0xff] }
 0xdb4   :  { %v3418_v42 = vpop.f32.mrb[54].mxu0 }
 0xdb5   :  { %v3421_v5 = vmax.f32 %v3416_v4, 0.0  ;;  %v7101_v6 = vpop.f32.mrb[55].mxu0 }
 0xdb7   :  { %v3422_v8 = vmin.f32 %v3421_v5, 6.0 }
 0xdb9   :  { %3423 = vst [vmem:[#allocation2 + $0x8] sm:$0xf] %v3422_v8 }
 0xdc0   :  { %v3427_v9 = vld [vmem:[#allocation2 + $0x8] sm:$0xf] }
 0xdc1   :  { %v3429_v11 = vld [vmem:[#allocation2 + $0x9] sm:$0xf]  ;;  %v3428_v13 = vpack.c.bf16 %v3427_v9, %v3427_v9 }
 0xdc2   :  { %v3424_v40 = vld [vmem:[#allocation2 + $0x7] sm:$0xf]  ;;  %v6050_v41 = vpack.c.bf16 %v3429_v11, %v3429_v11 }
 0xdc3   :  { %v6045_v56 = vpack.c.bf16 %v3424_v40, %v3424_v40  ;;  %3661 = vmatprep.mubr.bf16.mxu1 %v3428_v13 }
 0xdc4   :  { %7119 = vmatmul.mubr.msk.bf16.vlgmr.msra.gmra.mrb[56].mxu0 %vm8179_vm7, %v6050_v41 }
 0xdc5   :  { %6046 = vmatmul.mubr.msk.bf16.vlgmr.msra.gmra.mrb[44].mxu1 %vm8151_vm5, %v6045_v56  ;;  %6625 = vmatpush3.bf16.msra.mxu0 %v7635_v23  ;;  %v7665_v23 = vld [vmem:[#allocation6 + $0xa00] sm:$0xff]  }
 0xdc6   :  { %7123 = vmatpush3.bf16.msra.mxu1 %v7625_v21  ;;  %7138 = vmatprep.mubr.msk.bf16.mxu1 %vm7887_vm9, %v8128_v12 }
 0xdc7   :  { %7124 = vmatprep.subr.bf16.mxu1 %v8128_v12  ;;  %6626 = vmatprep.subr.bf16.mxu0 %v7636_v24  ;;  %v7667_v24 = vld [vmem:[#allocation6 + $0x9c0] sm:$0xff]  }
 0xdc9   :  { %6627 = vmatpush3.bf16.msra.mxu0 %v7638_v25  ;;  %v7668_v25 = vld [vmem:[#allocation6 + $0xa08] sm:$0xff]  }
 0xdca   :  { %7125 = vmatpush3.bf16.msra.mxu1 %v7626_v43  ;;  %6628 = vmatprep.subr.bf16.mxu0 %v7639_v26  ;;  %v7657_v43 = vld [vmem:[#allocation6 + $0x980] sm:$0xff]   ;;  %v7670_v26 = vld [vmem:[#allocation6 + $0x9c8] sm:$0xff]  }
 0xdcb   :  { %7126 = vmatprep.subr.bf16.mxu1 %v8128_v12 }
 0xdcd   :  { %6629 = vmatpush3.bf16.msra.mxu0 %v7641_v27  ;;  %v7671_v27 = vld [vmem:[#allocation6 + $0xa10] sm:$0xff]  }
 0xdce   :  { %7127 = vmatpush3.bf16.msra.mxu1 %v7627_v14  ;;  %6630 = vmatprep.subr.bf16.mxu0 %v7642_v28  ;;  %v7658_v14 = vld [vmem:[#allocation6 + $0x988] sm:$0xff]   ;;  %v7673_v28 = vld [vmem:[#allocation6 + $0x9d0] sm:$0xff]  }
 0xdcf   :  { %7128 = vmatprep.subr.bf16.mxu1 %v8128_v12 }
 0xdd1   :  { %6631 = vmatpush3.bf16.msra.mxu0 %v7644_v29  ;;  %v7674_v29 = vld [vmem:[#allocation6 + $0xa18] sm:$0xff]  }
 0xdd2   :  { %7129 = vmatpush3.bf16.msra.mxu1 %v7628_v39  ;;  %6632 = vmatprep.subr.bf16.mxu0 %v7645_v54  ;;  %v7659_v39 = vld [vmem:[#allocation6 + $0x990] sm:$0xff]   ;;  %v7675_v54 = vld [vmem:[#allocation6 + $0xa58] sm:$0xff]  }
 0xdd3   :  { %7130 = vmatprep.subr.bf16.mxu1 %v8128_v12 }
 0xdd5   :  { %6633 = vmatpush3.bf16.msra.mxu0 %v7647_v57  ;;  %v7678_v57 = vld [vmem:[#allocation6 + $0xa60] sm:$0xff]  }
 0xdd6   :  { %7131 = vmatpush3.bf16.msra.mxu1 %v7629_v15  ;;  %6634 = vmatprep.subr.bf16.mxu0 %v7648_v58  ;;  %v7660_v15 = vld [vmem:[#allocation6 + $0x998] sm:$0xff]   ;;  %v7679_v58 = vld [vmem:[#allocation6 + $0x9e0] sm:$0xff]  }
 0xdd7   :  { %7132 = vmatprep.subr.bf16.mxu1 %v8128_v12 }
 0xdd9   :  { %6635 = vmatpush3.bf16.msra.mxu0 %v7650_v60  ;;  %v7681_v60 = vld [vmem:[#allocation6 + $0xa68] sm:$0xff]  }
 0xdda   :  { %7133 = vmatpush3.bf16.msra.mxu1 %v7630_v16  ;;  %6636 = vmatprep.subr.bf16.mxu0 %v7651_v61  ;;  %v7661_v16 = vld [vmem:[#allocation6 + $0x9a0] sm:$0xff]   ;;  %v7682_v61 = vld [vmem:[#allocation6 + $0x9e8] sm:$0xff]  }
 0xddb   :  { %7134 = vmatprep.subr.bf16.mxu1 %v8128_v12 }
 0xddd   :  { %6637 = vmatpush3.bf16.msra.mxu0 %v7653_v63  ;;  %v7684_v63 = vld [vmem:[#allocation6 + $0xa70] sm:$0xff]  }
 0xdde   :  { %7135 = vmatpush3.bf16.msra.mxu1 %v7631_v18  ;;  %6638 = vmatprep.subr.bf16.mxu0 %v7654_v0  ;;  %v7662_v18 = vld [vmem:[#allocation6 + $0x9a8] sm:$0xff]   ;;  %v7685_v0 = vld [vmem:[#allocation6 + $0x9f0] sm:$0xff]  }
 0xddf   :  { %7136 = vmatprep.subr.bf16.mxu1 %v8128_v12 }
 0xde1   :  { %6639 = vmatpush3.bf16.msra.mxu0 %v7656_v2  ;;  %v7687_v2 = vld [vmem:[#allocation6 + $0xa78] sm:$0xff]  }
 0xde2   :  { %7137 = vmatpush3.bf16.msra.mxu1 %v7632_v19  ;;  %7162 = vmatprep.subr.bf16.mxu0 %v8128_v12  ;;  %v7663_v19 = vld [vmem:[#allocation6 + $0x9b0] sm:$0xff]  }
 0xde3   :  { %7142 = vmatprep.subr.bf16.mxu1 %v8128_v12 }
 0xe97   :  { %v3703_v30 = vpop.f32.mrb[56].mxu0 }
 0xe98   :  { %v6600_v31 = vpop.f32.mrb[44].mxu1  ;;  %v7120_v32 = vpop.f32.mrb[57].mxu0 }
 0xe99   :  { %v6601_v34 = vpop.f32.mrb[45].mxu1  ;;  %v3706_v35 = vpop.f32.mrb[58].mxu0 }
 0xe9a   :  { %v6602_v36 = vadd.f32 %v6601_v34, %v6600_v31  ;;  %v6603_v37 = vpop.f32.mrb[46].mxu1  ;;  %v7121_v38 = vpop.f32.mrb[59].mxu0 }
 0xe9b   :  { %v6604_v44 = vpop.f32.mrb[47].mxu1 }
 0xe9c   :  { %v3664_v45 = vadd.f32 %v6602_v36, %v6017_v33 }
 0xe9e   :  { %v3704_v46 = vadd.f32 %v3703_v30, %v3664_v45  ;;  %v7676_v30 = vld [vmem:[#allocation6 + $0x9d8] sm:$0xff]  }
 0xea0   :  { %v3709_v47 = vmax.f32 %v3704_v46, 0.0 }
 0xea2   :  { %v3710_v48 = vmin.f32 %v3709_v47, 6.0 }
 0xea4   :  { %v3711_v50 = vpack.c.bf16 %v3710_v48, %v3710_v48 }
 0xea6   :  { %7139 = vmatmul.mubr.bf16.vlgmr.msra.gmra.mrb[48].mxu1 %v3711_v50 }
 0xea7   :  { %7143 = vmatpush3.bf16.msra.mxu1 %v7634_v49  ;;  %7158 = vmatprep.mubr.msk.bf16.mxu1 %vm7887_vm9, %v8128_v12  ;;  %v7666_v49 = vld [vmem:[#allocation6 + $0xa40] sm:$0xff]  }
 0xea8   :  { %7144 = vmatprep.subr.bf16.mxu1 %v8128_v12 }
 0xeab   :  { %7145 = vmatpush3.bf16.msra.mxu1 %v7637_v51  ;;  %v7669_v51 = vld [vmem:[#allocation6 + $0xa48] sm:$0xff]  }
 0xeac   :  { %7146 = vmatprep.subr.bf16.mxu1 %v8128_v12 }
 0xeaf   :  { %7147 = vmatpush3.bf16.msra.mxu1 %v7640_v52  ;;  %v8245_v52 = vld [vmem:[#allocation2 + $0x48] sm:$0xff] }
 0xeb0   :  { %7148 = vmatprep.subr.bf16.mxu1 %v8128_v12 }
 0xeb3   :  { %7149 = vmatpush3.bf16.msra.mxu1 %v7643_v53  ;;  %v7672_v53 = vld [vmem:[#allocation6 + $0xa50] sm:$0xff]  }
 0xeb4   :  { %7150 = vmatprep.subr.bf16.mxu1 %v8128_v12 }
 0xeb7   :  { %7151 = vmatpush3.bf16.msra.mxu1 %v7646_v55  ;;  %v7677_v55 = vld [vmem:[#allocation6 + $0xa20] sm:$0xff]  }
 0xeb8   :  { %7152 = vmatprep.subr.bf16.mxu1 %v8128_v12 }
 0xebb   :  { %7153 = vmatpush3.bf16.msra.mxu1 %v7649_v59  ;;  %v7680_v59 = vld [vmem:[#allocation6 + $0xa28] sm:$0xff]  }
 0xebc   :  { %7154 = vmatprep.subr.bf16.mxu1 %v8128_v12 }
 0xebf   :  { %7155 = vmatpush3.bf16.msra.mxu1 %v7652_v62  ;;  %v7683_v62 = vld [vmem:[#allocation6 + $0xa30] sm:$0xff]  }
 0xec0   :  { %7156 = vmatprep.subr.bf16.mxu1 %v8128_v12 }
 0xec3   :  { %7157 = vmatpush3.bf16.msra.mxu1 %v7655_v1  ;;  %v7686_v1 = vld [vmem:[#allocation6 + $0xa38] sm:$0xff]  }
 0xec4   :  { %6664 = vmatprep.subr.bf16.mxu1 %v7665_v23  ;;  %v7696_v23 = vld [vmem:[#allocation6 + $0xab8] sm:$0xff]  }
 0xf79   :  { %v3815_v4 = vpop.f32.mrb[48].mxu1 }
 0xf7a   :  { %v3816_v20 = vadd.f32 %v6052_v3, %v3815_v4  ;;  %v7140_v42 = vpop.f32.mrb[49].mxu1  ;;  %v7688_v3 = vld [vmem:[#allocation6 + $0x9f8] sm:$0xff]   ;;  %v6096_v4 = vld [vmem:[#allocation8 + $0x12] ss:$0 sm:$0xff] }
 0xf7b   :  { %v3818_v5 = vpop.f32.mrb[50].mxu1 }
 0xf7c   :  { %v3821_v6 = vmax.f32 %v3816_v20, 0.0  ;;  %v7141_v8 = vpop.f32.mrb[51].mxu1 }
 0xf7e   :  { %v3822_v9 = vmin.f32 %v3821_v6, 6.0 }
 0xf80   :  { %3823 = vst [vmem:[#allocation2 + $0x8] sm:$0xf] %v3822_v9 }
 0xf87   :  { %v3827_v11 = vld [vmem:[#allocation2 + $0x8] sm:$0xf] }
 0xf88   :  { %v3829_v40 = vld [vmem:[#allocation2 + $0x9] sm:$0xf]  ;;  %v3828_v41 = vpack.c.bf16 %v3827_v11, %v3827_v11 }
 0xf89   :  { %v3824_v13 = vld [vmem:[#allocation2 + $0x7] sm:$0xf]  ;;  %v6094_v56 = vpack.c.bf16 %v3829_v40, %v3829_v40 }
 0xf8a   :  { %v6089_v21 = vpack.c.bf16 %v3824_v13, %v3824_v13  ;;  %4061 = vmatprep.mubr.bf16.mxu0 %v3828_v41 }
 0xf8b   :  { %7159 = vmatmul.mubr.msk.bf16.vlgmr.msra.gmra.mrb[52].mxu1 %vm8179_vm7, %v6094_v56 }
 0xf8c   :  { %6090 = vmatmul.mubr.msk.bf16.vlgmr.msra.gmra.mrb[60].mxu0 %vm8151_vm5, %v6089_v21  ;;  %6665 = vmatpush3.bf16.msra.mxu1 %v7667_v24  ;;  %v7697_v24 = vld [vmem:[#allocation6 + $0xb00] sm:$0xff]  }
 0xf8d   :  { %7163 = vmatpush3.bf16.msra.mxu0 %v7657_v43  ;;  %7178 = vmatprep.mubr.msk.bf16.mxu0 %vm7887_vm9, %v8128_v12 }
 0xf8e   :  { %7164 = vmatprep.subr.bf16.mxu0 %v8128_v12  ;;  %6666 = vmatprep.subr.bf16.mxu1 %v7668_v25  ;;  %v7699_v25 = vld [vmem:[#allocation6 + $0xac0] sm:$0xff]  }
 0xf90   :  { %6667 = vmatpush3.bf16.msra.mxu1 %v7670_v26  ;;  %v7700_v26 = vld [vmem:[#allocation6 + $0xb08] sm:$0xff]  }
 0xf91   :  { %7165 = vmatpush3.bf16.msra.mxu0 %v7658_v14  ;;  %6668 = vmatprep.subr.bf16.mxu1 %v7671_v27  ;;  %v7689_v14 = vld [vmem:[#allocation6 + $0xa80] sm:$0xff]   ;;  %v7702_v27 = vld [vmem:[#allocation6 + $0xac8] sm:$0xff]  }
 0xf92   :  { %7166 = vmatprep.subr.bf16.mxu0 %v8128_v12 }
 0xf94   :  { %6669 = vmatpush3.bf16.msra.mxu1 %v7673_v28  ;;  %v7703_v28 = vld [vmem:[#allocation6 + $0xb10] sm:$0xff]  }
 0xf95   :  { %7167 = vmatpush3.bf16.msra.mxu0 %v7659_v39  ;;  %6670 = vmatprep.subr.bf16.mxu1 %v7674_v29  ;;  %v7690_v39 = vld [vmem:[#allocation6 + $0xa88] sm:$0xff]   ;;  %v7705_v29 = vld [vmem:[#allocation6 + $0xad0] sm:$0xff]  }
 0xf96   :  { %7168 = vmatprep.subr.bf16.mxu0 %v8128_v12 }
 0xf98   :  { %6671 = vmatpush3.bf16.msra.mxu1 %v7676_v30  ;;  %v7706_v30 = vld [vmem:[#allocation6 + $0xb18] sm:$0xff]  }
 0xf99   :  { %7169 = vmatpush3.bf16.msra.mxu0 %v7660_v15  ;;  %6672 = vmatprep.subr.bf16.mxu1 %v7677_v55  ;;  %v7691_v15 = vld [vmem:[#allocation6 + $0xa90] sm:$0xff]   ;;  %v7707_v55 = vld [vmem:[#allocation6 + $0xb58] sm:$0xff]  }
 0xf9a   :  { %7170 = vmatprep.subr.bf16.mxu0 %v8128_v12 }
 0xf9c   :  { %6673 = vmatpush3.bf16.msra.mxu1 %v7679_v58  ;;  %v7710_v58 = vld [vmem:[#allocation6 + $0xb60] sm:$0xff]  }
 0xf9d   :  { %7171 = vmatpush3.bf16.msra.mxu0 %v7661_v16  ;;  %6674 = vmatprep.subr.bf16.mxu1 %v7680_v59  ;;  %v7692_v16 = vld [vmem:[#allocation6 + $0xa98] sm:$0xff]   ;;  %v7711_v59 = vld [vmem:[#allocation6 + $0xae0] sm:$0xff]  }
 0xf9e   :  { %7172 = vmatprep.subr.bf16.mxu0 %v8128_v12 }
 0xfa0   :  { %6675 = vmatpush3.bf16.msra.mxu1 %v7682_v61  ;;  %v7713_v61 = vld [vmem:[#allocation6 + $0xb68] sm:$0xff]  }
 0xfa1   :  { %7173 = vmatpush3.bf16.msra.mxu0 %v7662_v18  ;;  %6676 = vmatprep.subr.bf16.mxu1 %v7683_v62  ;;  %v7693_v18 = vld [vmem:[#allocation6 + $0xaa0] sm:$0xff]   ;;  %v7714_v62 = vld [vmem:[#allocation6 + $0xae8] sm:$0xff]  }
 0xfa2   :  { %7174 = vmatprep.subr.bf16.mxu0 %v8128_v12 }
 0xfa4   :  { %6677 = vmatpush3.bf16.msra.mxu1 %v7685_v0  ;;  %v7716_v0 = vld [vmem:[#allocation6 + $0xb70] sm:$0xff]  }
 0xfa5   :  { %7175 = vmatpush3.bf16.msra.mxu0 %v7663_v19  ;;  %6678 = vmatprep.subr.bf16.mxu1 %v7686_v1  ;;  %v7694_v19 = vld [vmem:[#allocation6 + $0xaa8] sm:$0xff]   ;;  %v7717_v1 = vld [vmem:[#allocation6 + $0xaf0] sm:$0xff]  }
 0xfa6   :  { %7176 = vmatprep.subr.bf16.mxu0 %v8128_v12 }
 0xfa8   :  { %6679 = vmatpush3.bf16.msra.mxu1 %v7688_v3  ;;  %v7719_v3 = vld [vmem:[#allocation6 + $0xb78] sm:$0xff]  }
 0xfa9   :  { %7177 = vmatpush3.bf16.msra.mxu0 %v7664_v22  ;;  %7202 = vmatprep.subr.bf16.mxu1 %v8245_v52  ;;  %v7695_v22 = vld [vmem:[#allocation6 + $0xab0] sm:$0xff]  }
 0xfaa   :  { %7182 = vmatprep.subr.bf16.mxu0 %v8128_v12  ;;  %v6061_v12 = vld [vmem:[#allocation8 + $0x11] ss:$0 sm:$0xff] }
0x105e   :  { %v4103_v31 = vpop.f32.mrb[52].mxu1 }
0x105f   :  { %v6640_v32 = vpop.f32.mrb[60].mxu0  ;;  %v7160_v33 = vpop.f32.mrb[53].mxu1 }
0x1060   :  { %v6641_v34 = vpop.f32.mrb[61].mxu0  ;;  %v4106_v35 = vpop.f32.mrb[54].mxu1 }
0x1061   :  { %v6642_v36 = vadd.f32 %v6641_v34, %v6640_v32  ;;  %v6643_v37 = vpop.f32.mrb[62].mxu0  ;;  %v7161_v38 = vpop.f32.mrb[55].mxu1  ;;  %v6105_v34 = vld [vmem:[#allocation8 + $0x13] ss:$0 sm:$0xff] }
0x1062   :  { %v6644_v44 = vpop.f32.mrb[63].mxu0 }
0x1063   :  { %v4064_v45 = vadd.f32 %v6642_v36, %v6061_v12 }
0x1065   :  { %v4104_v46 = vadd.f32 %v4103_v31, %v4064_v45  ;;  %v7708_v31 = vld [vmem:[#allocation6 + $0xad8] sm:$0xff]  }
0x1067   :  { %v4109_v47 = vmax.f32 %v4104_v46, 0.0 }
0x1069   :  { %v4110_v48 = vmin.f32 %v4109_v47, 6.0 }
0x106b   :  { %v4111_v50 = vpack.c.bf16 %v4110_v48, %v4110_v48 }
0x106d   :  { %7179 = vmatmul.mubr.bf16.vlgmr.msra.gmra.mrb[64].mxu0 %v4111_v50  ;;  %v7698_v50 = vld [vmem:[#allocation6 + $0xb40] sm:$0xff]  }
0x106e   :  { %7183 = vmatpush3.bf16.msra.mxu0 %v7666_v49  ;;  %7198 = vmatprep.mubr.msk.bf16.mxu0 %vm7887_vm9, %v8245_v52 }
0x106f   :  { %7184 = vmatprep.subr.bf16.mxu0 %v8245_v52 }
0x1072   :  { %7185 = vmatpush3.bf16.msra.mxu0 %v7669_v51 }
0x1073   :  { %7186 = vmatprep.subr.bf16.mxu0 %v8245_v52 }
0x1076   :  { %7187 = vmatpush3.bf16.msra.mxu0 %v7672_v53  ;;  %v7701_v53 = vld [vmem:[#allocation6 + $0xb48] sm:$0xff]  }
0x1077   :  { %7188 = vmatprep.subr.bf16.mxu0 %v8245_v52 }
0x107a   :  { %7189 = vmatpush3.bf16.msra.mxu0 %v7675_v54  ;;  %v7704_v54 = vld [vmem:[#allocation6 + $0xb50] sm:$0xff]  }
0x107b   :  { %7190 = vmatprep.subr.bf16.mxu0 %v8245_v52 }
0x107e   :  { %7191 = vmatpush3.bf16.msra.mxu0 %v7678_v57  ;;  %v7709_v57 = vld [vmem:[#allocation6 + $0xb20] sm:$0xff]  }
0x107f   :  { %7192 = vmatprep.subr.bf16.mxu0 %v8245_v52 }
0x1082   :  { %7193 = vmatpush3.bf16.msra.mxu0 %v7681_v60  ;;  %v7712_v60 = vld [vmem:[#allocation6 + $0xb28] sm:$0xff]  }
0x1083   :  { %7194 = vmatprep.subr.bf16.mxu0 %v8245_v52 }
0x1086   :  { %7195 = vmatpush3.bf16.msra.mxu0 %v7684_v63  ;;  %v7715_v63 = vld [vmem:[#allocation6 + $0xb30] sm:$0xff]  }
0x1087   :  { %7196 = vmatprep.subr.bf16.mxu0 %v8245_v52 }
0x108a   :  { %7197 = vmatpush3.bf16.msra.mxu0 %v7687_v2  ;;  %v7718_v2 = vld [vmem:[#allocation6 + $0xb38] sm:$0xff]  }
0x108b   :  { %6704 = vmatprep.subr.bf16.mxu0 %v7697_v24  ;;  %v7730_v24 = vld [vmem:[#allocation6 + $0xbc0] sm:$0xff]  }
0x1140   :  { %v4215_v20 = vpop.f32.mrb[64].mxu0 }
0x1141   :  { %v4216_v42 = vadd.f32 %v6096_v4, %v4215_v20  ;;  %v7180_v5 = vpop.f32.mrb[65].mxu0  ;;  %v7720_v4 = vld [vmem:[#allocation6 + $0xaf8] sm:$0xff]   ;;  %v6140_v20 = vld [vmem:[#allocation8 + $0x14] ss:$0 sm:$0xff] }
0x1142   :  { %v4218_v6 = vpop.f32.mrb[66].mxu0 }
0x1143   :  { %v4221_v8 = vmax.f32 %v4216_v42, 0.0  ;;  %v7181_v9 = vpop.f32.mrb[67].mxu0 }
0x1145   :  { %v4222_v11 = vmin.f32 %v4221_v8, 6.0 }
0x1147   :  { %4223 = vst [vmem:[#allocation2 + $0x8] sm:$0xf] %v4222_v11 }
0x114e   :  { %v4227_v40 = vld [vmem:[#allocation2 + $0x8] sm:$0xf] }
0x114f   :  { %v4229_v13 = vld [vmem:[#allocation2 + $0x9] sm:$0xf]  ;;  %v4228_v56 = vpack.c.bf16 %v4227_v40, %v4227_v40 }
0x1150   :  { %v4224_v41 = vld [vmem:[#allocation2 + $0x7] sm:$0xf]  ;;  %v6138_v21 = vpack.c.bf16 %v4229_v13, %v4229_v13 }
0x1151   :  { %v6133_v43 = vpack.c.bf16 %v4224_v41, %v4224_v41  ;;  %4461 = vmatprep.mubr.bf16.mxu1 %v4228_v56 }
0x1152   :  { %7199 = vmatmul.mubr.msk.bf16.vlgmr.msra.gmra.mrb[68].mxu0 %vm8179_vm7, %v6138_v21 }
0x1153   :  { %6134 = vmatmul.mubr.msk.bf16.vlgmr.msra.gmra.mrb[56].mxu1 %vm8151_vm5, %v6133_v43  ;;  %6705 = vmatpush3.bf16.msra.mxu0 %v7699_v25  ;;  %v7731_v25 = vld [vmem:[#allocation6 + $0xc08] sm:$0xff]  }
0x1154   :  { %7203 = vmatpush3.bf16.msra.mxu1 %v7689_v14  ;;  %7218 = vmatprep.mubr.msk.bf16.mxu1 %vm7887_vm9, %v8245_v52 }
0x1155   :  { %7204 = vmatprep.subr.bf16.mxu1 %v8245_v52  ;;  %6706 = vmatprep.subr.bf16.mxu0 %v7700_v26  ;;  %v7732_v26 = vld [vmem:[#allocation6 + $0xbc8] sm:$0xff]  }
0x1157   :  { %6707 = vmatpush3.bf16.msra.mxu0 %v7702_v27  ;;  %v7733_v27 = vld [vmem:[#allocation6 + $0xc10] sm:$0xff]  }
0x1158   :  { %7205 = vmatpush3.bf16.msra.mxu1 %v7690_v39  ;;  %6708 = vmatprep.subr.bf16.mxu0 %v7703_v28  ;;  %v7721_v39 = vld [vmem:[#allocation6 + $0xb80] sm:$0xff]   ;;  %v7734_v28 = vld [vmem:[#allocation6 + $0xbd0] sm:$0xff]  }
0x1159   :  { %7206 = vmatprep.subr.bf16.mxu1 %v8245_v52 }
0x115b   :  { %6709 = vmatpush3.bf16.msra.mxu0 %v7705_v29  ;;  %v7735_v29 = vld [vmem:[#allocation6 + $0xc18] sm:$0xff]  }
0x115c   :  { %7207 = vmatpush3.bf16.msra.mxu1 %v7691_v15  ;;  %6710 = vmatprep.subr.bf16.mxu0 %v7706_v30  ;;  %v7722_v15 = vld [vmem:[#allocation6 + $0xb88] sm:$0xff]   ;;  %v7736_v30 = vld [vmem:[#allocation6 + $0xbd8] sm:$0xff]  }
0x115d   :  { %7208 = vmatprep.subr.bf16.mxu1 %v8245_v52 }
0x115f   :  { %6711 = vmatpush3.bf16.msra.mxu0 %v7708_v31 }
0x1160   :  { %7209 = vmatpush3.bf16.msra.mxu1 %v7692_v16  ;;  %6712 = vmatprep.subr.bf16.mxu0 %v7709_v57  ;;  %v7723_v16 = vld [vmem:[#allocation6 + $0xb90] sm:$0xff]  }
0x1161   :  { %7210 = vmatprep.subr.bf16.mxu1 %v8245_v52  ;;  %v7742_v57 = vld [vmem:[#allocation6 + $0xbf0] sm:$0xff]  }
0x1163   :  { %6713 = vmatpush3.bf16.msra.mxu0 %v7711_v59  ;;  %v7744_v59 = vld [vmem:[#allocation6 + $0xbf8] sm:$0xff]  }
0x1164   :  { %7211 = vmatpush3.bf16.msra.mxu1 %v7693_v18  ;;  %6714 = vmatprep.subr.bf16.mxu0 %v7712_v60  ;;  %v7724_v18 = vld [vmem:[#allocation6 + $0xb98] sm:$0xff]   ;;  %v7745_v60 = vld [vmem:[#allocation6 + $0xc40] sm:$0xff]  }
0x1165   :  { %7212 = vmatprep.subr.bf16.mxu1 %v8245_v52 }
0x1167   :  { %6715 = vmatpush3.bf16.msra.mxu0 %v7714_v62  ;;  %v7747_v62 = vld [vmem:[#allocation6 + $0xc50] sm:$0xff]  }
0x1168   :  { %7213 = vmatpush3.bf16.msra.mxu1 %v7694_v19  ;;  %6716 = vmatprep.subr.bf16.mxu0 %v7715_v63  ;;  %v7727_v19 = vld [vmem:[#allocation6 + $0xbb0] sm:$0xff]   ;;  %v7748_v63 = vld [vmem:[#allocation6 + $0xc58] sm:$0xff]  }
0x1169   :  { %7214 = vmatprep.subr.bf16.mxu1 %v8245_v52 }
0x116b   :  { %6717 = vmatpush3.bf16.msra.mxu0 %v7717_v1  ;;  %v6184_v1 = vld [vmem:[#allocation8 + $0x16] ss:$0 sm:$0xff] }
0x116c   :  { %7215 = vmatpush3.bf16.msra.mxu1 %v7695_v22  ;;  %6718 = vmatprep.subr.bf16.mxu0 %v7718_v2  ;;  %v7728_v22 = vld [vmem:[#allocation6 + $0xbb8] sm:$0xff]  }
0x116d   :  { %7216 = vmatprep.subr.bf16.mxu1 %v8245_v52 }
0x116f   :  { %6719 = vmatpush3.bf16.msra.mxu0 %v7720_v4 }
0x1170   :  { %7217 = vmatpush3.bf16.msra.mxu1 %v7696_v23  ;;  %7242 = vmatprep.subr.bf16.mxu0 %v8245_v52  ;;  %v7729_v23 = vld [vmem:[#allocation6 + $0xc00] sm:$0xff]  }
0x1171   :  { %7222 = vmatprep.subr.bf16.mxu1 %v8245_v52 }
0x1225   :  { %v4503_v32 = vpop.f32.mrb[68].mxu0 }
0x1226   :  { %v6680_v33 = vpop.f32.mrb[56].mxu1  ;;  %v7200_v12 = vpop.f32.mrb[69].mxu0 }
0x1227   :  { %v6681_v35 = vpop.f32.mrb[57].mxu1  ;;  %v4506_v36 = vpop.f32.mrb[70].mxu0  ;;  %v6149_v12 = vld [vmem:[#allocation8 + $0x15] ss:$0 sm:$0xff] }
0x1228   :  { %v6682_v37 = vadd.f32 %v6681_v35, %v6680_v33  ;;  %v6683_v38 = vpop.f32.mrb[58].mxu1  ;;  %v7201_v44 = vpop.f32.mrb[71].mxu0 }
0x1229   :  { %v6684_v45 = vpop.f32.mrb[59].mxu1 }
0x122a   :  { %v4464_v46 = vadd.f32 %v6682_v37, %v6105_v34 }
0x122c   :  { %v4504_v47 = vadd.f32 %v4503_v32, %v4464_v46 }
0x122e   :  { %v4509_v48 = vmax.f32 %v4504_v47, 0.0 }
0x1230   :  { %v4510_v49 = vmin.f32 %v4509_v48, 6.0 }
0x1232   :  { %v4511_v51 = vpack.c.bf16 %v4510_v49, %v4510_v49 }
0x1234   :  { %7219 = vmatmul.mubr.bf16.vlgmr.msra.gmra.mrb[60].mxu1 %v4511_v51  ;;  %v7738_v51 = vld [vmem:[#allocation6 + $0xbe0] sm:$0xff]  }
0x1235   :  { %7223 = vmatpush3.bf16.msra.mxu1 %v7698_v50  ;;  %7238 = vmatprep.mubr.msk.bf16.mxu1 %vm7887_vm9, %v8245_v52  ;;  %v7737_v50 = vld [vmem:[#allocation6 + $0xc20] sm:$0xff]  }
0x1236   :  { %7224 = vmatprep.subr.bf16.mxu1 %v8245_v52 }
0x1239   :  { %7225 = vmatpush3.bf16.msra.mxu1 %v7701_v53  ;;  %v7739_v53 = vld [vmem:[#allocation6 + $0xc28] sm:$0xff]  }
0x123a   :  { %7226 = vmatprep.subr.bf16.mxu1 %v8245_v52 }
0x123d   :  { %7227 = vmatpush3.bf16.msra.mxu1 %v7704_v54  ;;  %v7740_v54 = vld [vmem:[#allocation6 + $0xbe8] sm:$0xff]  }
0x123e   :  { %7228 = vmatprep.subr.bf16.mxu1 %v8245_v52 }
0x1241   :  { %7229 = vmatpush3.bf16.msra.mxu1 %v7707_v55  ;;  %v7741_v55 = vld [vmem:[#allocation6 + $0xc30] sm:$0xff]  }
0x1242   :  { %7230 = vmatprep.subr.bf16.mxu1 %v8245_v52 }
0x1245   :  { %7231 = vmatpush3.bf16.msra.mxu1 %v7710_v58  ;;  %v7743_v58 = vld [vmem:[#allocation6 + $0xc38] sm:$0xff]  }
0x1246   :  { %7232 = vmatprep.subr.bf16.mxu1 %v8245_v52 }
0x1249   :  { %7233 = vmatpush3.bf16.msra.mxu1 %v7713_v61  ;;  %v7746_v61 = vld [vmem:[#allocation6 + $0xc48] sm:$0xff]  }
0x124a   :  { %7234 = vmatprep.subr.bf16.mxu1 %v8245_v52 }
0x124d   :  { %7235 = vmatpush3.bf16.msra.mxu1 %v7716_v0  ;;  %v7749_v0 = vld [vmem:[#allocation6 + $0xc60] sm:$0xff]  }
0x124e   :  { %7236 = vmatprep.subr.bf16.mxu1 %v8245_v52 }
0x1251   :  { %7237 = vmatpush3.bf16.msra.mxu1 %v7719_v3 }
0x1252   :  { %6744 = vmatprep.subr.bf16.mxu1 %v7729_v23 }
0x1307   :  { %v4615_v42 = vpop.f32.mrb[60].mxu1 }
0x1308   :  { %v4616_v5 = vadd.f32 %v6140_v20, %v4615_v42  ;;  %v7220_v6 = vpop.f32.mrb[61].mxu1 }
0x1309   :  { %v4618_v8 = vpop.f32.mrb[62].mxu1 }
0x130a   :  { %v4621_v9 = vmax.f32 %v4616_v5, 0.0  ;;  %v7221_v11 = vpop.f32.mrb[63].mxu1 }
0x130c   :  { %v4622_v40 = vmin.f32 %v4621_v9, 6.0 }
0x130e   :  { %4623 = vst [vmem:[#allocation2 + $0x8] sm:$0xf] %v4622_v40 }
0x1315   :  { %v4627_v13 = vld [vmem:[#allocation2 + $0x8] sm:$0xf] }
0x1316   :  { %v4629_v41 = vld [vmem:[#allocation2 + $0x9] sm:$0xf]  ;;  %v4628_v21 = vpack.c.bf16 %v4627_v13, %v4627_v13  ;;  %v7750_v13 = vld [vmem:[#allocation6 + $0xc68] sm:$0xff]  }
0x1317   :  { %v4624_v56 = vld [vmem:[#allocation2 + $0x7] sm:$0xf]  ;;  %v6182_v43 = vpack.c.bf16 %v4629_v41, %v4629_v41 }
0x1318   :  { %v6177_v14 = vpack.c.bf16 %v4624_v56, %v4624_v56  ;;  %4861 = vmatprep.mubr.bf16.mxu0 %v4628_v21  ;;  %v7751_v41 = vld [vmem:[#allocation6 + $0xc70] sm:$0xff]   ;;  %v7752_v56 = vld [vmem:[#allocation6 + $0xc78] sm:$0xff]   ;;  %v7753_v21 = vld [vmem:[#allocation6 + $0xc80] sm:$0xff]  }
0x1319   :  { %7239 = vmatmul.mubr.msk.bf16.vlgmr.msra.gmra.mrb[64].mxu1 %vm8179_vm7, %v6182_v43  ;;  %v7754_v43 = vld [vmem:[#allocation6 + $0xc88] sm:$0xff]  }
0x131a   :  { %6178 = vmatmul.mubr.msk.bf16.vlgmr.msra.gmra.mrb[72].mxu0 %vm8151_vm5, %v6177_v14  ;;  %6745 = vmatpush3.bf16.msra.mxu1 %v7730_v24  ;;  %v7755_v14 = vld [vmem:[#allocation6 + $0xc90] sm:$0xff]  }
0x131b   :  { %7243 = vmatpush3.bf16.msra.mxu0 %v7721_v39  ;;  %7258 = vmatprep.mubr.msk.bf16.mxu0 %vm7887_vm9, %v8245_v52  ;;  %v7756_v39 = vld [vmem:[#allocation6 + $0xc98] sm:$0xff]  }
0x131c   :  { %7244 = vmatprep.subr.bf16.mxu0 %v8245_v52  ;;  %6746 = vmatprep.subr.bf16.mxu1 %v7731_v25 }
0x131e   :  { %6747 = vmatpush3.bf16.msra.mxu1 %v7732_v26  ;;  %v7757_v26 = vld [vmem:[#allocation6 + $0xca0] sm:$0xff]  }
0x131f   :  { %7245 = vmatpush3.bf16.msra.mxu0 %v7722_v15  ;;  %6748 = vmatprep.subr.bf16.mxu1 %v7733_v27  ;;  %v7758_v27 = vld [vmem:[#allocation6 + $0xca8] sm:$0xff]  }
0x1320   :  { %7246 = vmatprep.subr.bf16.mxu0 %v8245_v52 }
0x1322   :  { %6749 = vmatpush3.bf16.msra.mxu1 %v7734_v28  ;;  %v7759_v28 = vld [vmem:[#allocation6 + $0xcb0] sm:$0xff]  }
0x1323   :  { %7247 = vmatpush3.bf16.msra.mxu0 %v7723_v16  ;;  %6750 = vmatprep.subr.bf16.mxu1 %v7735_v29  ;;  %v6193_v16 = vld [vmem:[#allocation8 + $0x17] ss:$0 sm:$0xff]  ;;  %v7760_v29 = vld [vmem:[#allocation6 + $0xcb8] sm:$0xff]  }
0x1324   :  { %7248 = vmatprep.subr.bf16.mxu0 %v8245_v52 }
0x1326   :  { %6751 = vmatpush3.bf16.msra.mxu1 %v7736_v30  ;;  %v7761_v30 = vld [vmem:[#allocation6 + $0xcc0] sm:$0xff]  }
0x1327   :  { %7249 = vmatpush3.bf16.msra.mxu0 %v7724_v18  ;;  %6752 = vmatprep.subr.bf16.mxu1 %v7737_v50  ;;  %v7767_v50 = vld [vmem:[#allocation6 + $0xcf0] sm:$0xff]  }
0x1328   :  { %7250 = vmatprep.subr.bf16.mxu0 %v8245_v52 }
0x132a   :  { %6753 = vmatpush3.bf16.msra.mxu1 %v7738_v51  ;;  %v7768_v51 = vld [vmem:[#allocation6 + $0xcf8] sm:$0xff]  }
0x132b   :  { %7251 = vmatpush3.bf16.msra.mxu0 %v7725_v10  ;;  %6754 = vmatprep.subr.bf16.mxu1 %v7739_v53  ;;  %v7769_v53 = vld [vmem:[#allocation6 + $0xd00] sm:$0xff]  }
0x132c   :  { %7252 = vmatprep.subr.bf16.mxu0 %v8245_v52 }
0x132e   :  { %6755 = vmatpush3.bf16.msra.mxu1 %v7740_v54  ;;  %v7770_v54 = vld [vmem:[#allocation6 + $0xd08] sm:$0xff]  }
0x132f   :  { %7253 = vmatpush3.bf16.msra.mxu0 %v7726_v7  ;;  %6756 = vmatprep.subr.bf16.mxu1 %v7741_v55  ;;  %v7771_v55 = vld [vmem:[#allocation6 + $0xd10] sm:$0xff]  }
0x1330   :  { %7254 = vmatprep.subr.bf16.mxu0 %v8245_v52 }
0x1332   :  { %6757 = vmatpush3.bf16.msra.mxu1 %v7742_v57  ;;  %v7772_v57 = vld [vmem:[#allocation6 + $0xd18] sm:$0xff]  }
0x1333   :  { %7255 = vmatpush3.bf16.msra.mxu0 %v7727_v19  ;;  %6758 = vmatprep.subr.bf16.mxu1 %v7743_v58  ;;  %v7773_v58 = vld [vmem:[#allocation6 + $0xd20] sm:$0xff]  }
0x1334   :  { %7256 = vmatprep.subr.bf16.mxu0 %v8245_v52 }
0x1336   :  { %6759 = vmatpush3.bf16.msra.mxu1 %v7744_v59  ;;  %v7774_v59 = vld [vmem:[#allocation6 + $0xd28] sm:$0xff]  }
0x1337   :  { %7257 = vmatpush3.bf16.msra.mxu0 %v7728_v22  ;;  %7282 = vmatprep.subr.bf16.mxu1 %v8245_v52 }
0x1338   :  { %7262 = vmatprep.subr.bf16.mxu0 %v8245_v52 }
0x13ec   :  { %v4903_v31 = vpop.f32.mrb[64].mxu1 }
0x13ed   :  { %v6720_v32 = vpop.f32.mrb[72].mxu0  ;;  %v7240_v33 = vpop.f32.mrb[65].mxu1 }
0x13ee   :  { %v6721_v34 = vpop.f32.mrb[73].mxu0  ;;  %v4906_v35 = vpop.f32.mrb[66].mxu1  ;;  %v7764_v33 = vld [vmem:[#allocation6 + $0xcd8] sm:$0xff]  }
0x13ef   :  { %v6722_v36 = vadd.f32 %v6721_v34, %v6720_v32  ;;  %v6723_v37 = vpop.f32.mrb[74].mxu0  ;;  %v7241_v38 = vpop.f32.mrb[67].mxu1  ;;  %v7763_v32 = vld [vmem:[#allocation6 + $0xcd0] sm:$0xff]   ;;  %v7766_v34 = vld [vmem:[#allocation6 + $0xce8] sm:$0xff]   ;;  %v6210_v35 = vld [vmem:[#allocation8 + $0x18] ss:$0 sm:$0xff] }
0x13f0   :  { %v6724_v44 = vpop.f32.mrb[75].mxu0 }
0x13f1   :  { %v4864_v45 = vadd.f32 %v6722_v36, %v6149_v12  ;;  %v7765_v12 = vld [vmem:[#allocation6 + $0xce0] sm:$0xff]  }
0x13f3   :  { %v4904_v46 = vadd.f32 %v4903_v31, %v4864_v45  ;;  %v7762_v31 = vld [vmem:[#allocation6 + $0xcc8] sm:$0xff]  }
0x13f5   :  { %v4909_v47 = vmax.f32 %v4904_v46, 0.0 }
0x13f7   :  { %v4910_v48 = vmin.f32 %v4909_v47, 6.0 }
0x13f9   :  { %v4911_v49 = vpack.c.bf16 %v4910_v48, %v4910_v48 }
0x13fb   :  { %7259 = vmatmul.mubr.bf16.vlgmr.msra.gmra.mrb[76].mxu0 %v4911_v49 }
0x13fc   :  { %7278 = vmatprep.mubr.msk.bf16.mxu0 %vm7887_vm9, %v8245_v52  ;;  %7263 = vmatpush3.bf16.msra.mxu0 %v7745_v60  ;;  %v6219_v60 = vld [vmem:[#allocation8 + $0x19] ss:$0 sm:$0xff] }
0x13fd   :  { %7264 = vmatprep.subr.bf16.mxu0 %v8245_v52 }
0x1400   :  { %7265 = vmatpush3.bf16.msra.mxu0 %v7746_v61 }
0x1401   :  { %7266 = vmatprep.subr.bf16.mxu0 %v8245_v52 }
0x1404   :  { %7267 = vmatpush3.bf16.msra.mxu0 %v7747_v62 }
0x1405   :  { %7268 = vmatprep.subr.bf16.mxu0 %v8245_v52 }
0x1408   :  { %7269 = vmatpush3.bf16.msra.mxu0 %v7748_v63 }
0x1409   :  { %7270 = vmatprep.subr.bf16.mxu0 %v8245_v52 }
0x140c   :  { %7271 = vmatpush3.bf16.msra.mxu0 %v7749_v0 }
0x140d   :  { %7272 = vmatprep.subr.bf16.mxu0 %v8245_v52 }
0x1410   :  { %7273 = vmatpush3.bf16.msra.mxu0 %v7750_v13 }
0x1411   :  { %7274 = vmatprep.subr.bf16.mxu0 %v8245_v52 }
0x1414   :  { %7275 = vmatpush3.bf16.msra.mxu0 %v7751_v41 }
0x1415   :  { %7276 = vmatprep.subr.bf16.mxu0 %v8245_v52 }
0x1418   :  { %7277 = vmatpush3.bf16.msra.mxu0 %v7752_v56 }
0x1419   :  { %7302 = vmatprep.subr.bf16.mxu0 %v8245_v52 }
0x14ce   :  { %v5015_v2 = vpop.f32.mrb[76].mxu0 }
0x14cf   :  { %v5016_v3 = vadd.f32 %v6184_v1, %v5015_v2  ;;  %v7260_v4 = vpop.f32.mrb[77].mxu0 }
0x14d0   :  { %v5018_v20 = vpop.f32.mrb[78].mxu0 }
0x14d1   :  { %v5021_v42 = vmax.f32 %v5016_v3, 0.0  ;;  %v7261_v5 = vpop.f32.mrb[79].mxu0  ;;  %v7775_v20 = vld [vmem:[#allocation6 + $0xd30] sm:$0xff]  }
0x14d2   :  { %v6228_v5 = vld [vmem:[#allocation8 + $0x1a] ss:$0 sm:$0xff] }
0x14d3   :  { %v5022_v6 = vmin.f32 %v5021_v42, 6.0  ;;  %v7776_v42 = vld [vmem:[#allocation6 + $0xd38] sm:$0xff]  }
0x14d5   :  { %5023 = vst [vmem:[#allocation2 + $0x8] sm:$0xf] %v5022_v6 }
0x14dc   :  { %v5026_v8 = vld [vmem:[#allocation2 + $0x9] ss:$2 sm:$0x3]  ;;  %v5024_v9 = vld [vmem:[#allocation2 + $0x8] ss:$2 sm:$0x3] }
0x14dd   :  { %v5027_v11 = vpack.c.bf16 %v5026_v8, %v5026_v8  ;;  %v5025_v40 = vpack.c.bf16 %v5024_v9, %v5024_v9 }
0x14df   :  { %5193 = vmatprep.mubr.bf16.mxu1 %v5027_v11 }
0x14e0   :  { %5194 = vmatmul.mubr.bf16.vlgmr.msra.gmra.mrb[68].mxu1 %v5025_v40 }
0x14e1   :  { %7298 = vmatprep.mubr.msk.bf16.mxu1 %vm7887_vm9, %v8245_v52  ;;  %7283 = vmatpush3.bf16.msra.mxu1 %v7753_v21  ;;  %v5652_v21 = vand.u32 127, %v83_v17 }
0x14e2   :  { %7284 = vmatprep.subr.bf16.mxu1 %v8245_v52 }
0x14e3   :  { %vm5653_vm8 = vcmp.lt.s32.totalorder %v5652_v21, 5 }
0x14e5   :  { %7285 = vmatpush3.bf16.msra.mxu1 %v7754_v43  ;;  %v6237_v43 = vld [vmem:[#allocation8 + $0x1b] ss:$0 sm:$0xff] }
0x14e6   :  { %7286 = vmatprep.subr.bf16.mxu1 %v8245_v52 }
0x14e9   :  { %7287 = vmatpush3.bf16.msra.mxu1 %v7755_v14 }
0x14ea   :  { %7288 = vmatprep.subr.bf16.mxu1 %v8245_v52 }
0x14ed   :  { %7289 = vmatpush3.bf16.msra.mxu1 %v7756_v39 }
0x14ee   :  { %7290 = vmatprep.subr.bf16.mxu1 %v8245_v52 }
0x14f1   :  { %7291 = vmatpush3.bf16.msra.mxu1 %v7757_v26 }
0x14f2   :  { %7292 = vmatprep.subr.bf16.mxu1 %v8245_v52 }
0x14f5   :  { %7293 = vmatpush3.bf16.msra.mxu1 %v7758_v27 }
0x14f6   :  { %7294 = vmatprep.subr.bf16.mxu1 %v8245_v52 }
0x14f9   :  { %7295 = vmatpush3.bf16.msra.mxu1 %v7759_v28 }
0x14fa   :  { %7296 = vmatprep.subr.bf16.mxu1 %v8245_v52 }
0x14fd   :  { %7297 = vmatpush3.bf16.msra.mxu1 %v7760_v29 }
0x14fe   :  { %7322 = vmatprep.subr.bf16.mxu1 %v8245_v52 }
0x15b3   :  { %v6760_v15 = vpop.f32.mrb[68].mxu1 }
0x15b4   :  { %v6761_v18 = vpop.f32.mrb[69].mxu1 }
0x15b5   :  { %v6762_v10 = vadd.f32 %v6761_v18, %v6760_v15  ;;  %v6763_v7 = vpop.f32.mrb[70].mxu1 }
0x15b6   :  { %v6764_v19 = vpop.f32.mrb[71].mxu1 }
0x15b7   :  { %v5196_v22 = vadd.f32 %v6762_v10, %v6193_v16 }
0x15b9   :  { %v5201_v23 = vmax.f32 %v5196_v22, 0.0 }
0x15bb   :  { %v5202_v24 = vmin.f32 %v5201_v23, 6.0 }
0x15bd   :  { %v5203_v25 = vpack.c.bf16 %v5202_v24, %v5202_v24 }
0x15bf   :  { %7279 = vmatmul.mubr.bf16.vlgmr.msra.gmra.mrb[80].mxu0 %v5203_v25 }
0x15c0   :  { %7318 = vmatprep.mubr.msk.bf16.mxu0 %vm7887_vm9, %v8245_v52  ;;  %7303 = vmatpush3.bf16.msra.mxu0 %v7761_v30 }
0x15c1   :  { %7304 = vmatprep.subr.bf16.mxu0 %v8245_v52 }
0x15c4   :  { %7305 = vmatpush3.bf16.msra.mxu0 %v7762_v31 }
0x15c5   :  { %7306 = vmatprep.subr.bf16.mxu0 %v8245_v52 }
0x15c8   :  { %7307 = vmatpush3.bf16.msra.mxu0 %v7763_v32 }
0x15c9   :  { %7308 = vmatprep.subr.bf16.mxu0 %v8245_v52 }
0x15cc   :  { %7309 = vmatpush3.bf16.msra.mxu0 %v7764_v33 }
0x15cd   :  { %7310 = vmatprep.subr.bf16.mxu0 %v8245_v52 }
0x15d0   :  { %7311 = vmatpush3.bf16.msra.mxu0 %v7765_v12 }
0x15d1   :  { %7312 = vmatprep.subr.bf16.mxu0 %v8245_v52 }
0x15d4   :  { %7313 = vmatpush3.bf16.msra.mxu0 %v7766_v34 }
0x15d5   :  { %7314 = vmatprep.subr.bf16.mxu0 %v8245_v52 }
0x15d8   :  { %7315 = vmatpush3.bf16.msra.mxu0 %v7767_v50 }
0x15d9   :  { %7316 = vmatprep.subr.bf16.mxu0 %v8245_v52 }
0x15dc   :  { %7317 = vmatpush3.bf16.msra.mxu0 %v7768_v51 }
0x1692   :  { %v5307_v36 = vpop.f32.mrb[80].mxu0 }
0x1693   :  { %v5308_v37 = vadd.f32 %v6210_v35, %v5307_v36  ;;  %v7280_v38 = vpop.f32.mrb[81].mxu0 }
0x1694   :  { %v5310_v44 = vpop.f32.mrb[82].mxu0 }
0x1695   :  { %v5313_v45 = vmax.f32 %v5308_v37, 0.0  ;;  %v7281_v46 = vpop.f32.mrb[83].mxu0 }
0x1697   :  { %v5314_v47 = vmin.f32 %v5313_v45, 6.0 }
0x1699   :  { %5315 = vst [vmem:[#allocation2 + $0x8] sm:$0x3] %v5314_v47 }
0x16a0   :  { %v5316_v48 = vld [vmem:[#allocation2 + $0x8] sm:$0x3] }
0x16a1   :  { %v5317_v49 = vpack.c.bf16 %v5316_v48, %v5316_v48 }
0x16a3   :  { %7299 = vmatmul.mubr.bf16.vlgmr.msra.gmra.mrb[72].mxu1 %v5317_v49 }
0x16a4   :  { %7338 = vmatprep.mubr.msk.bf16.mxu1 %vm7887_vm9, %v8245_v52  ;;  %7323 = vmatpush3.bf16.msra.mxu1 %v7769_v53  ;;  %vm5655_vm9 = vcmask 1041408  }
0x16a5   :  { %7324 = vmatprep.subr.bf16.mxu1 %v8245_v52 }
0x16a8   :  { %7325 = vmatpush3.bf16.msra.mxu1 %v7770_v54 }
0x16a9   :  { %7326 = vmatprep.subr.bf16.mxu1 %v8245_v52 }
0x16ac   :  { %7327 = vmatpush3.bf16.msra.mxu1 %v7771_v55 }
0x16ad   :  { %7328 = vmatprep.subr.bf16.mxu1 %v8245_v52 }
0x16b0   :  { %7329 = vmatpush3.bf16.msra.mxu1 %v7772_v57 }
0x16b1   :  { %7330 = vmatprep.subr.bf16.mxu1 %v8245_v52 }
0x16b4   :  { %7331 = vmatpush3.bf16.msra.mxu1 %v7773_v58 }
0x16b5   :  { %7332 = vmatprep.subr.bf16.mxu1 %v8245_v52 }
0x16b8   :  { %7333 = vmatpush3.bf16.msra.mxu1 %v7774_v59 }
0x16b9   :  { %7334 = vmatprep.subr.bf16.mxu1 %v8245_v52 }
0x16bc   :  { %7335 = vmatpush3.bf16.msra.mxu1 %v7775_v20 }
0x16bd   :  { %7336 = vmatprep.subr.bf16.mxu1 %v8245_v52 }
0x16c0   :  { %7337 = vmatpush3.bf16.msra.mxu1 %v7776_v42 }
0x1776   :  { %v5421_v61 = vpop.f32.mrb[72].mxu1 }
0x1777   :  { %v5422_v62 = vadd.f32 %v6219_v60, %v5421_v61  ;;  %v7300_v63 = vpop.f32.mrb[73].mxu1 }
0x1778   :  { %v5424_v0 = vpop.f32.mrb[74].mxu1 }
0x1779   :  { %v5427_v1 = vmax.f32 %v5422_v62, 0.0  ;;  %v7301_v2 = vpop.f32.mrb[75].mxu1 }
0x177b   :  { %v5428_v3 = vmin.f32 %v5427_v1, 6.0 }
0x177d   :  { %v5429_v4 = vpack.c.bf16 %v5428_v3, %v5428_v3 }
0x177f   :  { %7319 = vmatmul.mubr.bf16.vlgmr.msra.gmra.mrb[84].mxu0 %v5429_v4 }
0x1852   :  { %v5533_v6 = vpop.f32.mrb[84].mxu0 }
0x1853   :  { %v5534_v8 = vadd.f32 %v6228_v5, %v5533_v6  ;;  %v7320_v9 = vpop.f32.mrb[85].mxu0 }
0x1854   :  { %v5536_v11 = vpop.f32.mrb[86].mxu0 }
0x1855   :  { %v5539_v40 = vmax.f32 %v5534_v8, 0.0  ;;  %v7321_v13 = vpop.f32.mrb[87].mxu0 }
0x1857   :  { %v5540_v41 = vmin.f32 %v5539_v40, 6.0 }
0x1859   :  { %v5541_v56 = vpack.c.bf16 %v5540_v41, %v5540_v41 }
0x185b   :  { %7339 = vmatmul.mubr.bf16.vlgmr.msra.gmra.mrb[76].mxu1 %v5541_v56 }
0x192e   :  { %v5645_v14 = vpop.f32.mrb[76].mxu1 }
0x192f   :  { %v5646_v39 = vadd.f32 %v6237_v43, %v5645_v14  ;;  %v7340_v15 = vpop.f32.mrb[77].mxu1 }
0x1930   :  { %v5648_v52 = vpop.f32.mrb[78].mxu1 }
0x1931   :  { %v7341_v16 = vpop.f32.mrb[79].mxu1  ;;  %v5654_v18 = vsel %vm5653_vm8, %v5646_v39, -1e+30 }
0x1932   :  { %v5656_v10 = vsel %vm5655_vm9, %v5654_v18, -inf }
0x1933   :  { %5657 = vmax.xlane.f32.xlu0 %v5656_v10 }
0x19c0   :  { %v5658_v7 = vpop.xlane.xlu0 %5657 }
0x19c1   :  { %v5659_v19 = vsub.f32 %v5654_v18, %v5658_v7 }
0x19c3   :  { %v5660_v22 = vmul.f32 1.442695, %v5659_v19 }
0x19c5   :  { %7777 = vpow2.f32 %v5660_v22 }
0x19cf   :  { %v7778_v23 = vpop.eup %7777 }
0x19d0   :  { %v5662_v24 = vsel %vm5653_vm8, %v7778_v23, 0.0 }
0x19d1   :  { %v5663_v25 = vsel %vm5655_vm9, %v5662_v24, 0.0 }
0x19d2   :  { %5664 = vadd.xlane.f32.xlu0 %v5663_v25 }
0x1a5f   :  { %v5665_v17 = vpop.xlane.xlu0 %5664 }
0x1a60   :  { %7779 = vrcp.f32 %v5665_v17 }
0x1a6a   :  { %v7780_v26 = vpop.eup %7779 }
0x1a6b   :  { %v5667_v27 = vmul.f32 %v7780_v26, %v5662_v24 }
0x1a6d   :  { %5668 = vst [vmem:[#allocation9] sm:$0x3] %v5667_v27 }
0x1a6e   :  { %7861 = shalt.err (!%p7858_p0)
}
0x1a6f   :  { %s7862_s27 = scalar_lea.hbm %s8350_s3, 32 }
0x1a70   :  { %p7863_p1 = scmp.ne.s32.totalorder %s8350_s3, %s7862_s27  ;;  %p7866_p2 = scmp.lt.u32.totalorder %s7862_s27, %s8350_s3 }
0x1a72   :  { %p7868_p3 = pnand %p7866_p2, %p7863_p1 }
0x1a74   :  { %7871 = shalt.err (!%p7868_p3)
}
0x1a75   :  { %5678 = dma.vmem_to_hbm [thread:$0]  %s5676_s23, 32, %s8350_s3, [#allocation5]  }
0x1a76   :  { %7876 = dma.done.wait [#allocation5], 32  }
0x1a77   :  { %7877 = vsyncadd [#allocation5], 4294967264 }
0x1a78   :  { %5682 = vsyncpa [#allocation4], 1 }
0x1a79   :  { %5683 = vsyncpa [#allocation7], 1 }
0x1a7a   :  { %5684 = vsyncpa [#allocation5], 1 }

</bundles_post_ra>
